<compile_context>
chip_gen: v5e
topology: v5e:2x2
jax: 0.10.0
libtpu: 0.0.40
codegen_flags: <defaults>
</compile_context>

<pallas_src>
import functools

import jax
import jax.numpy as jnp
from jax.experimental import pallas as pl
from jax.experimental.pallas import tpu as pltpu

K = 3                 # kernel_size
PW = (K - 1) // 2     # reflection-pad width (=1)


# ---------------------------------------------------------------------------
# In-kernel helpers
# ---------------------------------------------------------------------------
def _conv3x3(win_f32, w_bf16, nrows, W, C):
    """3x3 'valid' conv over a height-extended window via one MXU matmul.

    win_f32 : (nrows+2, W, C) f32 -- rows already include the top/bottom halo;
              width reflection-pad is applied here.
    w_bf16  : (9C, C) bf16, row index = (kh*3 + kw)*C + c_in.
    returns : (nrows*W, C) f32.
    """
    # Reflect-pad in W (padded col 0 = col 1, padded col W+1 = col W-2).
    winw = jnp.concatenate(
        [win_f32[:, 1:2, :], win_f32, win_f32[:, W - 2:W - 1, :]], axis=1)
    cols = []
    for dh in range(K):
        for dw in range(K):
            cols.append(winw[dh:dh + nrows, dw:dw + W, :])
    patch = jnp.concatenate(cols, axis=-1).reshape(nrows * W, K * K * C)
    # bf16 operands, f32 accumulation (v6e/v7x peak MXU path).
    return jnp.dot(patch.astype(jnp.bfloat16), w_bf16,
                   preferred_element_type=jnp.float32)


def _resnet_block_kernel(x_ref, w1_ref, b1_ref, w2_ref, b2_ref, o_ref, y_scr,
                         *, H, W, C, TH, YR):
    """Fused ResnetBlock forward for one (image n, row-tile r) grid step.

    x_ref  : (1, H, W, C)   unpadded input image (resident per image)
    w1_ref : (9C, C) bf16   w2_ref : (9C, C) bf16
    b1_ref : (1, C) f32     b2_ref : (1, C) f32
    o_ref  : (1, TH, W*C)   lane-dense output slab
    y_scr  : (YR, W, C) f32 VMEM scratch holding conv1+ReLU rows [ys, ys+YR)
    """
    r0 = pl.multiple_of(pl.program_id(1) * TH, TH)   # first output row of this tile

    w1b = w1_ref[...]                  # already bf16 (pre-cast in wrapper)
    w2b = w2_ref[...]
    b1f = b1_ref[...]                  # (1, C) f32
    b2f = b2_ref[...]

    # ------------------------------------------------------------------ conv1
    # One contiguous YR-row window of y (YR = min(TH+2, H)) covers every y row
    # that conv2 needs for this tile, including the vertically reflected ones.
    ys = jnp.clip(r0 - 1, 0, H - YR)                         # window start (y rows)
    # x rows needed: refl(ys-1), ys .. ys+YR-1, refl(ys+YR)   (reflection done here)
    x_top = jnp.where(ys == 0, 1, ys - 1)
    x_bot = jnp.where(ys + YR == H, H - 2, ys + YR)
    xwin = jnp.concatenate(
        [x_ref[0, pl.ds(x_top, 1), :, :],
         x_ref[0, pl.ds(ys, YR), :, :],
         x_ref[0, pl.ds(x_bot, 1), :, :]], axis=0).astype(jnp.float32)  # (YR+2, W, C)

    y = _conv3x3(xwin, w1b, YR, W, C) + b1f                  # (YR*W, C) f32
    y = jnp.maximum(y, 0.0).reshape(YR, W, C)                # activation = ReLU
    y_scr[...] = y

    # ------------------------------------------------------- conv2 + residual
    # Padded-y window rows: y[refl(r0-1)], y[r0 .. r0+TH-1], y[refl(r0+TH)],
    # all present in the scratch; pick them with dynamic-start reads.
    t0 = jnp.where(r0 == 0, 1, r0 - 1) - ys
    m0 = r0 - ys
    b0 = jnp.where(r0 + TH == H, H - 2, r0 + TH) - ys
    ywin = jnp.concatenate(
        [y_scr[pl.ds(t0, 1), :, :],
         y_scr[pl.ds(m0, TH), :, :],
         y_scr[pl.ds(b0, 1), :, :]], axis=0)                 # (TH+2, W, C) f32

    z = (_conv3x3(ywin, w2b, TH, W, C) + b2f).reshape(TH, W, C)
    xres = x_ref[0, pl.ds(r0, TH), :, :].astype(jnp.float32)  # aligned: r0 % TH == 0
    out = z + xres                                            # residual, f32

    # Lane-dense store: (1, TH, W*C).
    o_ref[...] = out.reshape(1, TH, W * C).astype(o_ref.dtype)


# ---------------------------------------------------------------------------
# Wrapper
# ---------------------------------------------------------------------------
def _vmem_limit_bytes():
    """Per-generation scoped-VMEM limit (leave headroom for Mosaic scratch)."""
    try:
        cap = int(pltpu.get_tpu_info().vmem_capacity_bytes)
    except Exception:
        cap = 64 * 1024 * 1024          # conservative: v7x per-core VMEM
    return max(32 * 1024 * 1024, min(int(cap * 0.75), 112 * 1024 * 1024))


def _pick_tile_h(H, W, C, vmem_limit):
    """Largest row-tile height (dividing H, >=8 when possible) whose per-step
    working set fits the VMEM budget.  W- and C-aware, unlike a fixed scan."""
    f32, bf16 = 4, 2

    def vmem_need(th):
        yr = min(th + 2, H)
        resident = 2 * H * W * C * f32                       # x block (double-buffered)
        weights = 2 * 2 * (K * K * C * C * bf16 + C * f32)   # w1/w2 + biases
        out_buf = 2 * th * W * C * f32                       # output block (dbl-buf)
        interm = ((yr + 2) * (W + 2) * C * f32               # conv1 window (padded)
                  + yr * W * K * K * C * (f32 + bf16)        # conv1 patch (f32 + bf16)
                  + 2 * yr * W * C * f32                     # y + scratch
                  + (th + 2) * (W + 2) * C * f32             # conv2 window (padded)
                  + th * W * K * K * C * (f32 + bf16)        # conv2 patch
                  + 2 * th * W * C * f32)                    # z + out
        return resident + weights + out_buf + interm

    cands = sorted({t for t in (8, 16, 32, 64, 128, 256, H) if t <= H and H % t == 0})
    if not cands:
        return H
    best = cands[0]
    for t in cands:
        if vmem_need(t) <= vmem_limit:
            best = t
    return best


def resnet_block_forward(x_nchw, params, tile_h=None):
    """x_nchw: (N, C, H, W) float32.  params: OIHW conv weights + biases."""
    N, C, H, W = x_nchw.shape

    # OIHW -> HWIO -> (9C, C), row = (kh*3 + kw)*C + c_in (matches the im2col order).
    # Pre-cast to bf16 (MXU operand dtype) in the wrapper: halves weight HBM traffic.
    w1 = jnp.transpose(params["w1"], (2, 3, 1, 0)).reshape(K * K * C, C).astype(jnp.bfloat16)
    w2 = jnp.transpose(params["w2"], (2, 3, 1, 0)).reshape(K * K * C, C).astype(jnp.bfloat16)
    b1 = params["b1"].reshape(1, C).astype(jnp.float32)
    b2 = params["b2"].reshape(1, C).astype(jnp.float32)

    x = jnp.transpose(x_nchw, (0, 2, 3, 1))                  # NCHW -> NHWC, UNPADDED

    vmem_limit = _vmem_limit_bytes()
    TH = tile_h if tile_h is not None else _pick_tile_h(H, W, C, vmem_limit)
    assert H % TH == 0, "row tile must divide H"
    YR = min(TH + 2, H)                                      # conv1 window rows

    flops = 2 * 2 * K * K * C * C * N * H * W                # two 3x3 convs, MAC=2 flops
    bytes_accessed = 2 * N * H * W * C * 4 + 2 * (K * K * C * C * 2 + C * 4)

    out_flat = pl.pallas_call(
        functools.partial(_resnet_block_kernel, H=H, W=W, C=C, TH=TH, YR=YR),
        out_shape=jax.ShapeDtypeStruct((N, H, W * C), x.dtype),
        grid=(N, H // TH),
        in_specs=[
            # Unpadded image: constant index along the row axis -> fetched once per
            # image and kept resident in VMEM across row tiles.
            pl.BlockSpec((1, H, W, C), lambda n, r: (n, 0, 0, 0)),
            # Weights / biases: constant index -> resident across all steps.
            pl.BlockSpec((K * K * C, C), lambda n, r: (0, 0)),
            pl.BlockSpec((1, C), lambda n, r: (0, 0)),
            pl.BlockSpec((K * K * C, C), lambda n, r: (0, 0)),
            pl.BlockSpec((1, C), lambda n, r: (0, 0)),
        ],
        out_specs=pl.BlockSpec((1, TH, W * C), lambda n, r: (n, r, 0)),
        scratch_shapes=[pltpu.VMEM((YR, W, C), jnp.float32)],
        compiler_params=pltpu.CompilerParams(
            # Shard the batch axis across TensorCores; the row axis must stay on one
            # core (its x block index_map is constant -> splitting it would duplicate
            # the whole image per core).
            dimension_semantics=("parallel", "arbitrary"),
            vmem_limit_bytes=vmem_limit,
        ),
        cost_estimate=pl.CostEstimate(
            flops=flops, transcendentals=0, bytes_accessed=bytes_accessed),
    )(x, w1, b1, w2, b2)

    out = out_flat.reshape(N, H, W, C)
    return jnp.transpose(out, (0, 3, 1, 2))                  # NHWC -> NCHW


# ---------------------------------------------------------------------------
# Glue: spectral norm (norm_layer)
# ---------------------------------------------------------------------------
def spectral_normalize(w_oihw, key, n_iter=10, eps=1e-12):
    """norm_layer == spectral_norm: divide the weight by its largest singular value."""
    cout = w_oihw.shape[0]
    wm = w_oihw.reshape(cout, -1).astype(jnp.float32)
    u = jax.random.normal(key, (cout,), jnp.float32)
    u = u / (jnp.linalg.norm(u) + eps)
    v = jnp.zeros((wm.shape[1],), jnp.float32)
    for _ in range(n_iter):
        v = wm.T @ u
        v = v / (jnp.linalg.norm(v) + eps)
        u = wm @ v
        u = u / (jnp.linalg.norm(u) + eps)
    sigma = u @ (wm @ v)
    return (w_oihw / sigma).astype(w_oihw.dtype)


# ---------------------------------------------------------------------------
# Pure-JAX references (correctness checks only)
# ---------------------------------------------------------------------------
def _ref_forward(x_nchw, params, matmul_dtype=jnp.float32):
    """matmul_dtype=bf16 mirrors the kernel's MXU operand precision exactly."""
    def conv(x, w, b):
        xp = jnp.pad(x, ((0, 0), (0, 0), (PW, PW), (PW, PW)), mode="reflect")
        y = jax.lax.conv_general_dilated(
            xp.astype(matmul_dtype), w.astype(matmul_dtype),
            window_strides=(1, 1), padding="VALID",
            dimension_numbers=("NCHW", "OIHW", "NCHW"),
            preferred_element_type=jnp.float32)
        return y + b[None, :, None, None]

    y = jnp.maximum(conv(x_nchw, params["w1"], params["b1"]), 0.0)
    y = conv(y, params["w2"], params["b2"])
    return x_nchw + y


# ---------------------------------------------------------------------------
if __name__ == "__main__":
    N, C, H, W = 2, 4, 16, 16   # dim = 4
    key = jax.random.PRNGKey(0)
    kx, kw1, kb1, kw2, kb2, ku1, ku2 = jax.random.split(key, 7)

    x = jax.random.normal(kx, (N, C, H, W), jnp.float32)

    fan_in = C * K * K
    scale = 1.0 / jnp.sqrt(fan_in)
    params = {
        "w1": spectral_normalize(
            jax.random.uniform(kw1, (C, C, K, K), jnp.float32, -scale, scale), ku1),
        "b1": jax.random.uniform(kb1, (C,), jnp.float32, -scale, scale),
        "w2": spectral_normalize(
            jax.random.uniform(kw2, (C, C, K, K), jnp.float32, -scale, scale), ku2),
        "b2": jax.random.uniform(kb2, (C,), jnp.float32, -scale, scale),
    }

    ref_match = jax.block_until_ready(_ref_forward(x, params, jnp.bfloat16))  # same precision
    ref_f32 = jax.block_until_ready(_ref_forward(x, params, jnp.float32))     # sanity

    # Run once with the auto-sized tile (single row tile here) and once with a
    # forced smaller tile to exercise the multi-tile boundary-reflection paths.
    for th in (None, 8):
        out = jax.block_until_ready(resnet_block_forward(x, params, tile_h=th))
        assert out.shape == (N, C, H, W) and out.dtype == jnp.float32
        err_m = float(jnp.max(jnp.abs(out - ref_match)))
        assert jnp.allclose(out, ref_match, atol=5e-3, rtol=5e-3), \
            f"tile_h={th}: max abs err vs bf16-matched ref = {err_m}"
        err_f = float(jnp.max(jnp.abs(out - ref_f32)))
        assert jnp.allclose(out, ref_f32, atol=1e-1, rtol=1e-1), \
            f"tile_h={th}: max abs err vs f32 ref = {err_f}"

    print("KERNEL_OK")
</pallas_src>

<mosaic_0001>
module attributes {stable_mosaic.version = 11 : i64} {
  func.func @_resnet_block_kernel(%arg0: i32, %arg1: i32, %arg2: memref<1x16x16x4xf32, #tpu.memory_space<vmem>>, %arg3: memref<36x4xbf16, #tpu.memory_space<vmem>>, %arg4: memref<1x4xf32, #tpu.memory_space<vmem>>, %arg5: memref<36x4xbf16, #tpu.memory_space<vmem>>, %arg6: memref<1x4xf32, #tpu.memory_space<vmem>>, %arg7: memref<1x16x64xf32, #tpu.memory_space<vmem>>, %arg8: memref<16x16x4xf32, #tpu.memory_space<vmem>>) attributes {dimension_semantics = [#tpu.dimension_semantics<parallel>, #tpu.dimension_semantics<arbitrary>], iteration_bounds = array<i64: 2, 1>, scalar_prefetch = 0 : i64, scratch_operands = 1 : i64, tpu.core_type = #tpu.core_type<tc>, window_params = [{transform_indices = @transform_0, window_bounds = array<i64: 1, 16, 16, 4>}, {pipeline_mode = #tpu.pipeline_mode<synchronous>, transform_indices = @transform_1, window_bounds = array<i64: 36, 4>}, {pipeline_mode = #tpu.pipeline_mode<synchronous>, transform_indices = @transform_2, window_bounds = array<i64: 1, 4>}, {pipeline_mode = #tpu.pipeline_mode<synchronous>, transform_indices = @transform_3, window_bounds = array<i64: 36, 4>}, {pipeline_mode = #tpu.pipeline_mode<synchronous>, transform_indices = @transform_4, window_bounds = array<i64: 1, 4>}, {transform_indices = @transform_5, window_bounds = array<i64: 1, 16, 64>}]} {
    %c16_i32 = arith.constant 16 : i32
    %0 = arith.muli %arg1, %c16_i32 : i32
    %1 = tpu.assume_multiple %0, 16 : i32
    %c0 = arith.constant 0 : index
    %c0_0 = arith.constant 0 : index
    %2 = vector.load %arg3[%c0, %c0_0] : memref<36x4xbf16, #tpu.memory_space<vmem>>, vector<36x4xbf16>
    %c0_1 = arith.constant 0 : index
    %c0_2 = arith.constant 0 : index
    %3 = vector.load %arg5[%c0_1, %c0_2] : memref<36x4xbf16, #tpu.memory_space<vmem>>, vector<36x4xbf16>
    %c0_3 = arith.constant 0 : index
    %c0_4 = arith.constant 0 : index
    %4 = vector.load %arg4[%c0_3, %c0_4] : memref<1x4xf32, #tpu.memory_space<vmem>>, vector<1x4xf32>
    %c0_5 = arith.constant 0 : index
    %c0_6 = arith.constant 0 : index
    %5 = vector.load %arg6[%c0_5, %c0_6] : memref<1x4xf32, #tpu.memory_space<vmem>>, vector<1x4xf32>
    %c1_i32 = arith.constant 1 : i32
    %6 = arith.subi %1, %c1_i32 : i32
    %c0_i32 = arith.constant 0 : i32
    %c0_i32_7 = arith.constant 0 : i32
    %7 = arith.maxsi %c0_i32, %6 : i32
    %8 = arith.minsi %c0_i32_7, %7 : i32
    %c0_i32_8 = arith.constant 0 : i32
    %9 = arith.cmpi eq, %8, %c0_i32_8 : i32
    %c1_i32_9 = arith.constant 1 : i32
    %10 = arith.subi %8, %c1_i32_9 : i32
    %c1_i32_10 = arith.constant 1 : i32
    %11 = arith.select %9, %c1_i32_10, %10 : i32
    %c16_i32_11 = arith.constant 16 : i32
    %12 = arith.addi %8, %c16_i32_11 : i32
    %c16_i32_12 = arith.constant 16 : i32
    %13 = arith.cmpi eq, %12, %c16_i32_12 : i32
    %c16_i32_13 = arith.constant 16 : i32
    %14 = arith.addi %8, %c16_i32_13 : i32
    %c14_i32 = arith.constant 14 : i32
    %15 = arith.select %13, %c14_i32, %14 : i32
    %c0_14 = arith.constant 0 : index
    %16 = arith.index_cast %11 : i32 to index
    %c0_15 = arith.constant 0 : index
    %c0_16 = arith.constant 0 : index
    %17 = vector.load %arg2[%c0_14, %16, %c0_15, %c0_16] : memref<1x16x16x4xf32, #tpu.memory_space<vmem>>, vector<1x1x16x4xf32>
    %18 = vector.shape_cast %17 : vector<1x1x16x4xf32> to vector<1x16x4xf32>
    %c0_17 = arith.constant 0 : index
    %19 = arith.index_cast %8 : i32 to index
    %c0_18 = arith.constant 0 : index
    %c0_19 = arith.constant 0 : index
    %20 = vector.load %arg2[%c0_17, %19, %c0_18, %c0_19] : memref<1x16x16x4xf32, #tpu.memory_space<vmem>>, vector<1x16x16x4xf32>
    %21 = vector.shape_cast %20 : vector<1x16x16x4xf32> to vector<16x16x4xf32>
    %c0_20 = arith.constant 0 : index
    %22 = arith.index_cast %15 : i32 to index
    %c0_21 = arith.constant 0 : index
    %c0_22 = arith.constant 0 : index
    %23 = vector.load %arg2[%c0_20, %22, %c0_21, %c0_22] : memref<1x16x16x4xf32, #tpu.memory_space<vmem>>, vector<1x1x16x4xf32>
    %24 = vector.shape_cast %23 : vector<1x1x16x4xf32> to vector<1x16x4xf32>
    %25 = tpu.concatenate %18, %21, %24 in 0 : vector<1x16x4xf32>, vector<16x16x4xf32>, vector<1x16x4xf32> -> vector<18x16x4xf32>
    %26 = vector.extract_strided_slice %25 {offsets = [0, 1, 0], sizes = [18, 1, 4], strides = [1, 1, 1]} : vector<18x16x4xf32> to vector<18x1x4xf32>
    %27 = vector.extract_strided_slice %25 {offsets = [0, 14, 0], sizes = [18, 1, 4], strides = [1, 1, 1]} : vector<18x16x4xf32> to vector<18x1x4xf32>
    %28 = tpu.concatenate %26, %25, %27 in 1 : vector<18x1x4xf32>, vector<18x16x4xf32>, vector<18x1x4xf32> -> vector<18x18x4xf32>
    %29 = vector.extract_strided_slice %28 {offsets = [0, 0, 0], sizes = [16, 16, 4], strides = [1, 1, 1]} : vector<18x18x4xf32> to vector<16x16x4xf32>
    %30 = vector.extract_strided_slice %28 {offsets = [0, 1, 0], sizes = [16, 16, 4], strides = [1, 1, 1]} : vector<18x18x4xf32> to vector<16x16x4xf32>
    %31 = vector.extract_strided_slice %28 {offsets = [0, 2, 0], sizes = [16, 16, 4], strides = [1, 1, 1]} : vector<18x18x4xf32> to vector<16x16x4xf32>
    %32 = vector.extract_strided_slice %28 {offsets = [1, 0, 0], sizes = [16, 16, 4], strides = [1, 1, 1]} : vector<18x18x4xf32> to vector<16x16x4xf32>
    %33 = vector.extract_strided_slice %28 {offsets = [1, 1, 0], sizes = [16, 16, 4], strides = [1, 1, 1]} : vector<18x18x4xf32> to vector<16x16x4xf32>
    %34 = vector.extract_strided_slice %28 {offsets = [1, 2, 0], sizes = [16, 16, 4], strides = [1, 1, 1]} : vector<18x18x4xf32> to vector<16x16x4xf32>
    %35 = vector.extract_strided_slice %28 {offsets = [2, 0, 0], sizes = [16, 16, 4], strides = [1, 1, 1]} : vector<18x18x4xf32> to vector<16x16x4xf32>
    %36 = vector.extract_strided_slice %28 {offsets = [2, 1, 0], sizes = [16, 16, 4], strides = [1, 1, 1]} : vector<18x18x4xf32> to vector<16x16x4xf32>
    %37 = vector.extract_strided_slice %28 {offsets = [2, 2, 0], sizes = [16, 16, 4], strides = [1, 1, 1]} : vector<18x18x4xf32> to vector<16x16x4xf32>
    %38 = tpu.concatenate %29, %30, %31, %32, %33, %34, %35, %36, %37 in 2 : vector<16x16x4xf32>, vector<16x16x4xf32>, vector<16x16x4xf32>, vector<16x16x4xf32>, vector<16x16x4xf32>, vector<16x16x4xf32>, vector<16x16x4xf32>, vector<16x16x4xf32>, vector<16x16x4xf32> -> vector<16x16x36xf32>
    %39 = vector.shape_cast %38 : vector<16x16x36xf32> to vector<256x36xf32>
    %40 = arith.truncf %39 : vector<256x36xf32> to vector<256x36xbf16>
    %cst = arith.constant dense<0.000000e+00> : vector<256x4xf32>
    %41 = tpu.matmul %40, %2, %cst {dimension_numbers = #tpu.dot_dimension_numbers<[1], [0], [0], [1], [0, 0, 1, 1], [], []>} : vector<256x36xbf16>, vector<36x4xbf16>, vector<256x4xf32> -> vector<256x4xf32>
    %42 = vector.broadcast %4 : vector<1x4xf32> to vector<256x4xf32>
    %43 = arith.addf %41, %42 : vector<256x4xf32>
    %cst_23 = arith.constant 0.000000e+00 : f32
    %44 = vector.broadcast %cst_23 : f32 to vector<256x4xf32>
    %45 = arith.maximumf %43, %44 : vector<256x4xf32>
    %46 = vector.shape_cast %45 : vector<256x4xf32> to vector<16x16x4xf32>
    %c0_24 = arith.constant 0 : index
    %c0_25 = arith.constant 0 : index
    %c0_26 = arith.constant 0 : index
    %47 = vector.load %arg8[%c0_24, %c0_25, %c0_26] : memref<16x16x4xf32, #tpu.memory_space<vmem>>, vector<16x16x4xf32>
    tpu.vector_store %arg8[%c0_24, %c0_25, %c0_26], %46 {strides = array<i32>} : memref<16x16x4xf32, #tpu.memory_space<vmem>>, vector<16x16x4xf32>,
    %c0_i32_27 = arith.constant 0 : i32
    %48 = arith.cmpi eq, %1, %c0_i32_27 : i32
    %c1_i32_28 = arith.constant 1 : i32
    %49 = arith.subi %1, %c1_i32_28 : i32
    %c1_i32_29 = arith.constant 1 : i32
    %50 = arith.select %48, %c1_i32_29, %49 : i32
    %51 = arith.subi %50, %8 : i32
    %52 = arith.subi %1, %8 : i32
    %c16_i32_30 = arith.constant 16 : i32
    %53 = arith.addi %1, %c16_i32_30 : i32
    %c16_i32_31 = arith.constant 16 : i32
    %54 = arith.cmpi eq, %53, %c16_i32_31 : i32
    %c16_i32_32 = arith.constant 16 : i32
    %55 = arith.addi %1, %c16_i32_32 : i32
    %c14_i32_33 = arith.constant 14 : i32
    %56 = arith.select %54, %c14_i32_33, %55 : i32
    %57 = arith.subi %56, %8 : i32
    %58 = arith.index_cast %51 : i32 to index
    %c0_34 = arith.constant 0 : index
    %c0_35 = arith.constant 0 : index
    %59 = vector.load %arg8[%58, %c0_34, %c0_35] : memref<16x16x4xf32, #tpu.memory_space<vmem>>, vector<1x16x4xf32>
    %60 = arith.index_cast %52 : i32 to index
    %c0_36 = arith.constant 0 : index
    %c0_37 = arith.constant 0 : index
    %61 = vector.load %arg8[%60, %c0_36, %c0_37] : memref<16x16x4xf32, #tpu.memory_space<vmem>>, vector<16x16x4xf32>
    %62 = arith.index_cast %57 : i32 to index
    %c0_38 = arith.constant 0 : index
    %c0_39 = arith.constant 0 : index
    %63 = vector.load %arg8[%62, %c0_38, %c0_39] : memref<16x16x4xf32, #tpu.memory_space<vmem>>, vector<1x16x4xf32>
    %64 = tpu.concatenate %59, %61, %63 in 0 : vector<1x16x4xf32>, vector<16x16x4xf32>, vector<1x16x4xf32> -> vector<18x16x4xf32>
    %65 = vector.extract_strided_slice %64 {offsets = [0, 1, 0], sizes = [18, 1, 4], strides = [1, 1, 1]} : vector<18x16x4xf32> to vector<18x1x4xf32>
    %66 = vector.extract_strided_slice %64 {offsets = [0, 14, 0], sizes = [18, 1, 4], strides = [1, 1, 1]} : vector<18x16x4xf32> to vector<18x1x4xf32>
    %67 = tpu.concatenate %65, %64, %66 in 1 : vector<18x1x4xf32>, vector<18x16x4xf32>, vector<18x1x4xf32> -> vector<18x18x4xf32>
    %68 = vector.extract_strided_slice %67 {offsets = [0, 0, 0], sizes = [16, 16, 4], strides = [1, 1, 1]} : vector<18x18x4xf32> to vector<16x16x4xf32>
    %69 = vector.extract_strided_slice %67 {offsets = [0, 1, 0], sizes = [16, 16, 4], strides = [1, 1, 1]} : vector<18x18x4xf32> to vector<16x16x4xf32>
    %70 = vector.extract_strided_slice %67 {offsets = [0, 2, 0], sizes = [16, 16, 4], strides = [1, 1, 1]} : vector<18x18x4xf32> to vector<16x16x4xf32>
    %71 = vector.extract_strided_slice %67 {offsets = [1, 0, 0], sizes = [16, 16, 4], strides = [1, 1, 1]} : vector<18x18x4xf32> to vector<16x16x4xf32>
    %72 = vector.extract_strided_slice %67 {offsets = [1, 1, 0], sizes = [16, 16, 4], strides = [1, 1, 1]} : vector<18x18x4xf32> to vector<16x16x4xf32>
    %73 = vector.extract_strided_slice %67 {offsets = [1, 2, 0], sizes = [16, 16, 4], strides = [1, 1, 1]} : vector<18x18x4xf32> to vector<16x16x4xf32>
    %74 = vector.extract_strided_slice %67 {offsets = [2, 0, 0], sizes = [16, 16, 4], strides = [1, 1, 1]} : vector<18x18x4xf32> to vector<16x16x4xf32>
    %75 = vector.extract_strided_slice %67 {offsets = [2, 1, 0], sizes = [16, 16, 4], strides = [1, 1, 1]} : vector<18x18x4xf32> to vector<16x16x4xf32>
    %76 = vector.extract_strided_slice %67 {offsets = [2, 2, 0], sizes = [16, 16, 4], strides = [1, 1, 1]} : vector<18x18x4xf32> to vector<16x16x4xf32>
    %77 = tpu.concatenate %68, %69, %70, %71, %72, %73, %74, %75, %76 in 2 : vector<16x16x4xf32>, vector<16x16x4xf32>, vector<16x16x4xf32>, vector<16x16x4xf32>, vector<16x16x4xf32>, vector<16x16x4xf32>, vector<16x16x4xf32>, vector<16x16x4xf32>, vector<16x16x4xf32> -> vector<16x16x36xf32>
    %78 = vector.shape_cast %77 : vector<16x16x36xf32> to vector<256x36xf32>
    %79 = arith.truncf %78 : vector<256x36xf32> to vector<256x36xbf16>
    %cst_40 = arith.constant dense<0.000000e+00> : vector<256x4xf32>
    %80 = tpu.matmul %79, %3, %cst_40 {dimension_numbers = #tpu.dot_dimension_numbers<[1], [0], [0], [1], [0, 0, 1, 1], [], []>} : vector<256x36xbf16>, vector<36x4xbf16>, vector<256x4xf32> -> vector<256x4xf32>
    %81 = vector.broadcast %5 : vector<1x4xf32> to vector<256x4xf32>
    %82 = arith.addf %80, %81 : vector<256x4xf32>
    %83 = vector.shape_cast %82 : vector<256x4xf32> to vector<16x16x4xf32>
    %c0_41 = arith.constant 0 : index
    %84 = arith.index_cast %1 : i32 to index
    %c0_42 = arith.constant 0 : index
    %c0_43 = arith.constant 0 : index
    %85 = vector.load %arg2[%c0_41, %84, %c0_42, %c0_43] : memref<1x16x16x4xf32, #tpu.memory_space<vmem>>, vector<1x16x16x4xf32>
    %86 = vector.shape_cast %85 : vector<1x16x16x4xf32> to vector<16x16x4xf32>
    %87 = arith.addf %83, %86 : vector<16x16x4xf32>
    %88 = vector.shape_cast %87 : vector<16x16x4xf32> to vector<1x16x64xf32>
    %c0_44 = arith.constant 0 : index
    %c0_45 = arith.constant 0 : index
    %c0_46 = arith.constant 0 : index
    %89 = vector.load %arg7[%c0_44, %c0_45, %c0_46] : memref<1x16x64xf32, #tpu.memory_space<vmem>>, vector<1x16x64xf32>
    tpu.vector_store %arg7[%c0_44, %c0_45, %c0_46], %88 {strides = array<i32>} : memref<1x16x64xf32, #tpu.memory_space<vmem>>, vector<1x16x64xf32>,
    return
  }
  func.func @transform_0(%arg0: i32, %arg1: i32) -> (i32, i32, i32, i32) {
    %c0_i32 = arith.constant 0 : i32
    %c0_i32_0 = arith.constant 0 : i32
    %c0_i32_1 = arith.constant 0 : i32
    %c0_i32_2 = arith.constant 0 : i32
    return %arg0, %c0_i32, %c0_i32_0, %c0_i32_1 : i32, i32, i32, i32
  }
  func.func @transform_1(%arg0: i32, %arg1: i32) -> (i32, i32) {
    %c0_i32 = arith.constant 0 : i32
    %c0_i32_0 = arith.constant 0 : i32
    %c0_i32_1 = arith.constant 0 : i32
    return %c0_i32, %c0_i32_0 : i32, i32
  }
  func.func @transform_2(%arg0: i32, %arg1: i32) -> (i32, i32) {
    %c0_i32 = arith.constant 0 : i32
    %c0_i32_0 = arith.constant 0 : i32
    %c0_i32_1 = arith.constant 0 : i32
    return %c0_i32, %c0_i32_0 : i32, i32
  }
  func.func @transform_3(%arg0: i32, %arg1: i32) -> (i32, i32) {
    %c0_i32 = arith.constant 0 : i32
    %c0_i32_0 = arith.constant 0 : i32
    %c0_i32_1 = arith.constant 0 : i32
    return %c0_i32, %c0_i32_0 : i32, i32
  }
  func.func @transform_4(%arg0: i32, %arg1: i32) -> (i32, i32) {
    %c0_i32 = arith.constant 0 : i32
    %c0_i32_0 = arith.constant 0 : i32
    %c0_i32_1 = arith.constant 0 : i32
    return %c0_i32, %c0_i32_0 : i32, i32
  }
  func.func @transform_5(%arg0: i32, %arg1: i32) -> (i32, i32, i32) {
    %c0_i32 = arith.constant 0 : i32
    %c0_i32_0 = arith.constant 0 : i32
    return %arg0, %arg1, %c0_i32 : i32, i32, i32
  }
}

</mosaic_0001>

<bundles_post_ra>
// kernel: tpu_custom_call.1
= control target key start
LH: loop header
LB: loop body
LE: loop exit
PB: predicated region body
PF: predicated region fallthrough
CT: control target
= control target key end

     0   :  { %10 = vsyncpa [#allocation4], 0  ;;  %s9564_s0 = inlined_call_operand.vmem [shape: f32[2,16,16,4], index: 0, kind: input, shape index: {}]   ;;  %s9565_s1 = inlined_call_operand.vmem [shape: bf16[36,4], index: 1, kind: input, shape index: {}]   ;;  %s9566_s2 = inlined_call_operand.vmem [shape: f32[1,4], index: 2, kind: input, shape index: {}]   ;;  %s9567_s3 = inlined_call_operand.vmem [shape: bf16[36,4], index: 3, kind: input, shape index: {}]   ;;  %s9568_s4 = inlined_call_operand.vmem [shape: f32[1,4], index: 4, kind: input, shape index: {}]   ;;  %s9569_s5 = inlined_call_operand.hbm [shape: f32[2,16,64], index: 5, kind: output, shape index: {}]  }
   0x1   :  { %12 = vsyncpa [#allocation4 + $0x1], 0  ;;  %s6104_s18 = smov 0   ;;  %s6106_s19 = smov 0  }
   0x2   :  { %s6108_s20 = smov 0   ;;  %s6110_s21 = smov 0  }
   0x3   :  { %s6112_s22 = smov 0   ;;  %s6114_s23 = smov 0  }
   0x4 LB: > { %s4539_s24 = sadd.s32 4294967295, %s6054_s23   ;;  %s4540_s25 = sadd.s32 4294967294, %s6054_s23   ;;  %s6054_s23 = sphi %s6114_s23, %s18_s23   ;;  %s6050_s22 = sphi %s6112_s22, %s10094_s22   ;;  %s6046_s21 = sphi %s6110_s21, %s10093_s21   ;;  %s6042_s20 = sphi %s6108_s20, %s10092_s20   ;;  %s6038_s19 = sphi %s6106_s19, %s10091_s19   ;;  %s6034_s18 = sphi %s6104_s18, %s10090_s18  }
   0x5   : > { %s30_s26 = sadd.s32 1, %s6050_s22  ;;  %s149_s27 = sadd.s32 1, %s6042_s20 }
   0x6   : > { %p32_p0 = scmp.ge.s32.totalorder %s30_s26, 2  ;;  %p159_p1 = scmp.ne.s32.totalorder %s6042_s20, %s6038_s19 }
   0x7   : > { %p160_p2 = scmp.eq.s32.totalorder %s4539_s24, 1  ;;  %p165_p3 = scmp.ne.s32.totalorder %s6038_s19, %s6034_s18 }
   0x8   : > { %s10096_s26 = smov (%p32_p0, %s30_s26), 0  ;;  %p166_p5 = scmp.eq.s32.totalorder %s4540_s25, 1 }
   0x9   : > { %p6144_p4 = por %p160_p2, %p159_p1  ;;  %s144_s29 = ssub.s32 %s6050_s22, %s10096_s26 }
   0xa   : > { %p4543_p6 = scmp.ge.s32.totalorder %s6054_s23, 1  ;;  %p147_p7 = scmp.eq.s32.totalorder %s144_s29, 0 }
   0xb   : > { %p6151_p8 = por %p166_p5, %p165_p3  ;;  %p204_p9 = scmp.lt.s32.totalorder %s6054_s23, 3 }
   0xc   : > { %s6157_s6 = scalar_select %p147_p7, %s6042_s20, %s149_s27  }
   0xd   : > { %p205_p10 = pnand %p4543_p6, %p204_p9 }
   0xf   : > { %208 = sbr.rel (%p205_p10) target bundleno = 1485 (0x5cd), region = 40 }
  0x14   : > { %p232_p11 = scmp.lt.s32.totalorder %s6046_s21, 1  ;;  %vm377_vm0 = vcmask 1040384   ;;  %vm588_vm1 = vcmask 1046528   ;;  %s6056_s12 = smov 4   ;;  %vm765_vm2 = vcmask 1045504   ;;  %vm1889_vm3 = vcmask 1041408  }
  0x15   : > { %s6057_s13 = smov 8   ;;  %s6058_s14 = smov 12   ;;  %vm1542_vm4 = vcmask 31744   ;;  %vm1608_vm5 = vcmask 97280   ;;  %vm1575_vm6 = vcmask 64512   ;;  %vm1641_vm7 = vcmask 130048  }
  0x16   : > { %s233_s7 = scalar_select %p232_p11, %s6046_s21, 1  ;;  %vm1707_vm8 = vcmask 195584   ;;  %vm1674_vm9 = vcmask 162816   ;;  %vm1740_vm10 = vcmask 228352   ;;  %vm1773_vm11 = vcmask 261120  }
  0x17   : > { %s6059_s15 = smov 16   ;;  %s6060_s16 = smov 20   ;;  %vm9753_vm12 = vcmask 293888   ;;  %vm3827_vm13 = vcmask 1047556   ;;  %vm4413_vm14 = vcmask 326656   ;;  %vm4416_vm15 = vcmask 359424  }
  0x18   : > { %s4608_s8 = sshll.u32 %s233_s7, 8  ;;  %s6061_s17 = smov 24  }
  0x19   : > { %s6164_s11 = scalar_lea.vmem %s9564_s0, %s4608_s8  ;;  %s6062_s24 = smov 28  }
  0x1a   : > { %v275_v0 = vld [vmem:[%s6164_s11 + $0x30] sm:$0xff]  ;;  %v276_v1 = vld [vmem:[%s6164_s11 + $0x38] sm:$0xff]  ;;  %v277_v8 = vld [vmem:[%s6164_s11 + $0x40] sm:$0xff]  ;;  %s6063_s25 = smov 32   ;;  %s6066_s27 = smov 36  }
  0x1b   : > { %v271_v2 = vld [vmem:[%s6164_s11 + $0x10] sm:$0xff]  ;;  %v327_v3 = vrot.slane %v275_v0, 1  ;;  %v390_v4 = vrot.slane %v275_v0, 7  ;;  %v391_v5 = vrot.slane %v276_v1, 7  ;;  %v488_v6 = vrot.slane %v276_v1, 5  ;;  %v272_v7 = vld [vmem:[%s6164_s11 + $0x18] sm:$0xff] }
  0x1c   : > { %v325_v9 = vrot.slane %v271_v2, 1  ;;  %v384_v10 = vrot.slane %v271_v2, 7  ;;  %v385_v11 = vrot.slane %v272_v7, 7  ;;  %v486_v12 = vrot.slane %v272_v7, 5  ;;  %v278_v19 = vld [vmem:[%s6164_s11 + $0x48] sm:$0xff]  ;;  %v273_v25 = vld [vmem:[%s6164_s11 + $0x20] sm:$0xff] }
  0x1d   : > { %v6172_v13 = vsel %vm377_vm0, %v390_v4, %v391_v5  ;;  %v6175_v14 = vsel %vm377_vm0, %v327_v3, %v390_v4  ;;  %v6178_v15 = vsel %vm377_vm0, %v391_v5, %v488_v6  ;;  %v328_v20 = vrot.slane %v277_v8, 1  ;;  %v274_v34 = vld [vmem:[%s6164_s11 + $0x28] sm:$0xff]  ;;  %v269_v39 = vld [vmem:[%s6164_s11] sm:$0xff]  ;;  %v283_v57 = vld [vmem:[%s6164_s11 + $0x70] sm:$0xff]  ;;  %s6067_s29 = smov 48   ;;  %s6068_s7 = smov 44  }
  0x1e   : > { %v609_v16 = vrot.slane %v6175_v14, 1  ;;  %v610_v17 = vrot.slane %v6172_v13, 1  ;;  %v612_v18 = vrot.slane %v6178_v15, 1  ;;  %v6185_v21 = vsel %vm377_vm0, %v384_v10, %v385_v11  ;;  %v270_v48 = vld [vmem:[%s6164_s11 + $0x8] sm:$0xff]  ;;  %v284_v2 = vld [vmem:[%s6164_s11 + $0x78] sm:$0xff]  ;;  %v281_v7 = vld [vmem:[%s6164_s11 + $0x60] sm:$0xff] }
  0x1f   : > { %v6188_v22 = vsel %vm377_vm0, %v325_v9, %v384_v10  ;;  %v6191_v23 = vsel %vm377_vm0, %v385_v11, %v486_v12  ;;  %v393_v24 = vrot.slane %v277_v8, 7  ;;  %v600_v29 = vrot.slane %v6185_v21, 1  ;;  %s6069_s8 = smov 40   ;;  %s6071_s9 = smov 52  }
  0x20   : > { %v611_v26 = vsel %vm588_vm1, %v609_v16, %v610_v17  ;;  %v613_v27 = vsel %vm588_vm1, %v610_v17, %v612_v18  ;;  %v599_v28 = vrot.slane %v6188_v22, 1  ;;  %v602_v31 = vrot.slane %v6191_v23, 1 }
  0x21   : > { %v6198_v30 = vpack.i.bf16 %v613_v27, %v611_v26  ;;  %v394_v33 = vrot.slane %v278_v19, 7  ;;  %v489_v36 = vrot.slane %v278_v19, 5  ;;  %v6205_v37 = vsel %vm377_vm0, %v328_v20, %v393_v24  ;;  %v282_v19 = vld [vmem:[%s6164_s11 + $0x68] sm:$0xff]  ;;  %v279_v27 = vld [vmem:[%s6164_s11 + $0x50] sm:$0xff] }
  0x22   : > { %v601_v35 = vsel %vm588_vm1, %v599_v28, %v600_v29  ;;  %9757 = vst [vmem:[#allocation7_spill] sm:$0xff] %v6205_v37  ;;  %v326_v38 = vrot.slane %v273_v25, 1  ;;  %v603_v40 = vsel %vm588_vm1, %v600_v29, %v602_v31  ;;  %v614_v42 = vrot.slane %v6205_v37, 1 }
  0x23   : > { %9756 = vst [vmem:[#allocation6_spill] sm:$0xff] %v6198_v30  ;;  %4714 = vrot.lane.b32.xlu2 %v6198_v30, %s6056_s12  ;;  %v6212_v41 = vsel %vm377_vm0, %v393_v24, %v394_v33  ;;  %v387_v43 = vrot.slane %v273_v25, 7  ;;  %v6215_v44 = vpack.i.bf16 %v603_v40, %v601_v35  ;;  %v6218_v45 = vsel %vm377_vm0, %v394_v33, %v489_v36 }
  0x24   : > { %9758 = vst [vmem:[#allocation8_spill] sm:$0xff] %v6212_v41  ;;  %v615_v46 = vrot.slane %v6212_v41, 1  ;;  %v388_v47 = vrot.slane %v274_v34, 7  ;;  %v617_v49 = vrot.slane %v6218_v45, 1  ;;  %v487_v50 = vrot.slane %v274_v34, 5 }
  0x25   : > { %9759 = vst [vmem:[#allocation9_spill] sm:$0xff] %v6215_v44  ;;  %v6224_v51 = vsel %vm377_vm0, %v326_v38, %v387_v43  ;;  %v324_v52 = vrot.slane %v269_v39, 1  ;;  %4704 = vrot.lane.b32.xlu1 %v6215_v44, %s6056_s12  ;;  %4694 = vrot.lane.b32.xlu0 %v6215_v44, %s6056_s12  ;;  %v381_v56 = vrot.slane %v269_v39, 7  ;;  %v382_v61 = vrot.slane %v270_v48, 7  ;;  %v280_v39 = vld [vmem:[%s6164_s11 + $0x58] sm:$0xff] }
  0x26   : > { %9760 = vst [vmem:[#allocation10_spill] sm:$0xff] %v6224_v51  ;;  %v616_v53 = vsel %vm588_vm1, %v614_v42, %v615_v46  ;;  %v6232_v54 = vsel %vm377_vm0, %v387_v43, %v388_v47  ;;  %v604_v55 = vrot.slane %v6224_v51, 1  ;;  %v618_v58 = vsel %vm588_vm1, %v615_v46, %v617_v49 }
  0x27   : > { %9761 = vst [vmem:[#allocation11_spill] sm:$0xff] %v6232_v54  ;;  %v6238_v59 = vsel %vm377_vm0, %v388_v47, %v487_v50  ;;  %v605_v60 = vrot.slane %v6232_v54, 1  ;;  %v6241_v62 = vpack.i.bf16 %v618_v58, %v616_v53  ;;  %v485_v0 = vrot.slane %v270_v48, 5  ;;  %v289_v47 = vld [vmem:[%s6164_s11 + $0xa0] sm:$0xff]  ;;  %v290_v58 = vld [vmem:[%s6164_s11 + $0xa8] sm:$0xff] }
  0x28   : > { %v607_v63 = vrot.slane %v6238_v59, 1  ;;  %v6245_v1 = vsel %vm377_vm0, %v324_v52, %v381_v56  ;;  %v6250_v4 = vsel %vm377_vm0, %v381_v56, %v382_v61  ;;  %v331_v6 = vrot.slane %v283_v57, 1 }
  0x29   : > { %9762 = vst [vmem:[#allocation12_spill] sm:$0xff] %v6241_v62  ;;  %v606_v3 = vsel %vm588_vm1, %v604_v55, %v605_v60  ;;  %v594_v5 = vrot.slane %v6245_v1, 1  ;;  %v6256_v9 = vsel %vm377_vm0, %v382_v61, %v485_v0  ;;  %v595_v10 = vrot.slane %v6250_v4, 1 }
  0x2a   : > { %9763 = vst [vmem:[#allocation13_spill] sm:$0xff] %v6245_v1  ;;  %v608_v8 = vsel %vm588_vm1, %v605_v60, %v607_v63  ;;  %v402_v11 = vrot.slane %v283_v57, 7  ;;  %v597_v16 = vrot.slane %v6256_v9, 1  ;;  %v403_v17 = vrot.slane %v284_v2, 7 }
  0x2b   : > { %9764 = vst [vmem:[#allocation14_spill] sm:$0xff] %v6250_v4  ;;  %4719 = vrot.lane.b32.xlu2 %v6241_v62, %s6056_s12  ;;  %v6261_v12 = vpack.i.bf16 %v608_v8, %v606_v3  ;;  %v492_v18 = vrot.slane %v284_v2, 5  ;;  %v596_v20 = vsel %vm588_vm1, %v594_v5, %v595_v10  ;;  %v330_v25 = vrot.slane %v281_v7, 1 }
  0x2c   : > { %v6267_v24 = vsel %vm377_vm0, %v331_v6, %v402_v11  ;;  %v399_v26 = vrot.slane %v281_v7, 7  ;;  %v598_v28 = vsel %vm588_vm1, %v595_v10, %v597_v16  ;;  %v6272_v29 = vsel %vm377_vm0, %v402_v11, %v403_v17  ;;  %v287_v7 = vld [vmem:[%s6164_s11 + $0x90] sm:$0xff] }
  0x2d   : > { %9765 = vst [vmem:[#allocation15_spill] sm:$0xff] %v6261_v12  ;;  %v6275_v31 = vsel %vm377_vm0, %v403_v17, %v492_v18  ;;  %v629_v33 = vrot.slane %v6267_v24, 1  ;;  %4709 = vrot.lane.b32.xlu1 %v6261_v12, %s6056_s12  ;;  %v6280_v34 = vpack.i.bf16 %v598_v28, %v596_v20  ;;  %v630_v35 = vrot.slane %v6272_v29, 1 }
  0x2e   : > { %9766 = vst [vmem:[#allocation16_spill] sm:$0xff] %v6267_v24  ;;  %v632_v36 = vrot.slane %v6275_v31, 1  ;;  %v400_v38 = vrot.slane %v282_v19, 7  ;;  %v491_v40 = vrot.slane %v282_v19, 5  ;;  %v6286_v42 = vsel %vm377_vm0, %v330_v25, %v399_v26  ;;  %v288_v25 = vld [vmem:[%s6164_s11 + $0x98] sm:$0xff] }
  0x2f   : > { %9767 = vst [vmem:[#allocation17_spill] sm:$0xff] %v6272_v29  ;;  %v329_v43 = vrot.slane %v279_v27, 1  ;;  %v396_v46 = vrot.slane %v279_v27, 7  ;;  %4699 = vrot.lane.b32.xlu0 %v6280_v34, %s6056_s12  ;;  %v631_v48 = vsel %vm588_vm1, %v629_v33, %v630_v35  ;;  %v624_v52 = vrot.slane %v6286_v42, 1 }
  0x30   : > { %9768 = vst [vmem:[#allocation18_spill] sm:$0xff] %v6280_v34  ;;  %v633_v49 = vsel %vm588_vm1, %v630_v35, %v632_v36  ;;  %v6294_v50 = vsel %vm377_vm0, %v399_v26, %v400_v38  ;;  %v6300_v55 = vsel %vm377_vm0, %v400_v38, %v491_v40  ;;  %v397_v57 = vrot.slane %v280_v39, 7  ;;  %v285_v35 = vld [vmem:[%s6164_s11 + $0x80] sm:$0xff] }
  0x31   : > { %9769 = vst [vmem:[#allocation19_spill] sm:$0xff] %v6286_v42  ;;  %v6297_v53 = vpack.i.bf16 %v633_v49, %v631_v48  ;;  %v625_v56 = vrot.slane %v6294_v50, 1  ;;  %v627_v60 = vrot.slane %v6300_v55, 1  ;;  %v490_v61 = vrot.slane %v280_v39, 5  ;;  %v286_v49 = vld [vmem:[%s6164_s11 + $0x88] sm:$0xff] }
  0x32   : > { %9770 = vst [vmem:[#allocation20_spill] sm:$0xff] %v6294_v50  ;;  %v6306_v63 = vsel %vm377_vm0, %v329_v43, %v396_v46  ;;  %v334_v0 = vrot.slane %v289_v47, 1  ;;  %v6312_v3 = vsel %vm377_vm0, %v396_v46, %v397_v57  ;;  %v411_v6 = vrot.slane %v289_v47, 7 }
  0x33   : > { %9771 = vst [vmem:[#allocation21_spill] sm:$0xff] %v6297_v53  ;;  %4734 = vrot.lane.b32.xlu2 %v6297_v53, %s6056_s12  ;;  %v626_v2 = vsel %vm588_vm1, %v624_v52, %v625_v56  ;;  %v619_v5 = vrot.slane %v6306_v63, 1  ;;  %v628_v8 = vsel %vm588_vm1, %v625_v56, %v627_v60  ;;  %v6318_v10 = vsel %vm377_vm0, %v397_v57, %v490_v61  ;;  %v295_v60 = vld [vmem:[%s6164_s11 + $0xd0] sm:$0xff] }
  0x34   : > { %9772 = vst [vmem:[#allocation22_spill] sm:$0xff] %v6306_v63  ;;  %v620_v11 = vrot.slane %v6312_v3, 1  ;;  %v412_v16 = vrot.slane %v290_v58, 7  ;;  %v6321_v17 = vpack.i.bf16 %v628_v8, %v626_v2  ;;  %v622_v18 = vrot.slane %v6318_v10, 1 }
  0x35   : > { %9773 = vst [vmem:[#allocation23_spill] sm:$0xff] %v6312_v3  ;;  %v495_v19 = vrot.slane %v290_v58, 5  ;;  %v6325_v20 = vsel %vm377_vm0, %v334_v0, %v411_v6  ;;  %v333_v33 = vrot.slane %v287_v7, 1  ;;  %v408_v40 = vrot.slane %v287_v7, 7 }
  0x36   : > { %9774 = vst [vmem:[#allocation24_spill] sm:$0xff] %v6321_v17  ;;  %v621_v26 = vsel %vm588_vm1, %v619_v5, %v620_v11  ;;  %v6330_v27 = vsel %vm377_vm0, %v411_v6, %v412_v16  ;;  %v644_v28 = vrot.slane %v6325_v20, 1  ;;  %4729 = vrot.lane.b32.xlu1 %v6321_v17, %s6056_s12  ;;  %v623_v36 = vsel %vm588_vm1, %v620_v11, %v622_v18 }
  0x37   : > { %9775 = vst [vmem:[#allocation25_spill] sm:$0xff] %v6325_v20  ;;  %v6338_v38 = vsel %vm377_vm0, %v412_v16, %v495_v19  ;;  %v645_v39 = vrot.slane %v6330_v27, 1  ;;  %v6341_v43 = vpack.i.bf16 %v623_v36, %v621_v26  ;;  %v409_v47 = vrot.slane %v288_v25, 7  ;;  %v296_v16 = vld [vmem:[%s6164_s11 + $0xd8] sm:$0xff] }
  0x38   : > { %9776 = vst [vmem:[#allocation26_spill] sm:$0xff] %v6330_v27  ;;  %v647_v46 = vrot.slane %v6338_v38, 1  ;;  %v494_v48 = vrot.slane %v288_v25, 5  ;;  %v6347_v56 = vsel %vm377_vm0, %v333_v33, %v408_v40  ;;  %v332_v57 = vrot.slane %v285_v35, 1 }
  0x39   : > { %9777 = vst [vmem:[#allocation27_spill] sm:$0xff] %v6341_v43  ;;  %v646_v52 = vsel %vm588_vm1, %v644_v28, %v645_v39  ;;  %v405_v58 = vrot.slane %v285_v35, 7  ;;  %4724 = vrot.lane.b32.xlu0 %v6341_v43, %s6056_s12  ;;  %v6354_v0 = vsel %vm377_vm0, %v408_v40, %v409_v47  ;;  %v639_v5 = vrot.slane %v6347_v56, 1  ;;  %v293_v28 = vld [vmem:[%s6164_s11 + $0xc0] sm:$0xff] }
  0x3a   : > { %9778 = vst [vmem:[#allocation28_spill] sm:$0xff] %v6347_v56  ;;  %v648_v61 = vsel %vm588_vm1, %v645_v39, %v647_v46  ;;  %v6357_v2 = vsel %vm377_vm0, %v409_v47, %v494_v48  ;;  %v640_v7 = vrot.slane %v6354_v0, 1  ;;  %v406_v11 = vrot.slane %v286_v49, 7 }
  0x3b   : > { %9779 = vst [vmem:[#allocation29_spill] sm:$0xff] %v6354_v0  ;;  %v6360_v6 = vpack.i.bf16 %v648_v61, %v646_v52  ;;  %v642_v8 = vrot.slane %v6357_v2, 1  ;;  %v493_v18 = vrot.slane %v286_v49, 5  ;;  %v6366_v19 = vsel %vm377_vm0, %v332_v57, %v405_v58  ;;  %v294_v49 = vld [vmem:[%s6164_s11 + $0xc8] sm:$0xff] }
  0x3c   : > { %9781 = vst [vmem:[#allocation31_spill] sm:$0xff] %v6366_v19  ;;  %v337_v25 = vrot.slane %v295_v60, 1  ;;  %v420_v26 = vrot.slane %v295_v60, 7  ;;  %v641_v33 = vsel %vm588_vm1, %v639_v5, %v640_v7  ;;  %v6374_v36 = vsel %vm377_vm0, %v405_v58, %v406_v11 }
  0x3d   : > { %9780 = vst [vmem:[#allocation30_spill] sm:$0xff] %v6360_v6  ;;  %4749 = vrot.lane.b32.xlu2 %v6360_v6, %s6056_s12  ;;  %v643_v35 = vsel %vm588_vm1, %v640_v7, %v642_v8  ;;  %v634_v39 = vrot.slane %v6366_v19, 1  ;;  %v6380_v46 = vsel %vm377_vm0, %v406_v11, %v493_v18  ;;  %v635_v47 = vrot.slane %v6374_v36, 1  ;;  %v291_v11 = vld [vmem:[%s6164_s11 + $0xb0] sm:$0xff] }
  0x3e   : > { %9782 = vst [vmem:[#allocation32_spill] sm:$0xff] %v6374_v36  ;;  %v6377_v40 = vpack.i.bf16 %v643_v35, %v641_v33  ;;  %v421_v48 = vrot.slane %v296_v16, 7  ;;  %v637_v52 = vrot.slane %v6380_v46, 1  ;;  %v498_v57 = vrot.slane %v296_v16, 5 }
  0x3f   : > { %v6386_v60 = vsel %vm377_vm0, %v337_v25, %v420_v26  ;;  %v336_v58 = vrot.slane %v293_v28, 1  ;;  %v636_v61 = vsel %vm588_vm1, %v634_v39, %v635_v47  ;;  %v417_v8 = vrot.slane %v293_v28, 7 }
  0x40   : > { %9783 = vst [vmem:[#allocation33_spill] sm:$0xff] %v6377_v40  ;;  %4744 = vrot.lane.b32.xlu1 %v6377_v40, %s6056_s12  ;;  %v6392_v5 = vsel %vm377_vm0, %v420_v26, %v421_v48  ;;  %v659_v7 = vrot.slane %v6386_v60, 1  ;;  %v638_v18 = vsel %vm588_vm1, %v635_v47, %v637_v52  ;;  %v6398_v16 = vsel %vm377_vm0, %v421_v48, %v498_v57  ;;  %v292_v40 = vld [vmem:[%s6164_s11 + $0xb8] sm:$0xff] }
  0x41   : > { %9784 = vst [vmem:[#allocation34_spill] sm:$0xff] %v6386_v60  ;;  %v660_v25 = vrot.slane %v6392_v5, 1  ;;  %v418_v33 = vrot.slane %v294_v49, 7  ;;  %v6401_v35 = vpack.i.bf16 %v638_v18, %v636_v61  ;;  %v662_v32 = vrot.slane %v6398_v16, 1 }
  0x42   : > { %9785 = vst [vmem:[#allocation35_spill] sm:$0xff] %v6392_v5  ;;  %v497_v39 = vrot.slane %v294_v49, 5  ;;  %v6405_v26 = vsel %vm377_vm0, %v336_v58, %v417_v8  ;;  %v335_v48 = vrot.slane %v291_v11, 1  ;;  %v414_v58 = vrot.slane %v291_v11, 7 }
  0x43   : > { %9786 = vst [vmem:[#allocation36_spill] sm:$0xff] %v6401_v35  ;;  %v661_v28 = vsel %vm588_vm1, %v659_v7, %v660_v25  ;;  %v6410_v6 = vsel %vm377_vm0, %v417_v8, %v418_v33  ;;  %v654_v47 = vrot.slane %v6405_v26, 1  ;;  %4739 = vrot.lane.b32.xlu0 %v6401_v35, %s6056_s12  ;;  %v663_v52 = vsel %vm588_vm1, %v660_v25, %v662_v32  ;;  %v297_v25 = vld [vmem:[%s6164_s11 + $0xe0] sm:$0xff] }
  0x44   : > { %9787 = vst [vmem:[#allocation37_spill] sm:$0xff] %v6405_v26  ;;  %v6417_v49 = vsel %vm377_vm0, %v418_v33, %v497_v39  ;;  %v655_v57 = vrot.slane %v6410_v6, 1  ;;  %v6420_v61 = vpack.i.bf16 %v663_v52, %v661_v28  ;;  %v415_v8 = vrot.slane %v292_v40, 7 }
  0x45   : > { %9788 = vst [vmem:[#allocation38_spill] sm:$0xff] %v6410_v6  ;;  %v657_v7 = vrot.slane %v6417_v49, 1  ;;  %v496_v18 = vrot.slane %v292_v40, 5  ;;  %v6425_v53 = vsel %vm377_vm0, %v335_v48, %v414_v58  ;;  %v771_v32 = vrot.slane %v6245_v1, 2 }
  0x46   : > { %9789 = vst [vmem:[#allocation39_spill] sm:$0xff] %v6420_v61  ;;  %v656_v17 = vsel %vm588_vm1, %v654_v47, %v655_v57  ;;  %4764 = vrot.lane.b32.xlu2 %v6420_v61, %s6056_s12  ;;  %v6433_v33 = vsel %vm377_vm0, %v414_v58, %v415_v8  ;;  %v649_v39 = vrot.slane %v6425_v53, 1  ;;  %v772_v52 = vrot.slane %v6250_v4, 2 }
  0x47   : > { %9790 = vst [vmem:[#allocation40_spill] sm:$0xff] %v6425_v53  ;;  %v658_v11 = vsel %vm588_vm1, %v655_v57, %v657_v7  ;;  %v6436_v40 = vsel %vm377_vm0, %v415_v8, %v496_v18  ;;  %v650_v47 = vrot.slane %v6433_v33, 1  ;;  %v774_v61 = vrot.slane %v6256_v9, 2  ;;  %v298_v7 = vld [vmem:[%s6164_s11 + $0xe8] sm:$0xff] }
  0x48   : > { %9791 = vst [vmem:[#allocation41_spill] sm:$0xff] %v6433_v33  ;;  %v6439_v28 = vpack.i.bf16 %v658_v11, %v656_v17  ;;  %v652_v48 = vrot.slane %v6436_v40, 1  ;;  %v766_v57 = vrot.slane %v6188_v22, 2  ;;  %v767_v58 = vrot.slane %v6185_v21, 2 }
  0x49   : > { %v338_v35 = vrot.slane %v297_v25, 1  ;;  %v651_v17 = vsel %vm588_vm1, %v649_v39, %v650_v47  ;;  %v773_v18 = vsel %vm765_vm2, %v771_v32, %v772_v52  ;;  %v423_v11 = vrot.slane %v297_v25, 7 }
  0x4a   : > { %9792 = vst [vmem:[#allocation42_spill] sm:$0xff] %v6439_v28  ;;  %4759 = vrot.lane.b32.xlu1 %v6439_v28, %s6056_s12  ;;  %v653_v8 = vsel %vm588_vm1, %v650_v47, %v652_v48  ;;  %v775_v9 = vsel %vm765_vm2, %v772_v52, %v774_v61  ;;  %v768_v62 = vsel %vm765_vm2, %v766_v57, %v767_v58  ;;  %v9793_v43 = vrot.slane %v6191_v23, 2 }
  0x4b   : > { %v6453_v30 = vpack.i.bf16 %v653_v8, %v651_v17  ;;  %v789_v44 = vrot.slane %v6178_v15, 2  ;;  %v6461_v28 = vpack.i.bf16 %v775_v9, %v773_v18  ;;  %v424_v39 = vrot.slane %v298_v7, 7 }
  0x4c   : > { %v770_v34 = vsel %vm765_vm2, %v767_v58, %v9793_v43  ;;  %v499_v12 = vrot.slane %v298_v7, 5  ;;  %v6466_v32 = vsel %vm377_vm0, %v338_v35, %v423_v11  ;;  %v786_v61 = vrot.slane %v6175_v14, 2 }
  0x4d   : > { %4754 = vrot.lane.b32.xlu0 %v6453_v30, %s6056_s12  ;;  %9794 = vst [vmem:[#allocation43_spill] sm:$0xff] %v6466_v32  ;;  %v787_v25 = vrot.slane %v6172_v13, 2  ;;  %v6470_v47 = vpack.i.bf16 %v770_v34, %v768_v62  ;;  %v6473_v23 = vsel %vm377_vm0, %v423_v11, %v424_v39  ;;  %v664_v43 = vrot.slane %v6466_v32, 1 }
  0x4e   : > { %9795 = vst [vmem:[#allocation44_spill] sm:$0xff] %v6473_v23  ;;  %v6476_v15 = vsel %vm377_vm0, %v424_v39, %v499_v12  ;;  %4779 = vrot.lane.b32.xlu2 %v6461_v28, %s6057_s13  ;;  %v665_v35 = vrot.slane %v6473_v23, 1  ;;  %v781_v52 = vrot.slane %v6224_v51, 2  ;;  %v782_v62 = vrot.slane %v6232_v54, 2 }
  0x4f   : > { %v667_v48 = vrot.slane %v6476_v15, 1  ;;  %v788_v34 = vsel %vm765_vm2, %v786_v61, %v787_v25  ;;  %v790_v57 = vsel %vm765_vm2, %v787_v25, %v789_v44  ;;  %v784_v12 = vrot.slane %v6238_v59, 2 }
  0x50   : > { %v666_v58 = vsel %vm588_vm1, %v664_v43, %v665_v35  ;;  %v6494_v8 = vpack.i.bf16 %v790_v57, %v788_v34  ;;  %v783_v18 = vsel %vm765_vm2, %v781_v52, %v782_v62  ;;  %v801_v9 = vrot.slane %v6286_v42, 2 }
  0x51   : > { %v668_v7 = vsel %vm588_vm1, %v665_v35, %v667_v48  ;;  %v785_v11 = vsel %vm765_vm2, %v782_v62, %v784_v12  ;;  %v802_v44 = vrot.slane %v6294_v50, 2  ;;  %v804_v59 = vrot.slane %v6300_v55, 2 }
  0x52   : > { %4774 = vrot.lane.b32.xlu1 %v6470_v47, %s6057_s13  ;;  %v6492_v17 = vpack.i.bf16 %v668_v7, %v666_v58  ;;  %v6503_v39 = vpack.i.bf16 %v785_v11, %v783_v18  ;;  %v796_v61 = vrot.slane %v6306_v63, 2  ;;  %v797_v25 = vrot.slane %v6312_v3, 2 }
  0x53   : > { %v799_v43 = vrot.slane %v6318_v10, 2  ;;  %v803_v35 = vsel %vm765_vm2, %v801_v9, %v802_v44  ;;  %v805_v48 = vsel %vm765_vm2, %v802_v44, %v804_v59  ;;  %v791_v55 = vrot.slane %v6205_v37, 2 }
  0x54   : > { %v792_v52 = vrot.slane %v6212_v41, 2  ;;  %v794_v62 = vrot.slane %v6218_v45, 2  ;;  %v6517_v34 = vpack.i.bf16 %v805_v48, %v803_v35  ;;  %v798_v57 = vsel %vm765_vm2, %v796_v61, %v797_v25 }
  0x55   : > { %4769 = vrot.lane.b32.xlu0 %v6492_v17, %s6056_s12  ;;  %v800_v12 = vsel %vm765_vm2, %v797_v25, %v799_v43  ;;  %v816_v10 = vrot.slane %v6347_v56, 2  ;;  %v817_v58 = vrot.slane %v6354_v0, 2  ;;  %v819_v7 = vrot.slane %v6357_v2, 2 }
  0x56   : > { %4794 = vrot.lane.b32.xlu2 %v6494_v8, %s6057_s13  ;;  %v6526_v18 = vpack.i.bf16 %v800_v12, %v798_v57  ;;  %v793_v11 = vsel %vm765_vm2, %v791_v55, %v792_v52  ;;  %v795_v45 = vsel %vm765_vm2, %v792_v52, %v794_v62  ;;  %v811_v9 = vrot.slane %v6366_v19, 2 }
  0x57   : > { %v812_v44 = vrot.slane %v6374_v36, 2  ;;  %v814_v59 = vrot.slane %v6380_v46, 2  ;;  %v818_v2 = vsel %vm765_vm2, %v816_v10, %v817_v58  ;;  %v820_v61 = vsel %vm765_vm2, %v817_v58, %v819_v7 }
  0x58   : > { %v6537_v25 = vpack.i.bf16 %v795_v45, %v793_v11  ;;  %v806_v43 = vrot.slane %v6267_v24, 2  ;;  %v807_v35 = vrot.slane %v6272_v29, 2  ;;  %v809_v48 = vrot.slane %v6275_v31, 2 }
  0x59   : > { %v6544_v55 = vpack.i.bf16 %v820_v61, %v818_v2  ;;  %v813_v52 = vsel %vm765_vm2, %v811_v9, %v812_v44  ;;  %v815_v46 = vsel %vm765_vm2, %v812_v44, %v814_v59  ;;  %v831_v62 = vrot.slane %v6405_v26, 2 }
  0x5a   : > { %4789 = vrot.lane.b32.xlu1 %v6503_v39, %s6057_s13  ;;  %v832_v57 = vrot.slane %v6410_v6, 2  ;;  %v834_v12 = vrot.slane %v6417_v49, 2  ;;  %v6553_v10 = vpack.i.bf16 %v815_v46, %v813_v52  ;;  %v808_v58 = vsel %vm765_vm2, %v806_v43, %v807_v35 }
  0x5b   : > { %v810_v31 = vsel %vm765_vm2, %v807_v35, %v809_v48  ;;  %v826_v7 = vrot.slane %v6425_v53, 2  ;;  %v827_v11 = vrot.slane %v6433_v33, 2  ;;  %v829_v45 = vrot.slane %v6436_v40, 2 }
  0x5c   : > { %v833_v49 = vsel %vm765_vm2, %v831_v62, %v832_v57  ;;  %v835_v9 = vsel %vm765_vm2, %v832_v57, %v834_v12  ;;  %v6564_v44 = vpack.i.bf16 %v810_v31, %v808_v58  ;;  %v821_v59 = vrot.slane %v6325_v20, 2 }
  0x5d   : > { %4784 = vrot.lane.b32.xlu0 %v6470_v47, %s6057_s13  ;;  %v822_v2 = vrot.slane %v6330_v27, 2  ;;  %v824_v61 = vrot.slane %v6338_v38, 2  ;;  %v6571_v43 = vpack.i.bf16 %v835_v9, %v833_v49  ;;  %v828_v35 = vsel %vm765_vm2, %v826_v7, %v827_v11 }
  0x5e   : > { %4809 = vrot.lane.b32.xlu2 %v6517_v34, %s6057_s13  ;;  %v830_v40 = vsel %vm765_vm2, %v827_v11, %v829_v45  ;;  %v841_v38 = vrot.slane %v6466_v32, 2  ;;  %v842_v62 = vrot.slane %v6473_v23, 2  ;;  %v844_v57 = vrot.slane %v6476_v15, 2 }
  0x5f   : > { %v6577_v48 = vpack.i.bf16 %v830_v40, %v828_v35  ;;  %v823_v52 = vsel %vm765_vm2, %v821_v59, %v822_v2  ;;  %v825_v46 = vsel %vm765_vm2, %v822_v2, %v824_v61  ;;  %v836_v58 = vrot.slane %v6386_v60, 2 }
  0x60   : > { %v6586_v12 = vpack.i.bf16 %v825_v46, %v823_v52  ;;  %v837_v31 = vrot.slane %v6392_v5, 2  ;;  %v839_v7 = vrot.slane %v6398_v16, 2  ;;  %v4853_v11 = vpack.i.bf16 %v6250_v4, %v6245_v1  ;;  %v9822_v4 = vld [vmem:[#allocation33_spill] sm:$0xff] }
  0x61   : > { %v843_v45 = vsel %vm765_vm2, %v841_v38, %v842_v62  ;;  %v845_v49 = vsel %vm765_vm2, %v842_v62, %v844_v57  ;;  %v6610_v2 = vpack.i.bf16 %v6172_v13, %v6175_v14  ;;  %v6618_v35 = vpack.i.bf16 %v6232_v54, %v6224_v51  ;;  %v9810_v51 = vld [vmem:[#allocation12_spill] sm:$0xff] }
  0x62   : > { %4804 = vrot.lane.b32.xlu1 %v6526_v18, %s6057_s13  ;;  %v6599_v15 = vpack.i.bf16 %v845_v49, %v843_v45  ;;  %v838_v9 = vsel %vm765_vm2, %v836_v58, %v837_v31  ;;  %v840_v59 = vsel %vm765_vm2, %v837_v31, %v839_v7  ;;  %v6624_v40 = vpack.i.bf16 %v6185_v21, %v6188_v22  ;;  %v300_v45 = vld [vmem:[%s6164_s11 + $0xf8] sm:$0xff] }
  0x63   : > { %v6604_v16 = vpack.i.bf16 %v840_v59, %v838_v9  ;;  %v6630_v52 = vpack.i.bf16 %v6294_v50, %v6286_v42  ;;  %v6638_v38 = vpack.i.bf16 %v6312_v3, %v6306_v63  ;;  %v6644_v62 = vpack.i.bf16 %v6212_v41, %v6205_v37  ;;  %v9827_v41 = vld [vmem:[#allocation42_spill] sm:$0xff] }
  0x64   : > { %v6650_v57 = vpack.i.bf16 %v6354_v0, %v6347_v56  ;;  %v6658_v31 = vpack.i.bf16 %v6374_v36, %v6366_v19  ;;  %v6664_v7 = vpack.i.bf16 %v6272_v29, %v6267_v24  ;;  %v6672_v49 = vpack.i.bf16 %v6410_v6, %v6405_v26  ;;  %v9808_v19 = vld [vmem:[#allocation27_spill] sm:$0xff] }
  0x65   : > { %4799 = vrot.lane.b32.xlu0 %v6537_v25, %s6057_s13  ;;  %v427_v42 = vrot.slane %v300_v45, 7  ;;  %v6678_v63 = vpack.i.bf16 %v6433_v33, %v6425_v53  ;;  %v6696_v6 = vpack.i.bf16 %v6330_v27, %v6325_v20  ;;  %v6708_v33 = vpack.i.bf16 %v6473_v23, %v6466_v32  ;;  %v9802_v23 = vld [vmem:[#allocation15_spill] sm:$0xff] }
  0x66   : > { %4824 = vrot.lane.b32.xlu2 %v6544_v55, %s6057_s13  ;;  %v500_v1 = vrot.slane %v300_v45, 5 }
  0x6a   : > { %4819 = vrot.lane.b32.xlu1 %v6553_v10, %s6057_s13 }
  0x6d   : > { %4814 = vrot.lane.b32.xlu0 %v6564_v44, %s6057_s13 }
  0x6e   : > { %4839 = vrot.lane.b32.xlu2 %v6571_v43, %s6057_s13 }
  0x72   : > { %4834 = vrot.lane.b32.xlu1 %v6577_v48, %s6057_s13 }
  0x75   : > { %4829 = vrot.lane.b32.xlu0 %v6586_v12, %s6057_s13 }
  0x76   : > { %4854 = vrot.lane.b32.xlu2 %v4853_v11, %s6058_s14  ;;  %v299_v11 = vld [vmem:[%s6164_s11 + $0xf0] sm:$0xff] }
  0x77   : > { %v339_v9 = vrot.slane %v299_v11, 1  ;;  %v426_v59 = vrot.slane %v299_v11, 7 }
  0x79   : > { %v6689_v26 = vsel %vm377_vm0, %v426_v59, %v427_v42  ;;  %v6692_v11 = vsel %vm377_vm0, %v339_v9, %v426_v59  ;;  %v6716_v59 = vpack.i.bf16 %v6392_v5, %v6386_v60  ;;  %v9805_v60 = vld [vmem:[#allocation9_spill] sm:$0xff] }
  0x7a   : > { %4849 = vrot.lane.b32.xlu1 %v6599_v15, %s6057_s13  ;;  %v6702_v53 = vpack.i.bf16 %v6689_v26, %v6692_v11  ;;  %v1041_v45 = vrot.slane %v6689_v26, 1 }
  0x7d   : > { %4844 = vrot.lane.b32.xlu0 %v6604_v16, %s6057_s13  ;;  %v6614_v61 = vpop.permute.xlu2 %4714 }
  0x7e   : > { %4869 = vrot.lane.b32.xlu2 %v6610_v2, %s6058_s14 }
  0x82   : > { %4864 = vrot.lane.b32.xlu1 %v6618_v35, %s6058_s14 }
  0x85   : > { %4859 = vrot.lane.b32.xlu0 %v6624_v40, %s6058_s14  ;;  %v6634_v46 = vpop.permute.xlu2 %4719 }
  0x86   : > { %4884 = vrot.lane.b32.xlu2 %v6630_v52, %s6058_s14 }
  0x8a   : > { %4879 = vrot.lane.b32.xlu1 %v6638_v38, %s6058_s14 }
  0x8d   : > { %4874 = vrot.lane.b32.xlu0 %v6644_v62, %s6058_s14  ;;  %v6654_v58 = vpop.permute.xlu2 %4734 }
  0x8e   : > { %9796 = vst [vmem:[#allocation45_spill] sm:$0xff] %v6654_v58  ;;  %4899 = vrot.lane.b32.xlu2 %v6650_v57, %s6058_s14  ;;  %v1040_v58 = vrot.slane %v6692_v11, 1 }
  0x92   : > { %4894 = vrot.lane.b32.xlu1 %v6658_v31, %s6058_s14 }
  0x95   : > { %4889 = vrot.lane.b32.xlu0 %v6664_v7, %s6058_s14 }
  0x96   : > { %4914 = vrot.lane.b32.xlu2 %v6672_v49, %s6058_s14 }
  0x97   : > { %v6682_v3 = vpop.permute.xlu2 %4749  ;;  %v6684_v50 = vpop.permute.xlu1 %4704 }
  0x98   : > { %9797 = vst [vmem:[#allocation46_spill] sm:$0xff] %v6682_v3  ;;  %v6686_v56 = vpop.permute.xlu0 %4694 }
  0x99   : > { %9798 = vst [vmem:[#allocation47_spill] sm:$0xff] %v6684_v50 }
  0x9a   : > { %4909 = vrot.lane.b32.xlu1 %v6678_v63, %s6058_s14 }
  0x9d   : > { %4904 = vrot.lane.b32.xlu0 %v6696_v6, %s6058_s14 }
  0x9e   : > { %4929 = vrot.lane.b32.xlu2 %v6702_v53, %s6058_s14 }
  0x9f   : > { %v6712_v9 = vpop.permute.xlu1 %4709 }
  0xa0   : > { %9799 = vst [vmem:[#allocation48_spill] sm:$0xff] %v6712_v9  ;;  %v6718_v20 = vpop.permute.xlu2 %4764 }
  0xa1   : > { %9800 = vst [vmem:[#allocation49_spill] sm:$0xff] %v6718_v20  ;;  %v6722_v27 = vpop.permute.xlu0 %4699  ;;  %v9807_v20 = vld [vmem:[#allocation18_spill] sm:$0xff] }
  0xa2   : > { %4924 = vrot.lane.b32.xlu1 %v6708_v33, %s6058_s14  ;;  %9801 = vst [vmem:[#allocation50_spill] sm:$0xff] %v6722_v27 }
  0xa5   : > { %4919 = vrot.lane.b32.xlu0 %v6716_v59, %s6058_s14 }
  0xa6   : > { %4944 = vrot.lane.b32.xlu2 %v9802_v23, %s6059_s15 }
  0xa8   : > { %v6728_v32 = vpop.permute.xlu1 %4729  ;;  %v6730_v0 = vpop.permute.xlu2 %4779 }
  0xa9   : > { %9803 = vst [vmem:[#allocation15_spill] sm:$0xff] %v6728_v32  ;;  %v9812_v32 = vld [vmem:[#allocation6_spill] sm:$0xff] }
  0xaa   : > { %9804 = vst [vmem:[#allocation51_spill] sm:$0xff] %v6730_v0  ;;  %4939 = vrot.lane.b32.xlu1 %v9805_v60, %s6059_s15 }
  0xab   : > { %v6734_v5 = vpop.permute.xlu0 %4724 }
  0xac   : > { %9806 = vst [vmem:[#allocation9_spill] sm:$0xff] %v6734_v5  ;;  %v9814_v5 = vld [vmem:[#allocation36_spill] sm:$0xff] }
  0xad   : > { %4934 = vrot.lane.b32.xlu0 %v9807_v20, %s6059_s15  ;;  %v9816_v20 = vld [vmem:[#allocation21_spill] sm:$0xff] }
  0xae   : > { %4959 = vrot.lane.b32.xlu2 %v9808_v19, %s6059_s15 }
  0xb0   : > { %v6740_v36 = vpop.permute.xlu2 %4794 }
  0xb1   : > { %9809 = vst [vmem:[#allocation18_spill] sm:$0xff] %v6740_v36  ;;  %v9818_v36 = vld [vmem:[#allocation24_spill] sm:$0xff] }
  0xb2   : > { %4954 = vrot.lane.b32.xlu1 %v9810_v51, %s6059_s15  ;;  %v6744_v54 = vpop.permute.xlu1 %4744 }
  0xb3   : > { %9811 = vst [vmem:[#allocation27_spill] sm:$0xff] %v6744_v54 }
  0xb5   : > { %4949 = vrot.lane.b32.xlu0 %v9812_v32, %s6059_s15  ;;  %v6748_v9 = vpop.permute.xlu0 %4739 }
  0xb6   : > { %9813 = vst [vmem:[#allocation12_spill] sm:$0xff] %v6748_v9  ;;  %4974 = vrot.lane.b32.xlu2 %v9814_v5, %s6059_s15  ;;  %v9821_v9 = vld [vmem:[#allocation30_spill] sm:$0xff] }
  0xb8   : > { %v6752_v3 = vpop.permute.xlu2 %4809 }
  0xb9   : > { %9815 = vst [vmem:[#allocation6_spill] sm:$0xff] %v6752_v3 }
  0xba   : > { %4969 = vrot.lane.b32.xlu1 %v9816_v20, %s6059_s15 }
  0xbc   : > { %v6756_v24 = vpop.permute.xlu1 %4759 }
  0xbd   : > { %9817 = vst [vmem:[#allocation36_spill] sm:$0xff] %v6756_v24  ;;  %4964 = vrot.lane.b32.xlu0 %v9818_v36, %s6059_s15 }
  0xbe   : > { %4989 = vrot.lane.b32.xlu2 %v6453_v30, %s6059_s15 }
  0xbf   : > { %v6760_v29 = vpop.permute.xlu0 %4754 }
  0xc0   : > { %9819 = vst [vmem:[#allocation21_spill] sm:$0xff] %v6760_v29  ;;  %v6764_v54 = vpop.permute.xlu2 %4824  ;;  %v554_v29 = vsel %vm377_vm0, %v427_v42, %v500_v1 }
  0xc1   : > { %9820 = vst [vmem:[#allocation24_spill] sm:$0xff] %v6764_v54  ;;  %v9825_v54 = vld [vmem:[#allocation39_spill] sm:$0xff]  ;;  %v1043_v0 = vrot.slane %v554_v29, 1 }
  0xc2   : > { %4984 = vrot.lane.b32.xlu1 %v9821_v9, %s6059_s15 }
  0xc3   : > { %v1044_v27 = vsel %vm588_vm1, %v1041_v45, %v1043_v0 }
  0xc4   : > { %v6768_v3 = vpop.permute.xlu1 %4774 }
  0xc5   : > { %4979 = vrot.lane.b32.xlu0 %v9822_v4, %s6059_s15 }
  0xc6   : > { %5004 = vrot.lane.b32.xlu2 %v6492_v17, %s6059_s15 }
  0xc7   : > { %v6772_v24 = vpop.permute.xlu0 %4769 }
  0xc8   : > { %9823 = vst [vmem:[#allocation30_spill] sm:$0xff] %v6772_v24  ;;  %v6777_v50 = vpop.permute.xlu2 %4839  ;;  %v1042_v24 = vsel %vm588_vm1, %v1040_v58, %v1041_v45 }
  0xc9   : > { %9824 = vst [vmem:[#allocation33_spill] sm:$0xff] %v6777_v50  ;;  %v6793_v42 = vpack.i.bf16 %v1044_v27, %v1042_v24 }
  0xca   : > { %4999 = vrot.lane.b32.xlu1 %v9825_v54, %s6059_s15 }
  0xcc   : > { %v6783_v37 = vpop.permute.xlu1 %4789 }
  0xcd   : > { %9826 = vst [vmem:[#allocation39_spill] sm:$0xff] %v6783_v37  ;;  %4994 = vrot.lane.b32.xlu0 %v9827_v41, %s6059_s15 }
  0xce   : > { %5019 = vrot.lane.b32.xlu2 %v6470_v47, %s6060_s16 }
  0xcf   : > { %v6789_v1 = vpop.permute.xlu0 %4784 }
  0xd0   : > { %9828 = vst [vmem:[#allocation42_spill] sm:$0xff] %v6789_v1  ;;  %v6795_v50 = vpop.permute.xlu2 %4854 }
  0xd2   : > { %5014 = vrot.lane.b32.xlu1 %v6461_v28, %s6060_s16 }
  0xd4   : > { %v6799_v37 = vpop.permute.xlu1 %4804 }
  0xd5   : > { %9829 = vst [vmem:[#allocation52_spill] sm:$0xff] %v6799_v37  ;;  %5009 = vrot.lane.b32.xlu0 %v6793_v42, %s6059_s15 }
  0xd6   : > { %5034 = vrot.lane.b32.xlu2 %v6537_v25, %s6060_s16 }
  0xd7   : > { %v6803_v58 = vpop.permute.xlu0 %4799 }
  0xd8   : > { %9830 = vst [vmem:[#allocation53_spill] sm:$0xff] %v6803_v58  ;;  %v6807_v0 = vpop.permute.xlu2 %4869 }
  0xd9   : > { %9831 = vst [vmem:[#allocation54_spill] sm:$0xff] %v6807_v0  ;;  %v1144_v0 = vrot.slane %v554_v29, 2 }
  0xda   : > { %5029 = vrot.lane.b32.xlu1 %v6494_v8, %s6060_s16 }
  0xdc   : > { %v6811_v24 = vpop.permute.xlu1 %4819 }
  0xdd   : > { %9832 = vst [vmem:[#allocation55_spill] sm:$0xff] %v6811_v24  ;;  %5024 = vrot.lane.b32.xlu0 %v6503_v39, %s6060_s16 }
  0xde   : > { %5049 = vrot.lane.b32.xlu2 %v6564_v44, %s6060_s16 }
  0xdf   : > { %v6815_v27 = vpop.permute.xlu0 %4814 }
  0xe0   : > { %9833 = vst [vmem:[#allocation56_spill] sm:$0xff] %v6815_v27  ;;  %v6819_v28 = vpop.permute.xlu2 %4884 }
  0xe1   : > { %9834 = vst [vmem:[#allocation57_spill] sm:$0xff] %v6819_v28 }
  0xe2   : > { %5044 = vrot.lane.b32.xlu1 %v6517_v34, %s6060_s16 }
  0xe4   : > { %v6823_v45 = vpop.permute.xlu1 %4834 }
  0xe5   : > { %9835 = vst [vmem:[#allocation58_spill] sm:$0xff] %v6823_v45  ;;  %5039 = vrot.lane.b32.xlu0 %v6526_v18, %s6060_s16  ;;  %v1141_v45 = vrot.slane %v6692_v11, 2 }
  0xe6   : > { %5064 = vrot.lane.b32.xlu2 %v6586_v12, %s6060_s16 }
  0xe7   : > { %v6827_v37 = vpop.permute.xlu0 %4829 }
  0xe8   : > { %9836 = vst [vmem:[#allocation59_spill] sm:$0xff] %v6827_v37  ;;  %v6831_v58 = vpop.permute.xlu2 %4899  ;;  %v1142_v37 = vrot.slane %v6689_v26, 2 }
  0xe9   : > { %9837 = vst [vmem:[#allocation60_spill] sm:$0xff] %v6831_v58 }
  0xea   : > { %5059 = vrot.lane.b32.xlu1 %v6544_v55, %s6060_s16  ;;  %v1145_v58 = vsel %vm765_vm2, %v1142_v37, %v1144_v0 }
  0xec   : > { %v6835_v24 = vpop.permute.xlu1 %4849 }
  0xed   : > { %9838 = vst [vmem:[#allocation61_spill] sm:$0xff] %v6835_v24  ;;  %5054 = vrot.lane.b32.xlu0 %v6553_v10, %s6060_s16  ;;  %v1143_v24 = vsel %vm765_vm2, %v1141_v45, %v1142_v37  ;;  %v4549_v45 = vld [vmem:[%s6164_s11 + $0xe0] sm:$0xff] }
  0xee   : > { %5079 = vrot.lane.b32.xlu2 %v6604_v16, %s6060_s16 }
  0xef   : > { %v6839_v28 = vpop.permute.xlu0 %4844 }
  0xf0   : > { %9839 = vst [vmem:[#allocation62_spill] sm:$0xff] %v6839_v28  ;;  %v6845_v27 = vpop.permute.xlu2 %4914  ;;  %v6855_v28 = vpack.i.bf16 %v1145_v58, %v1143_v24 }
  0xf1   : > { %9840 = vst [vmem:[#allocation63_spill] sm:$0xff] %v6845_v27 }
  0xf2   : > { %5074 = vrot.lane.b32.xlu1 %v6571_v43, %s6060_s16 }
  0xf4   : > { %v6851_v1 = vpop.permute.xlu1 %4864 }
  0xf5   : > { %5069 = vrot.lane.b32.xlu0 %v6577_v48, %s6060_s16 }
  0xf6   : > { %5094 = vrot.lane.b32.xlu2 %v6624_v40, %s6061_s17 }
  0xf7   : > { %v6857_v11 = vpop.permute.xlu0 %4859 }
  0xf8   : > { %v6861_v29 = vpop.permute.xlu2 %4929 }
  0xf9   : > { %9841 = vst [vmem:[#allocation64_spill] sm:$0xff] %v6861_v29  ;;  %v4550_v29 = vld [vmem:[%s6164_s11 + $0xe8] sm:$0xff] }
  0xfa   : > { %5089 = vrot.lane.b32.xlu1 %v6855_v28, %s6060_s16  ;;  %v430_v27 = vrot.slane %v4550_v29, 7 }
  0xfc   : > { %v6865_v26 = vpop.permute.xlu1 %4879 }
  0xfd   : > { %5084 = vrot.lane.b32.xlu0 %v6599_v15, %s6060_s16 }
  0xfe   : > { %5109 = vrot.lane.b32.xlu2 %v6644_v62, %s6061_s17 }
  0xff   : > { %v6869_v37 = vpop.permute.xlu0 %4874 }
 0x100   : > { %v6873_v58 = vpop.permute.xlu2 %4944 }
 0x102   : > { %5104 = vrot.lane.b32.xlu1 %v6610_v2, %s6061_s17 }
 0x104   : > { %v6877_v40 = vpop.permute.xlu1 %4894 }
 0x105   : > { %5099 = vrot.lane.b32.xlu0 %v6618_v35, %s6061_s17 }
 0x106   : > { %5124 = vrot.lane.b32.xlu2 %v6664_v7, %s6061_s17 }
 0x107   : > { %v6881_v0 = vpop.permute.xlu0 %4889 }
 0x108   : > { %9842 = vst [vmem:[#allocation65_spill] sm:$0xff] %v6881_v0  ;;  %v6885_v24 = vpop.permute.xlu2 %4959  ;;  %v429_v0 = vrot.slane %v4549_v45, 7 }
 0x109   : > { %9843 = vst [vmem:[#allocation66_spill] sm:$0xff] %v6885_v24 }
 0x10a   : > { %5119 = vrot.lane.b32.xlu1 %v6630_v52, %s6061_s17  ;;  %v340_v52 = vrot.slane %v4549_v45, 1 }
 0x10c   : > { %v6889_v62 = vpop.permute.xlu1 %4909  ;;  %v6915_v24 = vsel %vm377_vm0, %v340_v52, %v429_v0 }
 0x10d   : > { %5114 = vrot.lane.b32.xlu0 %v6638_v38, %s6061_s17 }
 0x10e   : > { %5139 = vrot.lane.b32.xlu2 %v6696_v6, %s6061_s17  ;;  %v6912_v6 = vsel %vm377_vm0, %v429_v0, %v430_v27 }
 0x10f   : > { %v6893_v2 = vpop.permute.xlu0 %4904  ;;  %v5168_v45 = vpack.i.bf16 %v6912_v6, %v6915_v24 }
 0x110   : > { %v6897_v35 = vpop.permute.xlu2 %4974 }
 0x112   : > { %5134 = vrot.lane.b32.xlu1 %v6650_v57, %s6061_s17 }
 0x114   : > { %v6903_v7 = vpop.permute.xlu1 %4924 }
 0x115   : > { %9844 = vst [vmem:[#allocation67_spill] sm:$0xff] %v6903_v7  ;;  %5129 = vrot.lane.b32.xlu0 %v6658_v31, %s6061_s17 }
 0x116   : > { %5154 = vrot.lane.b32.xlu2 %v6716_v59, %s6061_s17 }
 0x117   : > { %v6907_v38 = vpop.permute.xlu0 %4919 }
 0x118   : > { %9845 = vst [vmem:[#allocation68_spill] sm:$0xff] %v6907_v38  ;;  %v6919_v57 = vpop.permute.xlu2 %4989 }
 0x119   : > { %9846 = vst [vmem:[#allocation69_spill] sm:$0xff] %v6919_v57 }
 0x11a   : > { %5149 = vrot.lane.b32.xlu1 %v6672_v49, %s6061_s17 }
 0x11c   : > { %v6923_v31 = vpop.permute.xlu1 %4939 }
 0x11d   : > { %5144 = vrot.lane.b32.xlu0 %v6678_v63, %s6061_s17 }
 0x11e   : > { %5169 = vrot.lane.b32.xlu2 %v5168_v45, %s6061_s17 }
 0x11f   : > { %v6927_v59 = vpop.permute.xlu0 %4934 }
 0x120   : > { %v6932_v0 = vpop.permute.xlu2 %5004 }
 0x121   : > { %9847 = vst [vmem:[#allocation70_spill] sm:$0xff] %v6932_v0  ;;  %v1340_v0 = vrot.slane %v6915_v24, 1 }
 0x122   : > { %5164 = vrot.lane.b32.xlu1 %v6702_v53, %s6061_s17 }
 0x124   : > { %v6934_v49 = vpop.permute.xlu1 %4954 }
 0x125   : > { %5159 = vrot.lane.b32.xlu0 %v6708_v33, %s6061_s17 }
 0x126   : > { %5184 = vrot.lane.b32.xlu2 %v9812_v32, %s6062_s24 }
 0x127   : > { %v6938_v52 = vpop.permute.xlu0 %4949 }
 0x128   : > { %v6948_v53 = vpop.permute.xlu2 %5019 }
 0x12a   : > { %5179 = vrot.lane.b32.xlu1 %v9802_v23, %s6062_s24 }
 0x12c   : > { %v6944_v63 = vpop.permute.xlu1 %4969 }
 0x12d   : > { %9848 = vst [vmem:[#allocation71_spill] sm:$0xff] %v6944_v63  ;;  %5174 = vrot.lane.b32.xlu0 %v9805_v60, %s6062_s24 }
 0x12e   : > { %5199 = vrot.lane.b32.xlu2 %v9818_v36, %s6062_s24 }
 0x12f   : > { %v6950_v45 = vpop.permute.xlu0 %4964 }
 0x130   : > { %9849 = vst [vmem:[#allocation72_spill] sm:$0xff] %v6950_v45  ;;  %v6964_v60 = vpop.permute.xlu2 %5034  ;;  %v4776_v45 = vunpack.i.l.bf16 %v6768_v3 }
 0x132   : > { %5194 = vrot.lane.b32.xlu1 %v9808_v19, %s6062_s24 }
 0x134   : > { %v6956_v33 = vpop.permute.xlu1 %4984 }
 0x135   : > { %5189 = vrot.lane.b32.xlu0 %v9810_v51, %s6062_s24 }
 0x136   : > { %5214 = vrot.lane.b32.xlu2 %v9822_v4, %s6062_s24  ;;  %v501_v4 = vrot.slane %v4550_v29, 5 }
 0x137   : > { %v6960_v32 = vpop.permute.xlu0 %4979 }
 0x138   : > { %v6976_v51 = vpop.permute.xlu2 %5049 }
 0x139   : > { %9852 = vst [vmem:[#allocation75_spill] sm:$0xff] %v6976_v51 }
 0x13a   : > { %5209 = vrot.lane.b32.xlu1 %v9814_v5, %s6062_s24 }
 0x13c   : > { %v6968_v23 = vpop.permute.xlu1 %4999 }
 0x13d   : > { %9850 = vst [vmem:[#allocation73_spill] sm:$0xff] %v6968_v23  ;;  %5204 = vrot.lane.b32.xlu0 %v9816_v20, %s6062_s24  ;;  %v555_v20 = vsel %vm377_vm0, %v430_v27, %v501_v4 }
 0x13e   : > { %5229 = vrot.lane.b32.xlu2 %v9827_v41, %s6062_s24  ;;  %v1341_v41 = vrot.slane %v6912_v6, 1 }
 0x13f   : > { %v6972_v19 = vpop.permute.xlu0 %4994 }
 0x140   : > { %9851 = vst [vmem:[#allocation74_spill] sm:$0xff] %v6972_v19  ;;  %v6993_v29 = vpop.permute.xlu2 %5064  ;;  %v4936_v19 = vunpack.i.l.bf16 %v6927_v59 }
 0x142   : > { %5224 = vrot.lane.b32.xlu1 %v6453_v30, %s6062_s24  ;;  %v1343_v30 = vrot.slane %v555_v20, 1 }
 0x144   : > { %v6980_v36 = vpop.permute.xlu1 %5014 }
 0x145   : > { %5219 = vrot.lane.b32.xlu0 %v9821_v9, %s6062_s24  ;;  %v1342_v9 = vsel %vm588_vm1, %v1340_v0, %v1341_v41  ;;  %v1441_v0 = vrot.slane %v6915_v24, 2 }
 0x146   : > { %5244 = vrot.lane.b32.xlu2 %v6793_v42, %s6062_s24  ;;  %v1344_v42 = vsel %vm588_vm1, %v1341_v41, %v1343_v30 }
 0x147   : > { %v6984_v5 = vpop.permute.xlu0 %5009  ;;  %v5248_v4 = vpack.i.bf16 %v1344_v42, %v1342_v9 }
 0x148   : > { %9853 = vst [vmem:[#allocation76_spill] sm:$0xff] %v6984_v5  ;;  %v7010_v5 = vpop.permute.xlu2 %5079 }
 0x149   : > { %9855 = vst [vmem:[#allocation78_spill] sm:$0xff] %v7010_v5 }
 0x14a   : > { %5239 = vrot.lane.b32.xlu1 %v6492_v17, %s6062_s24 }
 0x14c   : > { %v6995_v7 = vpop.permute.xlu1 %5029 }
 0x14d   : > { %5234 = vrot.lane.b32.xlu0 %v9825_v54, %s6062_s24  ;;  %v1442_v54 = vrot.slane %v6912_v6, 2 }
 0x14e   : > { %5259 = vrot.lane.b32.xlu2 %v6503_v39, %s6063_s25  ;;  %v1444_v39 = vrot.slane %v555_v20, 2 }
 0x14f   : > { %v7001_v27 = vpop.permute.xlu0 %5024 }
 0x150   : > { %v1445_v30 = vsel %vm765_vm2, %v1442_v54, %v1444_v39 }
 0x152   : > { %5254 = vrot.lane.b32.xlu1 %v6470_v47, %s6063_s25  ;;  %v1443_v47 = vsel %vm765_vm2, %v1441_v0, %v1442_v54 }
 0x153   : > { %v5328_v42 = vpack.i.bf16 %v1445_v30, %v1443_v47 }
 0x154   : > { %v7007_v17 = vpop.permute.xlu1 %5044 }
 0x155   : > { %9854 = vst [vmem:[#allocation77_spill] sm:$0xff] %v7007_v17  ;;  %5249 = vrot.lane.b32.xlu0 %v5248_v4, %s6062_s24  ;;  %v4697_v17 = vunpack.i.h.bf16 %v6686_v56 }
 0x156   : > { %5274 = vrot.lane.b32.xlu2 %v6526_v18, %s6063_s25  ;;  %v7030_v18 = vpop.permute.xlu2 %5094 }
 0x157   : > { %v7014_v41 = vpop.permute.xlu0 %5039 }
 0x158   : > { %9856 = vst [vmem:[#allocation79_spill] sm:$0xff] %v7014_v41 }
 0x15a   : > { %5269 = vrot.lane.b32.xlu1 %v6537_v25, %s6063_s25 }
 0x15c   : > { %v7022_v9 = vpop.permute.xlu1 %5059 }
 0x15d   : > { %5264 = vrot.lane.b32.xlu0 %v6494_v8, %s6063_s25 }
 0x15e   : > { %5289 = vrot.lane.b32.xlu2 %v6553_v10, %s6063_s25  ;;  %v7042_v8 = vpop.permute.xlu2 %5109 }
 0x15f   : > { %v7026_v24 = vpop.permute.xlu0 %5054 }
 0x162   : > { %5284 = vrot.lane.b32.xlu1 %v6564_v44, %s6063_s25 }
 0x164   : > { %v7034_v25 = vpop.permute.xlu1 %5074 }
 0x165   : > { %9857 = vst [vmem:[#allocation80_spill] sm:$0xff] %v7034_v25  ;;  %5279 = vrot.lane.b32.xlu0 %v6517_v34, %s6063_s25 }
 0x166   : > { %5304 = vrot.lane.b32.xlu2 %v6577_v48, %s6063_s25  ;;  %v7056_v34 = vpop.permute.xlu2 %5124 }
 0x167   : > { %v7038_v6 = vpop.permute.xlu0 %5069  ;;  %9861 = vst [vmem:[#allocation84_spill] sm:$0xff] %v7056_v34 }
 0x168   : > { %9858 = vst [vmem:[#allocation81_spill] sm:$0xff] %v7038_v6 }
 0x16a   : > { %5299 = vrot.lane.b32.xlu1 %v6586_v12, %s6063_s25 }
 0x16c   : > { %v7046_v10 = vpop.permute.xlu1 %5089 }
 0x16d   : > { %9859 = vst [vmem:[#allocation82_spill] sm:$0xff] %v7046_v10  ;;  %5294 = vrot.lane.b32.xlu0 %v6544_v55, %s6063_s25  ;;  %v244_v10 = vld [vmem:[%s9565_s1 + $0x10] sm:$0x3] }
 0x16e   : > { %5319 = vrot.lane.b32.xlu2 %v6599_v15, %s6063_s25  ;;  %v7069_v15 = vpop.permute.xlu2 %5139 }
 0x16f   : > { %v7050_v44 = vpop.permute.xlu0 %5084 }
 0x170   : > { %9860 = vst [vmem:[#allocation83_spill] sm:$0xff] %v7050_v44  ;;  %v1834_v44 = vunpack.c.l.b16 %v244_v10  ;;  %v4609_v10 = vld [vmem:[%s9565_s1] sm:$0xff] }
 0x172   : > { %5314 = vrot.lane.b32.xlu1 %v6604_v16, %s6063_s25  ;;  %v1837_v51 = vpack.c.b16 %v1834_v44, %v1834_v44 }
 0x174   : > { %v7058_v48 = vpop.permute.xlu1 %5104  ;;  %v1891_v63 = vsel %vm1889_vm3, %v1837_v51, 0 }
 0x175   : > { %5309 = vrot.lane.b32.xlu0 %v6571_v43, %s6063_s25  ;;  %1898 = vmatpush.bf16.msra.mxu0 %v1891_v63 }
 0x176   : > { %v7077_v54 = vpop.permute.xlu2 %5154  ;;  %4614 = vmatpush.bf16.msra.mxu2 %v1891_v63 }
 0x177   : > { %v7062_v12 = vpop.permute.xlu0 %5099  ;;  %9864 = vst [vmem:[#allocation87_spill] sm:$0xff] %v7077_v54  ;;  %v4857_v54 = vunpack.i.h.bf16 %v6795_v50 }
 0x178   : > { %v5101_v6 = vunpack.i.l.bf16 %v7062_v12 }
 0x17a   : > { %5329 = vrot.lane.b32.xlu1 %v5328_v42, %s6063_s25 }
 0x17c   : > { %v7065_v55 = vpop.permute.xlu1 %5119 }
 0x17d   : > { %9862 = vst [vmem:[#allocation85_spill] sm:$0xff] %v7065_v55  ;;  %5324 = vrot.lane.b32.xlu0 %v6855_v28, %s6063_s25  ;;  %v5016_v55 = vunpack.i.l.bf16 %v6980_v36 }
 0x17e   : > { %v7083_v39 = vpop.permute.xlu2 %5169 }
 0x17f   : > { %v7071_v20 = vpop.permute.xlu0 %5114  ;;  %9866 = vst [vmem:[#allocation89_spill] sm:$0xff] %v7083_v39  ;;  %v4610_v39 = vld [vmem:[%s9565_s1 + $0x8] sm:$0xff] }
 0x180   : > { %1899 = vmatpush.bf16.msra.mxu0 %v4610_v39  ;;  %4615 = vmatpush.bf16.msra.mxu2 %v4610_v39  ;;  %v4696_v39 = vunpack.i.l.bf16 %v6686_v56  ;;  %v1544_v56 = vsel %vm1542_vm4, %v6185_v21, %v4697_v17 }
 0x182   : > { %v1543_v25 = vsel %vm1542_vm4, %v6188_v22, %v4696_v39  ;;  %v5017_v39 = vunpack.i.h.bf16 %v6980_v36  ;;  %v4717_v36 = vunpack.i.h.bf16 %v6614_v61 }
 0x184   : > { %v7073_v16 = vpop.permute.xlu1 %5134  ;;  %1900 = vmatpush.bf16.msra.mxu0 %v4609_v10  ;;  %4616 = vmatpush.bf16.msra.mxu2 %v4609_v10  ;;  %v4777_v10 = vunpack.i.h.bf16 %v6768_v3  ;;  %v4937_v3 = vunpack.i.h.bf16 %v6927_v59 }
 0x186   : > { %v7089_v28 = vpop.permute.xlu2 %5184 }
 0x187   : > { %v7075_v4 = vpop.permute.xlu0 %5129 }
 0x188   : > { %9863 = vst [vmem:[#allocation86_spill] sm:$0xff] %v7075_v4 }
 0x18c   : > { %v7079_v43 = vpop.permute.xlu1 %5149 }
 0x18d   : > { %9865 = vst [vmem:[#allocation88_spill] sm:$0xff] %v7079_v43 }
 0x18f   : > { %v7081_v0 = vpop.permute.xlu0 %5144 }
 0x194   : > { %v7085_v47 = vpop.permute.xlu1 %5164 }
 0x195   : > { %9867 = vst [vmem:[#allocation90_spill] sm:$0xff] %v7085_v47 }
 0x197   : > { %v7087_v30 = vpop.permute.xlu0 %5159 }
 0x198   : > { %9868 = vst [vmem:[#allocation91_spill] sm:$0xff] %v7087_v30  ;;  %v7104_v30 = vpop.permute.xlu2 %5199 }
 0x199   : > { %9869 = vst [vmem:[#allocation92_spill] sm:$0xff] %v7104_v30  ;;  %v1576_v30 = vsel %vm1575_vm6, %v1543_v25, %v4776_v45  ;;  %v5097_v45 = vunpack.i.h.bf16 %v7030_v18 }
 0x19c   : > { %v7091_v42 = vpop.permute.xlu1 %5179 }
 0x19f   : > { %v7096_v4 = vpop.permute.xlu0 %5174 }
 0x1a0   : > { %v7115_v23 = vpop.permute.xlu2 %5214  ;;  %v5177_v17 = vunpack.i.h.bf16 %v7096_v4  ;;  %v5176_v25 = vunpack.i.l.bf16 %v7096_v4  ;;  %v4722_v4 = vunpack.i.h.bf16 %v6634_v46 }
 0x1a4   : > { %v7102_v47 = vpop.permute.xlu1 %5194 }
 0x1a7   : > { %v7106_v5 = vpop.permute.xlu0 %5189 }
 0x1a8   : > { %v7122_v34 = vpop.permute.xlu2 %5229 }
 0x1a9   : > { %9872 = vst [vmem:[#allocation95_spill] sm:$0xff] %v7122_v34  ;;  %v5096_v34 = vunpack.i.l.bf16 %v7030_v18 }
 0x1ac   : > { %v7111_v51 = vpop.permute.xlu1 %5209 }
 0x1ad   : > { %9870 = vst [vmem:[#allocation93_spill] sm:$0xff] %v7111_v51  ;;  %v4856_v51 = vunpack.i.l.bf16 %v6795_v50 }
 0x1af   : > { %v7113_v44 = vpop.permute.xlu0 %5204  ;;  %v1609_v50 = vsel %vm1608_vm5, %v1576_v30, %v4856_v51  ;;  %v4716_v51 = vunpack.i.l.bf16 %v6614_v61  ;;  %v4721_v61 = vunpack.i.l.bf16 %v6634_v46 }
 0x1b0   : > { %9871 = vst [vmem:[#allocation94_spill] sm:$0xff] %v7113_v44  ;;  %v1642_v59 = vsel %vm1641_vm7, %v1609_v50, %v4936_v19  ;;  %v7156_v18 = vpop.permute.xlu2 %5244 }
 0x1b1   : > { %v1675_v30 = vsel %vm1674_vm9, %v1642_v59, %v5016_v55  ;;  %9875 = vst [vmem:[#allocation98_spill] sm:$0xff] %v7156_v18  ;;  %v7169_v59 = vsel %vm1542_vm4, %v6172_v13, %v4717_v36  ;;  %v9881_v13 = vld [vmem:[#allocation51_spill] sm:$0xff] }
 0x1b2   : > { %v4782_v36 = vunpack.i.h.bf16 %v9881_v13 }
 0x1b4   : > { %v7117_v63 = vpop.permute.xlu1 %5224 }
 0x1b7   : > { %v7119_v38 = vpop.permute.xlu0 %5219 }
 0x1bc   : > { %v7128_v44 = vpop.permute.xlu1 %5239 }
 0x1bd   : > { %9873 = vst [vmem:[#allocation96_spill] sm:$0xff] %v7128_v44  ;;  %v1577_v44 = vsel %vm1575_vm6, %v1544_v56, %v4777_v10 }
 0x1be   : > { %v1610_v43 = vsel %vm1608_vm5, %v1577_v44, %v4857_v54  ;;  %v1708_v44 = vsel %vm1707_vm8, %v1675_v30, %v5096_v34  ;;  %v9878_v30 = vld [vmem:[#allocation8_spill] sm:$0xff] }
 0x1bf   : > { %v7139_v41 = vpop.permute.xlu0 %5234  ;;  %v1643_v10 = vsel %vm1641_vm7, %v1610_v43, %v4937_v3  ;;  %v1741_v55 = vsel %vm1740_vm10, %v1708_v44, %v5176_v25  ;;  %v7173_v25 = vsel %vm1542_vm4, %v6175_v14, %v4716_v51  ;;  %v9882_v14 = vld [vmem:[#allocation45_spill] sm:$0xff] }
 0x1c0   : > { %9874 = vst [vmem:[#allocation97_spill] sm:$0xff] %v7139_v41  ;;  %v1676_v54 = vsel %vm1674_vm9, %v1643_v10, %v5017_v39  ;;  %v4737_v51 = vunpack.i.h.bf16 %v9882_v14 }
 0x1c1   : > { %v1709_v56 = vsel %vm1707_vm8, %v1676_v54, %v5097_v45  ;;  %v9879_v54 = vld [vmem:[#allocation7_spill] sm:$0xff] }
 0x1c2   : > { %v1742_v43 = vsel %vm1740_vm10, %v1709_v56, %v5177_v17  ;;  %v9877_v17 = vld [vmem:[#allocation50_spill] sm:$0xff]  ;;  %v7184_v44 = vsel %vm1542_vm4, %v9879_v54, %v4721_v61  ;;  %v4736_v56 = vunpack.i.l.bf16 %v9882_v14  ;;  %v4941_v61 = vunpack.i.l.bf16 %v6923_v31 }
 0x1c3   : > { %v4702_v10 = vunpack.i.h.bf16 %v9877_v17  ;;  %v4701_v46 = vunpack.i.l.bf16 %v9877_v17  ;;  %9880 = vst [vmem:[#allocation50_spill] sm:$0xff] %v7184_v44  ;;  %v5021_v14 = vunpack.i.l.bf16 %v6948_v53 }
 0x1c4   : > { %v5255_v19 = vpop.permute.xlu1 %5254 }
 0x1c5   : > { %v5257_v50 = vunpack.i.h.bf16 %v5255_v19  ;;  %v5256_v41 = vunpack.i.l.bf16 %v5255_v19  ;;  %v4781_v19 = vunpack.i.l.bf16 %v9881_v13  ;;  %v5022_v13 = vunpack.i.h.bf16 %v6948_v53 }
 0x1c7   : > { %v7163_v3 = vpop.permute.xlu0 %5249  ;;  %v1774_v34 = vsel %vm1773_vm11, %v1741_v55, %v5256_v41  ;;  %v1775_v39 = vsel %vm1773_vm11, %v1742_v43, %v5257_v50  ;;  %v7180_v41 = vsel %vm1542_vm4, %v9878_v30, %v4722_v4  ;;  %v4862_v50 = vunpack.i.h.bf16 %v6857_v11  ;;  %v9883_v43 = vld [vmem:[#allocation47_spill] sm:$0xff]  ;;  %v9885_v30 = vld [vmem:[#allocation13_spill] sm:$0xff] }
 0x1c8   : > { %9876 = vst [vmem:[#allocation99_spill] sm:$0xff] %v7163_v3  ;;  %v1806_v45 = vpack.c.bf16 %v1775_v39, %v1774_v34  ;;  %v4861_v55 = vunpack.i.l.bf16 %v6857_v11  ;;  %v4707_v34 = vunpack.i.h.bf16 %v9883_v43  ;;  %v4706_v4 = vunpack.i.l.bf16 %v9883_v43  ;;  %v5260_v3 = vpop.permute.xlu2 %5259 }
 0x1c9   : > { %v4942_v39 = vunpack.i.h.bf16 %v6923_v31  ;;  %v1545_v54 = vsel %vm1542_vm4, %v9885_v30, %v4701_v46  ;;  %v5102_v43 = vunpack.i.h.bf16 %v7062_v12  ;;  %v5182_v46 = vunpack.i.h.bf16 %v7091_v42  ;;  %v9887_v12 = vld [vmem:[#allocation16_spill] sm:$0xff] }
 0x1ca   : > { %4559 = vmatmul.msk.bf16.vlgmr.msra.gmra.mxu0 %vm9753_vm12, %v1806_v45  ;;  %v9884_v45 = vld [vmem:[#allocation14_spill] sm:$0xff]  ;;  %v1578_v11 = vsel %vm1575_vm6, %v1545_v54, %v4781_v19  ;;  %v5181_v30 = vunpack.i.l.bf16 %v7091_v42  ;;  %v5262_v54 = vunpack.i.h.bf16 %v5260_v3  ;;  %v1559_v44 = vsel %vm1542_vm4, %v9887_v12, %v4736_v56 }
 0x1cb   : > { %v1546_v17 = vsel %vm1542_vm4, %v9884_v45, %v4702_v10  ;;  %v1611_v10 = vsel %vm1608_vm5, %v1578_v11, %v4861_v55  ;;  %v1548_v42 = vsel %vm1542_vm4, %v6185_v21, %v4707_v34 }
 0x1cc   : > { %v1579_v18 = vsel %vm1575_vm6, %v1546_v17, %v4782_v36  ;;  %v1644_v53 = vsel %vm1641_vm7, %v1611_v10, %v4941_v61  ;;  %v5261_v36 = vunpack.i.l.bf16 %v5260_v3  ;;  %v9886_v17 = vld [vmem:[#allocation17_spill] sm:$0xff]  ;;  %v1547_v3 = vsel %vm1542_vm4, %v6188_v22, %v4706_v4 }
 0x1cd   : > { %v1612_v45 = vsel %vm1608_vm5, %v1579_v18, %v4862_v50  ;;  %v1560_v57 = vsel %vm1542_vm4, %v9886_v17, %v4737_v51  ;;  %v1677_v55 = vsel %vm1674_vm9, %v1644_v53, %v5021_v14  ;;  %v9888_v50 = vld [vmem:[#allocation46_spill] sm:$0xff]  ;;  %v9889_v51 = vld [vmem:[#allocation48_spill] sm:$0xff]  ;;  %v4867_v4 = vunpack.i.h.bf16 %v6851_v1 }
 0x1ce   : > { %v1645_v19 = vsel %vm1641_vm7, %v1612_v45, %v4942_v39  ;;  %v1710_v61 = vsel %vm1707_vm8, %v1677_v55, %v5101_v6  ;;  %v4712_v10 = vunpack.i.h.bf16 %v9889_v51  ;;  %v9890_v45 = vld [vmem:[#allocation42_spill] sm:$0xff]  ;;  %v4711_v34 = vunpack.i.l.bf16 %v9889_v51  ;;  %v9892_v17 = vld [vmem:[#allocation56_spill] sm:$0xff] }
 0x1cf   : > { %v7206_v31 = vpop.permute.xlu0 %5264  ;;  %v1678_v18 = vsel %vm1674_vm9, %v1645_v19, %v5022_v13  ;;  %v1743_v56 = vsel %vm1740_vm10, %v1710_v61, %v5181_v30  ;;  %v4787_v13 = vunpack.i.h.bf16 %v9890_v45  ;;  %v4786_v53 = vunpack.i.l.bf16 %v9890_v45  ;;  %v7232_v19 = vpop.permute.xlu1 %5269  ;;  %v9902_v51 = vld [vmem:[#allocation60_spill] sm:$0xff] }
 0x1d0   : > { %v1711_v39 = vsel %vm1707_vm8, %v1678_v18, %v5102_v43  ;;  %v1776_v21 = vsel %vm1773_vm11, %v1743_v56, %v5261_v36  ;;  %v9891_v43 = vld [vmem:[#allocation12_spill] sm:$0xff]  ;;  %v4866_v30 = vunpack.i.l.bf16 %v6851_v1  ;;  %v4816_v12 = vunpack.i.l.bf16 %v9892_v17 }
 0x1d1   : > { %v1744_v14 = vsel %vm1740_vm10, %v1711_v39, %v5182_v46  ;;  %v4817_v46 = vunpack.i.h.bf16 %v9892_v17  ;;  %v4947_v55 = vunpack.i.h.bf16 %v6873_v58  ;;  %v4946_v18 = vunpack.i.l.bf16 %v6873_v58 }
 0x1d2   : > { %v1777_v6 = vsel %vm1773_vm11, %v1744_v14, %v5262_v54  ;;  %v4897_v36 = vunpack.i.h.bf16 %v6877_v40  ;;  %v4896_v39 = vunpack.i.l.bf16 %v6877_v40  ;;  %v1581_v14 = vsel %vm1575_vm6, %v1548_v42, %v4787_v13 }
 0x1d3   : > { %v1807_v56 = vpack.c.bf16 %v1777_v6, %v1776_v21  ;;  %v1580_v1 = vsel %vm1575_vm6, %v1547_v3, %v4786_v53  ;;  %v4977_v45 = vunpack.i.h.bf16 %v6897_v35  ;;  %v4976_v17 = vunpack.i.l.bf16 %v6897_v35 }
 0x1d4   : > { %v1613_v11 = vsel %vm1608_vm5, %v1580_v1, %v4866_v30  ;;  %v1614_v58 = vsel %vm1608_vm5, %v1581_v14, %v4867_v4  ;;  %v5057_v22 = vunpack.i.h.bf16 %v7026_v24  ;;  %v5056_v54 = vunpack.i.l.bf16 %v7026_v24 }
 0x1d5   : > { %v1593_v40 = vsel %vm1575_vm6, %v1560_v57, %v4817_v46  ;;  %v1592_v42 = vsel %vm1575_vm6, %v1559_v44, %v4816_v12  ;;  %v1646_v3 = vsel %vm1641_vm7, %v1613_v11, %v4946_v18  ;;  %v1647_v13 = vsel %vm1641_vm7, %v1614_v58, %v4947_v55 }
 0x1d6   : > { %v1625_v35 = vsel %vm1608_vm5, %v1592_v42, %v4896_v39  ;;  %v1626_v53 = vsel %vm1608_vm5, %v1593_v40, %v4897_v36  ;;  %v5137_v21 = vunpack.i.h.bf16 %v7073_v16  ;;  %v5136_v6 = vunpack.i.l.bf16 %v7073_v16  ;;  %v9893_v42 = vld [vmem:[#allocation39_spill] sm:$0xff] }
 0x1d7   : > { %v7244_v61 = vpop.permute.xlu0 %5279  ;;  %v1658_v24 = vsel %vm1641_vm7, %v1625_v35, %v4976_v17  ;;  %v1659_v4 = vsel %vm1641_vm7, %v1626_v53, %v4977_v45  ;;  %v5217_v57 = vunpack.i.h.bf16 %v7115_v23  ;;  %v5216_v44 = vunpack.i.l.bf16 %v7115_v23  ;;  %v7278_v39 = vpop.permute.xlu1 %5284 }
 0x1d8   : > { %v5027_v11 = vunpack.i.h.bf16 %v7001_v27  ;;  %v5026_v30 = vunpack.i.l.bf16 %v7001_v27  ;;  %v1691_v46 = vsel %vm1674_vm9, %v1658_v24, %v5056_v54  ;;  %v1692_v12 = vsel %vm1674_vm9, %v1659_v4, %v5057_v22 }
 0x1d9   : > { %v5107_v55 = vunpack.i.h.bf16 %v7058_v48  ;;  %v5106_v16 = vunpack.i.l.bf16 %v7058_v48  ;;  %v5187_v18 = vunpack.i.h.bf16 %v7089_v28  ;;  %v5186_v36 = vunpack.i.l.bf16 %v7089_v28 }
 0x1da   : > { %4560 = vmatmul.msk.bf16.gmra.mxu0 %vm9753_vm12, %v1807_v56  ;;  %v1724_v23 = vsel %vm1707_vm8, %v1691_v46, %v5136_v6  ;;  %v1725_v14 = vsel %vm1707_vm8, %v1692_v12, %v5137_v21  ;;  %v5267_v54 = vunpack.i.h.bf16 %v7206_v31  ;;  %v5266_v22 = vunpack.i.l.bf16 %v7206_v31  ;;  %v9894_v31 = vld [vmem:[#allocation11_spill] sm:$0xff] }
 0x1db   : > { %v1757_v45 = vsel %vm1740_vm10, %v1724_v23, %v5216_v44  ;;  %v1758_v48 = vsel %vm1740_vm10, %v1725_v14, %v5217_v57  ;;  %v1679_v17 = vsel %vm1674_vm9, %v1646_v3, %v5026_v30  ;;  %v1680_v28 = vsel %vm1674_vm9, %v1647_v13, %v5027_v11  ;;  %v9895_v57 = vld [vmem:[#allocation54_spill] sm:$0xff]  ;;  %v7302_v30 = vpop.permute.xlu2 %5274 }
 0x1dc   : > { %v4792_v35 = vunpack.i.h.bf16 %v9893_v42  ;;  %v1712_v53 = vsel %vm1707_vm8, %v1679_v17, %v5106_v16  ;;  %v1713_v21 = vsel %vm1707_vm8, %v1680_v28, %v5107_v55  ;;  %v1550_v24 = vsel %vm1542_vm4, %v9894_v31, %v4712_v10  ;;  %v9896_v10 = vld [vmem:[#allocation10_spill] sm:$0xff] }
 0x1dd   : > { %v4791_v3 = vunpack.i.l.bf16 %v9893_v42  ;;  %v1745_v13 = vsel %vm1740_vm10, %v1712_v53, %v5186_v36  ;;  %v1746_v4 = vsel %vm1740_vm10, %v1713_v21, %v5187_v18  ;;  %v4872_v44 = vunpack.i.h.bf16 %v9895_v57  ;;  %v9898_v18 = vld [vmem:[#allocation32_spill] sm:$0xff] }
 0x1de   : > { %v4871_v11 = vunpack.i.l.bf16 %v9895_v57  ;;  %v1778_v46 = vsel %vm1773_vm11, %v1745_v13, %v5266_v22  ;;  %v1779_v12 = vsel %vm1773_vm11, %v1746_v4, %v5267_v54  ;;  %v1549_v55 = vsel %vm1542_vm4, %v9896_v10, %v4711_v34 }
 0x1df   : > { %v5295_v56 = vpop.permute.xlu0 %5294  ;;  %v9897_v16 = vunpack.i.h.bf16 %v9891_v43  ;;  %v1583_v54 = vsel %vm1575_vm6, %v1550_v24, %v4792_v35  ;;  %v4901_v34 = vunpack.i.l.bf16 %v9902_v51  ;;  %v4982_v17 = vunpack.i.h.bf16 %v6960_v32  ;;  %v5300_v35 = vpop.permute.xlu1 %5299 }
 0x1e0   : > { %v5297_v27 = vunpack.i.h.bf16 %v5295_v56  ;;  %v5296_v1 = vunpack.i.l.bf16 %v5295_v56  ;;  %v9899_v56 = vld [vmem:[#allocation55_spill] sm:$0xff]  ;;  %v4981_v28 = vunpack.i.l.bf16 %v6960_v32  ;;  %v5062_v42 = vunpack.i.h.bf16 %v7022_v9 }
 0x1e1   : > { %v1562_v36 = vsel %vm1542_vm4, %v9898_v18, %v9897_v16  ;;  %v4822_v23 = vunpack.i.h.bf16 %v9899_v56  ;;  %v4821_v14 = vunpack.i.l.bf16 %v9899_v56  ;;  %v5061_v53 = vunpack.i.l.bf16 %v7022_v9 }
 0x1e2   : > { %v1790_v58 = vsel %vm1773_vm11, %v1757_v45, %v5296_v1  ;;  %v1791_v40 = vsel %vm1773_vm11, %v1758_v48, %v5297_v27  ;;  %v9900_v27 = vunpack.i.l.bf16 %v9891_v43  ;;  %v9901_v1 = vld [vmem:[#allocation31_spill] sm:$0xff]  ;;  %v4902_v45 = vunpack.i.h.bf16 %v9902_v51 }
 0x1e3   : > { %v1814_v6 = vpack.c.bf16 %v1791_v40, %v1790_v58  ;;  %v1582_v48 = vsel %vm1575_vm6, %v1549_v55, %v4791_v3  ;;  %v1808_v58 = vpack.c.bf16 %v1779_v12, %v1778_v46  ;;  %v1616_v43 = vsel %vm1608_vm5, %v1583_v54, %v4872_v44 }
 0x1e4   : > { %v1561_v22 = vsel %vm1542_vm4, %v9901_v1, %v9900_v27  ;;  %v1615_v40 = vsel %vm1608_vm5, %v1582_v48, %v4871_v11  ;;  %v5142_v31 = vunpack.i.h.bf16 %v7069_v15  ;;  %v5141_v24 = vunpack.i.l.bf16 %v7069_v15 }
 0x1e5   : > { %4567 = vmatmul.msk.bf16.vlgmr.msra.gmra.mxu2 %vm9753_vm12, %v1814_v6  ;;  %v1594_v21 = vsel %vm1575_vm6, %v1561_v22, %v4821_v14  ;;  %v1595_v6 = vsel %vm1575_vm6, %v1562_v36, %v4822_v23  ;;  %v5222_v13 = vunpack.i.h.bf16 %v7119_v38  ;;  %v5221_v4 = vunpack.i.l.bf16 %v7119_v38  ;;  %v7352_v23 = vpop.permute.xlu2 %5289 }
 0x1e6   : > { %v1627_v32 = vsel %vm1608_vm5, %v1594_v21, %v4901_v34  ;;  %v1628_v3 = vsel %vm1608_vm5, %v1595_v6, %v4902_v45  ;;  %v5302_v44 = vunpack.i.h.bf16 %v5300_v35  ;;  %v5301_v11 = vunpack.i.l.bf16 %v5300_v35  ;;  %v9903_v34 = vld [vmem:[#allocation27_spill] sm:$0xff] }
 0x1e7   : > { %v1660_v9 = vsel %vm1641_vm7, %v1627_v32, %v4981_v28  ;;  %v1661_v57 = vsel %vm1641_vm7, %v1628_v3, %v4982_v17  ;;  %v4952_v46 = vunpack.i.h.bf16 %v6938_v52  ;;  %v4951_v15 = vunpack.i.l.bf16 %v6938_v52 }
 0x1e8   : > { %v1693_v12 = vsel %vm1674_vm9, %v1660_v9, %v5061_v53  ;;  %v1694_v10 = vsel %vm1674_vm9, %v1661_v57, %v5062_v42  ;;  %v5032_v55 = vunpack.i.h.bf16 %v6995_v7  ;;  %v5031_v16 = vunpack.i.l.bf16 %v6995_v7  ;;  %v9907_v57 = vld [vmem:[#allocation28_spill] sm:$0xff] }
 0x1e9   : > { %v1726_v38 = vsel %vm1707_vm8, %v1693_v12, %v5141_v24  ;;  %v1727_v18 = vsel %vm1707_vm8, %v1694_v10, %v5142_v31  ;;  %v5112_v36 = vunpack.i.h.bf16 %v7042_v8  ;;  %v5111_v56 = vunpack.i.l.bf16 %v7042_v8  ;;  %v9905_v31 = vld [vmem:[#allocation24_spill] sm:$0xff]  ;;  %v9909_v12 = vld [vmem:[#allocation26_spill] sm:$0xff] }
 0x1ea   : > { %4561 = vmatmul.msk.bf16.gmra.mxu0 %vm9753_vm12, %v1808_v58  ;;  %v1759_v52 = vsel %vm1740_vm10, %v1726_v38, %v5221_v4  ;;  %v1760_v14 = vsel %vm1740_vm10, %v1727_v18, %v5222_v13  ;;  %v5192_v27 = vunpack.i.h.bf16 %v7106_v5  ;;  %v5191_v1 = vunpack.i.l.bf16 %v7106_v5  ;;  %v9904_v58 = vld [vmem:[#allocation18_spill] sm:$0xff]  ;;  %v9906_v4 = vld [vmem:[#allocation29_spill] sm:$0xff] }
 0x1eb   : > { %v1792_v7 = vsel %vm1773_vm11, %v1759_v52, %v5301_v11  ;;  %v1793_v22 = vsel %vm1773_vm11, %v1760_v14, %v5302_v44  ;;  %v1649_v54 = vsel %vm1641_vm7, %v1616_v43, %v4952_v46  ;;  %v1648_v51 = vsel %vm1641_vm7, %v1615_v40, %v4951_v15 }
 0x1ec   : > { %v5272_v8 = vunpack.i.h.bf16 %v7232_v19  ;;  %v5271_v45 = vunpack.i.l.bf16 %v7232_v19  ;;  %v4747_v48 = vunpack.i.h.bf16 %v9903_v34  ;;  %v4746_v17 = vunpack.i.l.bf16 %v9903_v34 }
 0x1ed   : > { %v1681_v28 = vsel %vm1674_vm9, %v1648_v51, %v5031_v16  ;;  %v1682_v5 = vsel %vm1674_vm9, %v1649_v54, %v5032_v55  ;;  %v4797_v42 = vunpack.i.h.bf16 %v9904_v58  ;;  %v1815_v35 = vpack.c.bf16 %v1793_v22, %v1792_v7 }
 0x1ee   : > { %v1714_v53 = vsel %vm1707_vm8, %v1681_v28, %v5111_v56  ;;  %v1715_v43 = vsel %vm1707_vm8, %v1682_v5, %v5112_v36  ;;  %v4751_v40 = vunpack.i.l.bf16 %v9888_v50  ;;  %v4796_v21 = vunpack.i.l.bf16 %v9904_v58 }
 0x1ef   : > { %v1747_v19 = vsel %vm1740_vm10, %v1714_v53, %v5191_v1  ;;  %v1748_v6 = vsel %vm1740_vm10, %v1715_v43, %v5192_v27  ;;  %v4827_v24 = vunpack.i.h.bf16 %v9905_v31  ;;  %v4826_v32 = vunpack.i.l.bf16 %v9905_v31  ;;  %v5305_v27 = vpop.permute.xlu2 %5304 }
 0x1f0   : > { %v1780_v3 = vsel %vm1773_vm11, %v1747_v19, %v5271_v45  ;;  %v1781_v13 = vsel %vm1773_vm11, %v1748_v6, %v5272_v8  ;;  %v1564_v9 = vsel %vm1542_vm4, %v9906_v4, %v4747_v48  ;;  %v1563_v44 = vsel %vm1542_vm4, %v9907_v57, %v4746_v17  ;;  %v9911_v4 = vld [vmem:[#allocation15_spill] sm:$0xff] }
 0x1f1   : > { %v4877_v11 = vunpack.i.h.bf16 %v6869_v37  ;;  %v4876_v46 = vunpack.i.l.bf16 %v6869_v37  ;;  %v9908_v15 = vunpack.i.h.bf16 %v9888_v50  ;;  %v1585_v55 = vsel %vm1575_vm6, %v7169_v59, %v4797_v42 }
 0x1f2   : > { %v4907_v16 = vunpack.i.h.bf16 %v6893_v2  ;;  %v4906_v38 = vunpack.i.l.bf16 %v6893_v2  ;;  %v1584_v18 = vsel %vm1575_vm6, %v7173_v25, %v4796_v21  ;;  %v4987_v36 = vunpack.i.h.bf16 %v6956_v33 }
 0x1f3   : > { %v7390_v10 = vsel %vm1542_vm4, %v9909_v12, %v9908_v15  ;;  %v4986_v37 = vunpack.i.l.bf16 %v6956_v33  ;;  %v1809_v56 = vpack.c.bf16 %v1781_v13, %v1780_v3  ;;  %v1597_v50 = vsel %vm1575_vm6, %v1564_v9, %v4827_v24  ;;  %v9910_v3 = vld [vmem:[#allocation25_spill] sm:$0xff] }
 0x1f4   : > { %v1596_v52 = vsel %vm1575_vm6, %v1563_v44, %v4826_v32  ;;  %v5067_v14 = vunpack.i.h.bf16 %v6993_v29  ;;  %v5066_v59 = vunpack.i.l.bf16 %v6993_v29  ;;  %v1618_v1 = vsel %vm1608_vm5, %v1585_v55, %v4877_v11  ;;  %v9912_v44 = vld [vmem:[#allocation53_spill] sm:$0xff] }
 0x1f5   : > { %4568 = vmatmul.msk.bf16.gmra.mxu2 %vm9753_vm12, %v1815_v35  ;;  %v1617_v2 = vsel %vm1608_vm5, %v1584_v18, %v4876_v46  ;;  %v5147_v25 = vunpack.i.h.bf16 %v7081_v0  ;;  %v5146_v7 = vunpack.i.l.bf16 %v7081_v0  ;;  %v1630_v33 = vsel %vm1608_vm5, %v1597_v50, %v4907_v16  ;;  %v9914_v50 = vld [vmem:[#allocation20_spill] sm:$0xff] }
 0x1f6   : > { %v1629_v22 = vsel %vm1608_vm5, %v1596_v52, %v4906_v38  ;;  %v5227_v54 = vunpack.i.h.bf16 %v7117_v63  ;;  %v5226_v51 = vunpack.i.l.bf16 %v7117_v63  ;;  %v1663_v8 = vsel %vm1641_vm7, %v1630_v33, %v4987_v36  ;;  %v9913_v38 = vld [vmem:[#allocation59_spill] sm:$0xff] }
 0x1f7   : > { %v1662_v29 = vsel %vm1641_vm7, %v1629_v22, %v4986_v37  ;;  %v5307_v45 = vunpack.i.h.bf16 %v5305_v27  ;;  %v5306_v34 = vunpack.i.l.bf16 %v5305_v27  ;;  %v4957_v48 = vunpack.i.h.bf16 %v6934_v49  ;;  %v9916_v22 = vld [vmem:[#allocation50_spill] sm:$0xff] }
 0x1f8   : > { %v4956_v0 = vunpack.i.l.bf16 %v6934_v49  ;;  %v1695_v17 = vsel %vm1674_vm9, %v1662_v29, %v5066_v59  ;;  %v1696_v28 = vsel %vm1674_vm9, %v1663_v8, %v5067_v14  ;;  %v5037_v5 = vunpack.i.h.bf16 %v6964_v60  ;;  %v9915_v14 = vld [vmem:[#allocation9_spill] sm:$0xff] }
 0x1f9   : > { %v5036_v58 = vunpack.i.l.bf16 %v6964_v60  ;;  %v1728_v63 = vsel %vm1707_vm8, %v1695_v17, %v5146_v7  ;;  %v1729_v42 = vsel %vm1707_vm8, %v1696_v28, %v5147_v25  ;;  %v5117_v53 = vunpack.i.h.bf16 %v7071_v20  ;;  %v5310_v17 = vpop.permute.xlu0 %5309 }
 0x1fa   : > { %4562 = vmatmul.msk.bf16.gmra.mxu0 %vm9753_vm12, %v1809_v56  ;;  %v5116_v43 = vunpack.i.l.bf16 %v7071_v20  ;;  %v1761_v35 = vsel %vm1740_vm10, %v1728_v63, %v5226_v51  ;;  %v1762_v49 = vsel %vm1740_vm10, %v1729_v42, %v5227_v54  ;;  %v5197_v21 = vunpack.i.h.bf16 %v7102_v47  ;;  %v9917_v51 = vld [vmem:[#allocation69_spill] sm:$0xff] }
 0x1fb   : > { %v5196_v19 = vunpack.i.l.bf16 %v7102_v47  ;;  %v1794_v6 = vsel %vm1773_vm11, %v1761_v35, %v5306_v34  ;;  %v1795_v60 = vsel %vm1773_vm11, %v1762_v49, %v5307_v45  ;;  %v1650_v31 = vsel %vm1641_vm7, %v1617_v2, %v4956_v0 }
 0x1fc   : > { %v1651_v24 = vsel %vm1641_vm7, %v1618_v1, %v4957_v48  ;;  %v5277_v32 = vunpack.i.h.bf16 %v7302_v30  ;;  %v5276_v20 = vunpack.i.l.bf16 %v7302_v30  ;;  %v1565_v13 = vsel %vm1542_vm4, %v9910_v3, %v4751_v40  ;;  %v9918_v48 = vld [vmem:[#allocation81_spill] sm:$0xff]  ;;  %v9922_v3 = vld [vmem:[#allocation79_spill] sm:$0xff] }
 0x1fd   : > { %v4732_v9 = vunpack.i.h.bf16 %v9911_v4  ;;  %v1683_v57 = vsel %vm1674_vm9, %v1650_v31, %v5036_v58  ;;  %v1684_v47 = vsel %vm1674_vm9, %v1651_v24, %v5037_v5  ;;  %v4802_v11 = vunpack.i.h.bf16 %v9912_v44  ;;  %v9919_v5 = vld [vmem:[#allocation88_spill] sm:$0xff] }
 0x1fe   : > { %v1716_v46 = vsel %vm1707_vm8, %v1683_v57, %v5116_v43  ;;  %v1717_v15 = vsel %vm1707_vm8, %v1684_v47, %v5117_v53  ;;  %v1816_v12 = vpack.c.bf16 %v1795_v60, %v1794_v6  ;;  %v4731_v55 = vunpack.i.l.bf16 %v9911_v4  ;;  %v9920_v53 = vld [vmem:[#allocation95_spill] sm:$0xff]  ;;  %v9921_v60 = vld [vmem:[#allocation66_spill] sm:$0xff] }
 0x1ff   : > { %v4801_v30 = vunpack.i.l.bf16 %v9912_v44  ;;  %v1749_v16 = vsel %vm1740_vm10, %v1716_v46, %v5196_v19  ;;  %v1750_v40 = vsel %vm1740_vm10, %v1717_v15, %v5197_v21  ;;  %v4832_v18 = vunpack.i.h.bf16 %v9913_v38  ;;  %v9923_v44 = vld [vmem:[#allocation85_spill] sm:$0xff]  ;;  %v9946_v4 = vld [vmem:[#allocation38_spill] sm:$0xff] }
 0x200   : > { %v4831_v36 = vunpack.i.l.bf16 %v9913_v38  ;;  %v1782_v37 = vsel %vm1773_vm11, %v1749_v16, %v5276_v20  ;;  %v1783_v56 = vsel %vm1773_vm11, %v1750_v40, %v5277_v32  ;;  %v7454_v52 = vsel %vm1542_vm4, %v9914_v50, %v4732_v9 }
 0x201   : > { %v4727_v59 = vunpack.i.h.bf16 %v9915_v14  ;;  %v4882_v27 = vunpack.i.h.bf16 %v6865_v26  ;;  %v4881_v1 = vunpack.i.l.bf16 %v6865_v26  ;;  %v4726_v2 = vunpack.i.l.bf16 %v9915_v14 }
 0x202   : > { %v1587_v25 = vsel %vm1575_vm6, %v7180_v41, %v4802_v11  ;;  %v4912_v7 = vunpack.i.h.bf16 %v6889_v62  ;;  %v4911_v33 = vunpack.i.l.bf16 %v6889_v62  ;;  %v1586_v54 = vsel %vm1575_vm6, %v9916_v22, %v4801_v30  ;;  %v9924_v30 = vld [vmem:[#allocation92_spill] sm:$0xff] }
 0x203   : > { %v4992_v29 = vunpack.i.h.bf16 %v9917_v51  ;;  %v4991_v8 = vunpack.i.l.bf16 %v9917_v51  ;;  %v1810_v45 = vpack.c.bf16 %v1783_v56, %v1782_v37  ;;  %v1599_v26 = vsel %vm1575_vm6, %v7390_v10, %v4832_v18  ;;  %v9926_v22 = vld [vmem:[#allocation52_spill] sm:$0xff] }
 0x204   : > { %v1598_v34 = vsel %vm1575_vm6, %v1565_v13, %v4831_v36  ;;  %v5072_v0 = vunpack.i.h.bf16 %v9918_v48  ;;  %v5071_v41 = vunpack.i.l.bf16 %v9918_v48  ;;  %v1619_v62 = vsel %vm1608_vm5, %v1586_v54, %v4881_v1 }
 0x205   : > { %4569 = vmatmul.msk.bf16.gmra.mxu2 %vm9753_vm12, %v1816_v12  ;;  %v1620_v28 = vsel %vm1608_vm5, %v1587_v25, %v4882_v27  ;;  %v5152_v58 = vunpack.i.h.bf16 %v9919_v5  ;;  %v5151_v63 = vunpack.i.l.bf16 %v9919_v5  ;;  %v1631_v42 = vsel %vm1608_vm5, %v1598_v34, %v4911_v33  ;;  %v9925_v27 = vld [vmem:[#allocation21_spill] sm:$0xff]  ;;  %v9929_v5 = vld [vmem:[#allocation22_spill] sm:$0xff] }
 0x206   : > { %v1632_v10 = vsel %vm1608_vm5, %v1599_v26, %v4912_v7  ;;  %v5232_v43 = vunpack.i.h.bf16 %v9920_v53  ;;  %v5231_v35 = vunpack.i.l.bf16 %v9920_v53  ;;  %v1664_v49 = vsel %vm1641_vm7, %v1631_v42, %v4991_v8  ;;  %v9931_v42 = vld [vmem:[#allocation58_spill] sm:$0xff] }
 0x207   : > { %v1665_v21 = vsel %vm1641_vm7, %v1632_v10, %v4992_v29  ;;  %v5312_v19 = vunpack.i.h.bf16 %v5310_v17  ;;  %v5311_v6 = vunpack.i.l.bf16 %v5310_v17  ;;  %v4962_v31 = vunpack.i.h.bf16 %v9921_v60 }
 0x208   : > { %v4961_v24 = vunpack.i.l.bf16 %v9921_v60  ;;  %v1697_v32 = vsel %vm1674_vm9, %v1664_v49, %v5071_v41  ;;  %v1698_v20 = vsel %vm1674_vm9, %v1665_v21, %v5072_v0  ;;  %v5042_v13 = vunpack.i.h.bf16 %v9922_v3  ;;  %v9928_v0 = vld [vmem:[#allocation57_spill] sm:$0xff]  ;;  %v9933_v21 = vld [vmem:[#allocation63_spill] sm:$0xff]  ;;  %v9934_v60 = vld [vmem:[#allocation74_spill] sm:$0xff] }
 0x209   : > { %v5041_v9 = vunpack.i.l.bf16 %v9922_v3  ;;  %v1730_v57 = vsel %vm1707_vm8, %v1697_v32, %v5151_v63  ;;  %v1731_v47 = vsel %vm1707_vm8, %v1698_v20, %v5152_v58  ;;  %v5122_v11 = vunpack.i.h.bf16 %v9923_v44  ;;  %v9930_v58 = vld [vmem:[#allocation41_spill] sm:$0xff]  ;;  %v9935_v3 = vld [vmem:[#allocation80_spill] sm:$0xff] }
 0x20a   : > { %4563 = vmatmul.msk.bf16.gmra.mxu0 %vm9753_vm12, %v1810_v45  ;;  %v5121_v46 = vunpack.i.l.bf16 %v9923_v44  ;;  %v1763_v15 = vsel %vm1740_vm10, %v1730_v57, %v5231_v35  ;;  %v1764_v12 = vsel %vm1740_vm10, %v1731_v47, %v5232_v43  ;;  %v5202_v16 = vunpack.i.h.bf16 %v9924_v30  ;;  %v9927_v45 = vld [vmem:[#allocation23_spill] sm:$0xff]  ;;  %v9932_v43 = vld [vmem:[#allocation40_spill] sm:$0xff]  ;;  %v5315_v57 = vpop.permute.xlu1 %5314 }
 0x20b   : > { %v5201_v40 = vunpack.i.l.bf16 %v9924_v30  ;;  %v1796_v38 = vsel %vm1773_vm11, %v1763_v15, %v5311_v6  ;;  %v1797_v18 = vsel %vm1773_vm11, %v1764_v12, %v5312_v19  ;;  %v1652_v36 = vsel %vm1641_vm7, %v1619_v62, %v4961_v24 }
 0x20c   : > { %v1653_v37 = vsel %vm1641_vm7, %v1620_v28, %v4962_v31  ;;  %v5282_v56 = vunpack.i.h.bf16 %v7244_v61  ;;  %v5281_v50 = vunpack.i.l.bf16 %v7244_v61  ;;  %v4757_v1 = vunpack.i.h.bf16 %v9925_v27 }
 0x20d   : > { %v4756_v25 = vunpack.i.l.bf16 %v9925_v27  ;;  %v1685_v7 = vsel %vm1674_vm9, %v1652_v36, %v5041_v9  ;;  %v1686_v33 = vsel %vm1674_vm9, %v1653_v37, %v5042_v13  ;;  %v4806_v54 = vunpack.i.l.bf16 %v9926_v22 }
 0x20e   : > { %v1718_v51 = vsel %vm1707_vm8, %v1685_v7, %v5121_v46  ;;  %v1719_v29 = vsel %vm1707_vm8, %v1686_v33, %v5122_v11  ;;  %v1817_v8 = vpack.c.bf16 %v1797_v18, %v1796_v38  ;;  %v1556_v26 = vsel %vm1542_vm4, %v9927_v45, %v4727_v59  ;;  %v9936_v11 = vld [vmem:[#allocation87_spill] sm:$0xff]  ;;  %v9939_v33 = vld [vmem:[#allocation77_spill] sm:$0xff] }
 0x20f   : > { %v4807_v61 = vunpack.i.h.bf16 %v9926_v22  ;;  %v1751_v34 = vsel %vm1740_vm10, %v1718_v51, %v5201_v40  ;;  %v1752_v48 = vsel %vm1740_vm10, %v1719_v29, %v5202_v16  ;;  %v4887_v41 = vunpack.i.h.bf16 %v9928_v0  ;;  %v9937_v16 = vld [vmem:[#allocation97_spill] sm:$0xff] }
 0x210   : > { %v4886_v17 = vunpack.i.l.bf16 %v9928_v0  ;;  %v1784_v62 = vsel %vm1773_vm11, %v1751_v34, %v5281_v50  ;;  %v1785_v28 = vsel %vm1773_vm11, %v1752_v48, %v5282_v56  ;;  %v1555_v59 = vsel %vm1542_vm4, %v9929_v5, %v4726_v2  ;;  %v9938_v50 = vld [vmem:[#allocation72_spill] sm:$0xff]  ;;  %v9941_v48 = vld [vmem:[#allocation94_spill] sm:$0xff] }
 0x211   : > { %v1568_v63 = vsel %vm1542_vm4, %v9930_v58, %v4757_v1  ;;  %v4837_v10 = vunpack.i.h.bf16 %v9931_v42  ;;  %v4836_v53 = vunpack.i.l.bf16 %v9931_v42  ;;  %v1567_v35 = vsel %vm1542_vm4, %v9932_v43, %v4756_v25 }
 0x212   : > { %v1588_v49 = vsel %vm1575_vm6, %v1555_v59, %v4806_v54  ;;  %v4917_v19 = vunpack.i.h.bf16 %v9933_v21  ;;  %v4916_v6 = vunpack.i.l.bf16 %v9933_v21  ;;  %v1589_v14 = vsel %vm1575_vm6, %v1556_v26, %v4807_v61 }
 0x213   : > { %v4997_v2 = vunpack.i.h.bf16 %v9934_v60  ;;  %v4996_v31 = vunpack.i.l.bf16 %v9934_v60  ;;  %v1811_v24 = vpack.c.bf16 %v1785_v28, %v1784_v62  ;;  %v1621_v32 = vsel %vm1608_vm5, %v1588_v49, %v4886_v17 }
 0x214   : > { %v1622_v20 = vsel %vm1608_vm5, %v1589_v14, %v4887_v41  ;;  %v5077_v13 = vunpack.i.h.bf16 %v9935_v3  ;;  %v5076_v9 = vunpack.i.l.bf16 %v9935_v3  ;;  %v1600_v47 = vsel %vm1575_vm6, %v1567_v35, %v4836_v53  ;;  %v9943_v35 = vld [vmem:[#allocation6_spill] sm:$0xff]  ;;  %v9944_v14 = vld [vmem:[#allocation19_spill] sm:$0xff] }
 0x215   : > { %4570 = vmatmul.msk.bf16.gmra.mxu2 %vm9753_vm12, %v1817_v8  ;;  %v1601_v44 = vsel %vm1575_vm6, %v1568_v63, %v4837_v10  ;;  %v5157_v46 = vunpack.i.h.bf16 %v9936_v11  ;;  %v5156_v15 = vunpack.i.l.bf16 %v9936_v11  ;;  %v1633_v12 = vsel %vm1608_vm5, %v1600_v47, %v4916_v6  ;;  %v9940_v8 = vld [vmem:[#allocation84_spill] sm:$0xff]  ;;  %v9948_v47 = vld [vmem:[#allocation65_spill] sm:$0xff] }
 0x216   : > { %v1634_v30 = vsel %vm1608_vm5, %v1601_v44, %v4917_v19  ;;  %v5237_v40 = vunpack.i.h.bf16 %v9937_v16  ;;  %v5236_v38 = vunpack.i.l.bf16 %v9937_v16  ;;  %v1666_v18 = vsel %vm1641_vm7, %v1633_v12, %v4996_v31  ;;  %v9942_v63 = vld [vmem:[#allocation36_spill] sm:$0xff] }
 0x217   : > { %v1667_v36 = vsel %vm1641_vm7, %v1634_v30, %v4997_v2  ;;  %v5317_v37 = vunpack.i.h.bf16 %v5315_v57  ;;  %v5316_v56 = vunpack.i.l.bf16 %v5315_v57  ;;  %v4967_v27 = vunpack.i.h.bf16 %v9938_v50 }
 0x218   : > { %v4966_v1 = vunpack.i.l.bf16 %v9938_v50  ;;  %v1699_v25 = vsel %vm1674_vm9, %v1666_v18, %v5076_v9  ;;  %v1700_v7 = vsel %vm1674_vm9, %v1667_v36, %v5077_v13  ;;  %v5047_v22 = vunpack.i.h.bf16 %v9939_v33  ;;  %v9951_v50 = vld [vmem:[#allocation78_spill] sm:$0xff] }
 0x219   : > { %v5046_v54 = vunpack.i.l.bf16 %v9939_v33  ;;  %v1732_v51 = vsel %vm1707_vm8, %v1699_v25, %v5156_v15  ;;  %v1733_v29 = vsel %vm1707_vm8, %v1700_v7, %v5157_v46  ;;  %v5127_v45 = vunpack.i.h.bf16 %v9940_v8  ;;  %v9949_v15 = vld [vmem:[#allocation68_spill] sm:$0xff]  ;;  %v9952_v33 = vld [vmem:[#allocation91_spill] sm:$0xff] }
 0x21a   : > { %4564 = vmatmul.msk.bf16.gmra.mxu0 %vm9753_vm12, %v1811_v24  ;;  %v5126_v26 = vunpack.i.l.bf16 %v9940_v8  ;;  %v1765_v61 = vsel %vm1740_vm10, %v1732_v51, %v5236_v38  ;;  %v1766_v34 = vsel %vm1740_vm10, %v1733_v29, %v5237_v40  ;;  %v5207_v0 = vunpack.i.h.bf16 %v9941_v48  ;;  %v9945_v24 = vld [vmem:[#allocation33_spill] sm:$0xff]  ;;  %v9953_v8 = vld [vmem:[#allocation96_spill] sm:$0xff] }
 0x21b   : > { %v5206_v41 = vunpack.i.l.bf16 %v9941_v48  ;;  %v1798_v17 = vsel %vm1773_vm11, %v1765_v61, %v5316_v56  ;;  %v1799_v62 = vsel %vm1773_vm11, %v1766_v34, %v5317_v37  ;;  %v1654_v28 = vsel %vm1641_vm7, %v1621_v32, %v4966_v1  ;;  %v9950_v40 = vld [vmem:[#allocation73_spill] sm:$0xff] }
 0x21c   : > { %v1655_v5 = vsel %vm1641_vm7, %v1622_v20, %v4967_v27  ;;  %v5287_v59 = vunpack.i.h.bf16 %v7278_v39  ;;  %v5286_v58 = vunpack.i.l.bf16 %v7278_v39  ;;  %v4762_v42 = vunpack.i.h.bf16 %v9942_v63 }
 0x21d   : > { %v4761_v10 = vunpack.i.l.bf16 %v9942_v63  ;;  %v1687_v53 = vsel %vm1674_vm9, %v1654_v28, %v5046_v54  ;;  %v1688_v43 = vsel %vm1674_vm9, %v1655_v5, %v5047_v22  ;;  %v4812_v49 = vunpack.i.h.bf16 %v9943_v35 }
 0x21e   : > { %v1720_v21 = vsel %vm1707_vm8, %v1687_v53, %v5126_v26  ;;  %v1721_v19 = vsel %vm1707_vm8, %v1688_v43, %v5127_v45  ;;  %v1818_v6 = vpack.c.bf16 %v1799_v62, %v1798_v17  ;;  %v1557_v39 = vsel %vm1542_vm4, %v9944_v14, %v4731_v55  ;;  %v9947_v55 = vld [vmem:[#allocation37_spill] sm:$0xff]  ;;  %v9956_v53 = vld [vmem:[#allocation86_spill] sm:$0xff] }
 0x21f   : > { %v4811_v60 = vunpack.i.l.bf16 %v9943_v35  ;;  %v1753_v2 = vsel %vm1740_vm10, %v1720_v21, %v5206_v41  ;;  %v1754_v31 = vsel %vm1740_vm10, %v1721_v19, %v5207_v0  ;;  %v4842_v32 = vunpack.i.h.bf16 %v9945_v24  ;;  %v9954_v41 = vld [vmem:[#allocation71_spill] sm:$0xff]  ;;  %v9957_v19 = vld [vmem:[#allocation93_spill] sm:$0xff] }
 0x220   : > { %v4841_v20 = vunpack.i.l.bf16 %v9945_v24  ;;  %v1786_v3 = vsel %vm1773_vm11, %v1753_v2, %v5286_v58  ;;  %v1787_v13 = vsel %vm1773_vm11, %v1754_v31, %v5287_v59  ;;  %v1570_v9 = vsel %vm1542_vm4, %v9946_v4, %v4762_v42  ;;  %v9955_v59 = vld [vmem:[#allocation75_spill] sm:$0xff] }
 0x221   : > { %v1569_v57 = vsel %vm1542_vm4, %v9947_v55, %v4761_v10  ;;  %v4892_v44 = vunpack.i.h.bf16 %v9948_v47  ;;  %v4891_v11 = vunpack.i.l.bf16 %v9948_v47  ;;  %v1591_v46 = vsel %vm1575_vm6, %v7454_v52, %v4812_v49  ;;  %v5320_v52 = vpop.permute.xlu2 %5319  ;;  %v9958_v47 = vld [vmem:[#allocation49_spill] sm:$0xff] }
 0x222   : > { %v4922_v12 = vunpack.i.h.bf16 %v9949_v15  ;;  %v4921_v30 = vunpack.i.l.bf16 %v9949_v15  ;;  %v1590_v16 = vsel %vm1575_vm6, %v1557_v39, %v4811_v60  ;;  %v5002_v38 = vunpack.i.h.bf16 %v9950_v40  ;;  %v9959_v15 = vld [vmem:[#allocation62_spill] sm:$0xff] }
 0x223   : > { %v5001_v18 = vunpack.i.l.bf16 %v9950_v40  ;;  %v1812_v36 = vpack.c.bf16 %v1787_v13, %v1786_v3  ;;  %v1603_v37 = vsel %vm1575_vm6, %v1570_v9, %v4842_v32  ;;  %v1602_v56 = vsel %vm1575_vm6, %v1569_v57, %v4841_v20 }
 0x224   : > { %v5082_v27 = vunpack.i.h.bf16 %v9951_v50  ;;  %v5081_v1 = vunpack.i.l.bf16 %v9951_v50  ;;  %v1624_v25 = vsel %vm1608_vm5, %v1591_v46, %v4892_v44  ;;  %v1623_v7 = vsel %vm1608_vm5, %v1590_v16, %v4891_v11  ;;  %v9960_v16 = vld [vmem:[#allocation67_spill] sm:$0xff] }
 0x225   : > { %4571 = vmatmul.msk.bf16.gmra.mxu2 %vm9753_vm12, %v1818_v6  ;;  %v5162_v22 = vunpack.i.h.bf16 %v9952_v33  ;;  %v5161_v54 = vunpack.i.l.bf16 %v9952_v33  ;;  %v1636_v51 = vsel %vm1608_vm5, %v1603_v37, %v4922_v12  ;;  %v1635_v29 = vsel %vm1608_vm5, %v1602_v56, %v4921_v30  ;;  %v9962_v50 = vld [vmem:[#allocation35_spill] sm:$0xff] }
 0x226   : > { %v5242_v45 = vunpack.i.h.bf16 %v9953_v8  ;;  %v5241_v26 = vunpack.i.l.bf16 %v9953_v8  ;;  %v1668_v61 = vsel %vm1641_vm7, %v1635_v29, %v5001_v18  ;;  %v1669_v34 = vsel %vm1641_vm7, %v1636_v51, %v5002_v38  ;;  %v9961_v18 = vld [vmem:[#allocation70_spill] sm:$0xff] }
 0x227   : > { %v5322_v48 = vunpack.i.h.bf16 %v5320_v52  ;;  %v5321_v0 = vunpack.i.l.bf16 %v5320_v52  ;;  %v4972_v17 = vunpack.i.h.bf16 %v9954_v41  ;;  %v4971_v62 = vunpack.i.l.bf16 %v9954_v41  ;;  %v9965_v29 = vld [vmem:[#allocation90_spill] sm:$0xff] }
 0x228   : > { %v1701_v28 = vsel %vm1674_vm9, %v1668_v61, %v5081_v1  ;;  %v1702_v5 = vsel %vm1674_vm9, %v1669_v34, %v5082_v27  ;;  %v5052_v58 = vunpack.i.h.bf16 %v9955_v59  ;;  %v5051_v63 = vunpack.i.l.bf16 %v9955_v59  ;;  %v9963_v1 = vld [vmem:[#allocation34_spill] sm:$0xff] }
 0x229   : > { %v1734_v42 = vsel %vm1707_vm8, %v1701_v28, %v5161_v54  ;;  %v1735_v10 = vsel %vm1707_vm8, %v1702_v5, %v5162_v22  ;;  %v5132_v43 = vunpack.i.h.bf16 %v9956_v53  ;;  %v5131_v35 = vunpack.i.l.bf16 %v9956_v53  ;;  %v5325_v22 = vpop.permute.xlu0 %5324  ;;  %v9966_v34 = vld [vmem:[#allocation98_spill] sm:$0xff] }
 0x22a   : > { %4565 = vmatmul.msk.bf16.gmra.mxu0 %vm9753_vm12, %v1812_v36  ;;  %v1767_v49 = vsel %vm1740_vm10, %v1734_v42, %v5241_v26  ;;  %v1768_v21 = vsel %vm1740_vm10, %v1735_v10, %v5242_v45  ;;  %v5212_v6 = vunpack.i.h.bf16 %v9957_v19  ;;  %v5211_v14 = vunpack.i.l.bf16 %v9957_v19  ;;  %v7685_v19 = vld [vmem:[%s9566_s2] ss:$0 sm:$0xff] }
 0x22b   : > { %v1800_v39 = vsel %vm1773_vm11, %v1767_v49, %v5321_v0  ;;  %v1801_v60 = vsel %vm1773_vm11, %v1768_v21, %v5322_v48  ;;  %v1656_v2 = vsel %vm1641_vm7, %v1623_v7, %v4971_v62  ;;  %v1657_v31 = vsel %vm1641_vm7, %v1624_v25, %v4972_v17  ;;  %v9964_v25 = vld [vmem:[#allocation83_spill] sm:$0xff]  ;;  %v9967_v49 = vld [vmem:[#allocation30_spill] sm:$0xff] }
 0x22c   : > { %v5292_v24 = vunpack.i.h.bf16 %v7352_v23  ;;  %v5291_v32 = vunpack.i.l.bf16 %v7352_v23  ;;  %v1689_v20 = vsel %vm1674_vm9, %v1656_v2, %v5051_v63  ;;  %v1690_v3 = vsel %vm1674_vm9, %v1657_v31, %v5052_v58  ;;  %v9969_v2 = vld [vmem:[#allocation64_spill] sm:$0xff] }
 0x22d   : > { %v1722_v13 = vsel %vm1707_vm8, %v1689_v20, %v5131_v35  ;;  %v1723_v4 = vsel %vm1707_vm8, %v1690_v3, %v5132_v43  ;;  %v1819_v9 = vpack.c.bf16 %v1801_v60, %v1800_v39  ;;  %v4767_v44 = vunpack.i.h.bf16 %v9958_v47  ;;  %v9970_v20 = vld [vmem:[#allocation43_spill] sm:$0xff] }
 0x22e   : > { %v1755_v55 = vsel %vm1740_vm10, %v1722_v13, %v5211_v14  ;;  %v1756_v57 = vsel %vm1740_vm10, %v1723_v4, %v5212_v6  ;;  %v4766_v11 = vunpack.i.l.bf16 %v9958_v47  ;;  %v4847_v12 = vunpack.i.h.bf16 %v9959_v15  ;;  %v9968_v14 = vld [vmem:[#allocation61_spill] sm:$0xff]  ;;  %v9971_v13 = vld [vmem:[#allocation76_spill] sm:$0xff] }
 0x22f   : > { %v1788_v23 = vsel %vm1773_vm11, %v1755_v55, %v5291_v32  ;;  %v1789_v46 = vsel %vm1773_vm11, %v1756_v57, %v5292_v24  ;;  %v4846_v30 = vunpack.i.l.bf16 %v9959_v15  ;;  %v4927_v40 = vunpack.i.h.bf16 %v9960_v16  ;;  %v9972_v57 = vld [vmem:[#allocation44_spill] sm:$0xff]  ;;  %v5330_v15 = vpop.permute.xlu1 %5329 }
 0x230   : > { %v4926_v38 = vunpack.i.l.bf16 %v9960_v16  ;;  %v5007_v36 = vunpack.i.h.bf16 %v9961_v18  ;;  %v5006_v37 = vunpack.i.l.bf16 %v9961_v18  ;;  %v1813_v56 = vpack.c.bf16 %v1789_v46, %v1788_v23 }
 0x231   : > { %v1572_v27 = vsel %vm1542_vm4, %v9962_v50, %v4767_v44  ;;  %v1571_v52 = vsel %vm1542_vm4, %v9963_v1, %v4766_v11  ;;  %v5087_v7 = vunpack.i.h.bf16 %v9964_v25  ;;  %v5086_v33 = vunpack.i.l.bf16 %v9964_v25  ;;  %v9973_v11 = vld [vmem:[#allocation82_spill] sm:$0xff] }
 0x232   : > { %v1605_v54 = vsel %vm1575_vm6, %v1572_v27, %v4847_v12  ;;  %v1604_v51 = vsel %vm1575_vm6, %v1571_v52, %v4846_v30  ;;  %v5167_v8 = vunpack.i.h.bf16 %v9965_v29  ;;  %v5166_v45 = vunpack.i.l.bf16 %v9965_v29  ;;  %v9974_v30 = vld [vmem:[#allocation89_spill] sm:$0xff] }
 0x233   : > { %v1637_v26 = vsel %vm1608_vm5, %v1604_v51, %v4926_v38  ;;  %v1638_v61 = vsel %vm1608_vm5, %v1605_v54, %v4927_v40  ;;  %v5247_v48 = vunpack.i.h.bf16 %v9966_v34  ;;  %v5246_v0 = vunpack.i.l.bf16 %v9966_v34 }
 0x234   : > { %v1670_v41 = vsel %vm1641_vm7, %v1637_v26, %v5006_v37  ;;  %v1671_v17 = vsel %vm1641_vm7, %v1638_v61, %v5007_v36  ;;  %v5327_v62 = vunpack.i.h.bf16 %v5325_v22  ;;  %v5326_v28 = vunpack.i.l.bf16 %v5325_v22  ;;  %v9975_v37 = vld [vmem:[#allocation99_spill] sm:$0xff] }
 0x235   : > { %4572 = vmatmul.msk.bf16.gmra.mxu2 %vm9753_vm12, %v1819_v9  ;;  %v1703_v5 = vsel %vm1674_vm9, %v1670_v41, %v5086_v33  ;;  %v1704_v59 = vsel %vm1674_vm9, %v1671_v17, %v5087_v7  ;;  %v4771_v21 = vunpack.i.l.bf16 %v9967_v49  ;;  %v4772_v6 = vunpack.i.h.bf16 %v9967_v49 }
 0x236   : > { %v1736_v58 = vsel %vm1707_vm8, %v1703_v5, %v5166_v45  ;;  %v1737_v63 = vsel %vm1707_vm8, %v1704_v59, %v5167_v8  ;;  %v4851_v39 = vunpack.i.l.bf16 %v9968_v14  ;;  %v4852_v60 = vunpack.i.h.bf16 %v9968_v14 }
 0x237   : > { %v1769_v42 = vsel %vm1740_vm10, %v1736_v58, %v5246_v0  ;;  %v1770_v10 = vsel %vm1740_vm10, %v1737_v63, %v5247_v48  ;;  %v4932_v31 = vunpack.i.h.bf16 %v9969_v2  ;;  %v4931_v24 = vunpack.i.l.bf16 %v9969_v2 }
 0x238   : > { %v1802_v53 = vsel %vm1773_vm11, %v1769_v42, %v5326_v28  ;;  %v1803_v43 = vsel %vm1773_vm11, %v1770_v10, %v5327_v62  ;;  %v1573_v3 = vsel %vm1542_vm4, %v9970_v20, %v4771_v21  ;;  %v5012_v4 = vunpack.i.h.bf16 %v9971_v13 }
 0x239   : > { %v1820_v35 = vpack.c.bf16 %v1803_v43, %v1802_v53  ;;  %v5011_v9 = vunpack.i.l.bf16 %v9971_v13  ;;  %v1574_v47 = vsel %vm1542_vm4, %v9972_v57, %v4772_v6  ;;  %v1606_v44 = vsel %vm1575_vm6, %v1573_v3, %v4851_v39 }
 0x23a   : > { %4566 = vmatmul.msk.bf16.gmra.mxu0 %vm9753_vm12, %v1813_v56  ;;  %v5092_v23 = vunpack.i.h.bf16 %v9973_v11  ;;  %v5091_v46 = vunpack.i.l.bf16 %v9973_v11  ;;  %v1607_v12 = vsel %vm1575_vm6, %v1574_v47, %v4852_v60  ;;  %v5172_v16 = vunpack.i.h.bf16 %v9974_v30 }
 0x23b   : > { %v5171_v40 = vunpack.i.l.bf16 %v9974_v30  ;;  %v1639_v18 = vsel %vm1608_vm5, %v1606_v44, %v4931_v24  ;;  %v1640_v36 = vsel %vm1608_vm5, %v1607_v12, %v4932_v31  ;;  %v5252_v56 = vunpack.i.h.bf16 %v9975_v37 }
 0x23c   : > { %v5251_v50 = vunpack.i.l.bf16 %v9975_v37  ;;  %v1672_v27 = vsel %vm1641_vm7, %v1639_v18, %v5011_v9  ;;  %v1673_v1 = vsel %vm1641_vm7, %v1640_v36, %v5012_v4  ;;  %v5332_v52 = vunpack.i.h.bf16 %v5330_v15 }
 0x23d   : > { %v5331_v25 = vunpack.i.l.bf16 %v5330_v15  ;;  %v1705_v7 = vsel %vm1674_vm9, %v1672_v27, %v5091_v46  ;;  %v1706_v33 = vsel %vm1674_vm9, %v1673_v1, %v5092_v23 }
 0x23e   : > { %v1738_v22 = vsel %vm1707_vm8, %v1705_v7, %v5171_v40  ;;  %v1739_v54 = vsel %vm1707_vm8, %v1706_v33, %v5172_v16 }
 0x23f   : > { %v1771_v29 = vsel %vm1740_vm10, %v1738_v22, %v5251_v50  ;;  %v1772_v8 = vsel %vm1740_vm10, %v1739_v54, %v5252_v56 }
 0x240   : > { %v1804_v26 = vsel %vm1773_vm11, %v1771_v29, %v5331_v25  ;;  %v1805_v61 = vsel %vm1773_vm11, %v1772_v8, %v5332_v52 }
 0x241   : > { %v1821_v48 = vpack.c.bf16 %v1805_v61, %v1804_v26 }
 0x245   : > { %4573 = vmatmul.msk.bf16.gmra.mxu2 %vm9753_vm12, %v1820_v35 }
 0x247   : > { %v1902_v32 = vpop.f32.mrf.mxu0 }
 0x248   : > { %v1903_v55 = vadd.f32 %v7685_v19, %v1902_v32 }
 0x24a   : > { %v1982_v38 = vmax.f32 %v1903_v55, 0.0 }
 0x24c   : > { %2014 = vst.msk [vmem:[#allocation2] sm:$0xff] %vm1542_vm4, %v1982_v38 }
 0x24f   : > { %v1904_v51 = vpop.f32.mrf.mxu0 }
 0x250   : > { %v1905_v45 = vadd.f32 %v7685_v19, %v1904_v51 }
 0x252   : > { %v1983_v34 = vmax.f32 %v1905_v45, 0.0 }
 0x253   : > { %v2060_v0 = vld [vmem:[#allocation2] sm:$0xff] }
 0x254   : > { %2015 = vst.msk [vmem:[#allocation2 + $0x8] sm:$0xff] %vm1542_vm4, %v1983_v34  ;;  %v2115_v17 = vrot.slane %v2060_v0, 1  ;;  %v2171_v62 = vrot.slane %v2060_v0, 7 }
 0x255   : > { %4574 = vmatmul.msk.bf16.gmra.mxu2 %vm9753_vm12, %v1821_v48 }
 0x256   : > { %v7726_v58 = vsel %vm377_vm0, %v2115_v17, %v2171_v62 }
 0x257   : > { %v1907_v41 = vpop.f32.mrf.mxu0  ;;  %v2383_v43 = vrot.slane %v7726_v58, 1  ;;  %v2559_v35 = vrot.slane %v7726_v58, 2 }
 0x258   : > { %v1908_v28 = vadd.f32 %v7685_v19, %v1907_v41 }
 0x25a   : > { %v1984_v5 = vmax.f32 %v1908_v28, 0.0 }
 0x25b   : > { %v2061_v59 = vld [vmem:[#allocation2 + $0x8] sm:$0xff] }
 0x25c   : > { %2016 = vst.msk [vmem:[#allocation2 + $0x10] sm:$0xff] %vm1542_vm4, %v1984_v5  ;;  %v2172_v63 = vrot.slane %v2061_v59, 7  ;;  %v2275_v42 = vrot.slane %v2061_v59, 5 }
 0x25e   : > { %v7730_v10 = vsel %vm377_vm0, %v2171_v62, %v2172_v63  ;;  %v2329_v53 = vsel %vm377_vm0, %v2172_v63, %v2275_v42 }
 0x25f   : > { %v1909_v49 = vpop.f32.mrf.mxu0  ;;  %v2384_v21 = vrot.slane %v7730_v10, 1  ;;  %v2386_v6 = vrot.slane %v2329_v53, 1  ;;  %v2560_v14 = vrot.slane %v7730_v10, 2  ;;  %v2562_v39 = vrot.slane %v2329_v53, 2 }
 0x260   : > { %v1910_v60 = vadd.f32 %v7685_v19, %v1909_v49 }
 0x261   : > { %v2385_v2 = vsel %vm588_vm1, %v2383_v43, %v2384_v21  ;;  %v2387_v31 = vsel %vm588_vm1, %v2384_v21, %v2386_v6  ;;  %v2561_v24 = vsel %vm765_vm2, %v2559_v35, %v2560_v14  ;;  %v2563_v32 = vsel %vm765_vm2, %v2560_v14, %v2562_v39 }
 0x262   : > { %v1985_v20 = vmax.f32 %v1910_v60, 0.0  ;;  %v7742_v3 = vpack.i.bf16 %v2387_v31, %v2385_v2  ;;  %v7744_v13 = vpack.i.bf16 %v2563_v32, %v2561_v24 }
 0x263   : > { %v2062_v4 = vld [vmem:[#allocation2 + $0x10] sm:$0xff] }
 0x264   : > { %9976 = vst [vmem:[#allocation8_spill] sm:$0xff] %v7744_v13  ;;  %5339 = vrot.lane.b32.xlu0 %v7742_v3, %s6056_s12  ;;  %v2116_v55 = vrot.slane %v2062_v4, 1  ;;  %v2174_v57 = vrot.slane %v2062_v4, 7 }
 0x265   : > { %2017 = vst.msk [vmem:[#allocation2 + $0x18] sm:$0xff] %vm1542_vm4, %v1985_v20 }
 0x266   : > { %v7752_v12 = vsel %vm377_vm0, %v2116_v55, %v2174_v57 }
 0x267   : > { %v1912_v9 = vpop.f32.mrf.mxu0  ;;  %v2388_v18 = vrot.slane %v7752_v12, 1  ;;  %v2564_v36 = vrot.slane %v7752_v12, 2 }
 0x268   : > { %v1942_v47 = vpop.f32.mrf.mxu2  ;;  %v1913_v44 = vadd.f32 %v7685_v19, %v1912_v9 }
 0x269   : > { %v1943_v11 = vadd.f32 %v7685_v19, %v1942_v47 }
 0x26a   : > { %v1986_v23 = vmax.f32 %v1913_v44, 0.0 }
 0x26b   : > { %v1998_v46 = vmax.f32 %v1943_v11, 0.0 }
 0x26c   : > { %v2063_v15 = vld [vmem:[#allocation2 + $0x18] sm:$0xff]  ;;  %2018 = vst.msk [vmem:[#allocation2 + $0x20] sm:$0xff] %vm1542_vm4, %v1986_v23 }
 0x26d   : > { %v2175_v30 = vrot.slane %v2063_v15, 7  ;;  %v2276_v16 = vrot.slane %v2063_v15, 5  ;;  %2030 = vst.msk [vmem:[#allocation2 + $0x80] sm:$0xff] %vm1542_vm4, %v1998_v46 }
 0x26f   : > { %v7757_v40 = vsel %vm377_vm0, %v2174_v57, %v2175_v30  ;;  %v2330_v38 = vsel %vm377_vm0, %v2175_v30, %v2276_v16  ;;  %v1914_v37 = vpop.f32.mrf.mxu0 }
 0x270   : > { %v2389_v56 = vrot.slane %v7757_v40, 1  ;;  %v2391_v50 = vrot.slane %v2330_v38, 1  ;;  %v2565_v27 = vrot.slane %v7757_v40, 2  ;;  %v2567_v1 = vrot.slane %v2330_v38, 2  ;;  %v1944_v52 = vpop.f32.mrf.mxu2 }
 0x271   : > { %v1915_v25 = vadd.f32 %v7685_v19, %v1914_v37  ;;  %v1945_v7 = vadd.f32 %v7685_v19, %v1944_v52 }
 0x272   : > { %v2390_v33 = vsel %vm588_vm1, %v2388_v18, %v2389_v56  ;;  %v2392_v22 = vsel %vm588_vm1, %v2389_v56, %v2391_v50  ;;  %v2566_v54 = vsel %vm765_vm2, %v2564_v36, %v2565_v27  ;;  %v2568_v8 = vsel %vm765_vm2, %v2565_v27, %v2567_v1 }
 0x273   : > { %v1987_v51 = vmax.f32 %v1915_v25, 0.0  ;;  %v7769_v29 = vpack.i.bf16 %v2392_v22, %v2390_v33  ;;  %v1999_v45 = vmax.f32 %v1945_v7, 0.0  ;;  %v7772_v26 = vpack.i.bf16 %v2568_v8, %v2566_v54  ;;  %v2064_v61 = vld [vmem:[#allocation2 + $0x20] sm:$0xff] }
 0x274   : > { %v2076_v34 = vld [vmem:[#allocation2 + $0x80] sm:$0xff]  ;;  %v2117_v17 = vrot.slane %v2064_v61, 1  ;;  %v2177_v62 = vrot.slane %v2064_v61, 7 }
 0x275   : > { %9977 = vst [vmem:[#allocation7_spill] sm:$0xff] %v7769_v29  ;;  %5344 = vrot.lane.b32.xlu1 %v7769_v29, %s6056_s12  ;;  %5334 = vrot.lane.b32.xlu2 %v7769_v29, %s6056_s12  ;;  %v2123_v5 = vrot.slane %v2076_v34, 1  ;;  %v2195_v59 = vrot.slane %v2076_v34, 7 }
 0x276   : > { %9978 = vst [vmem:[#allocation51_spill] sm:$0xff] %v7772_v26  ;;  %v7784_v49 = vsel %vm377_vm0, %v2117_v17, %v2177_v62 }
 0x277   : > { %2019 = vst.msk [vmem:[#allocation2 + $0x28] sm:$0xff] %vm1542_vm4, %v1987_v51  ;;  %v1917_v48 = vpop.f32.mrf.mxu0  ;;  %v7788_v39 = vsel %vm377_vm0, %v2123_v5, %v2195_v59  ;;  %v2393_v24 = vrot.slane %v7784_v49, 1  ;;  %v2569_v1 = vrot.slane %v7784_v49, 2 }
 0x278   : > { %2031 = vst.msk [vmem:[#allocation2 + $0x88] sm:$0xff] %vm1542_vm4, %v1999_v45  ;;  %v1947_v0 = vpop.f32.mrf.mxu2  ;;  %v1918_v41 = vadd.f32 %v7685_v19, %v1917_v48  ;;  %v2423_v47 = vrot.slane %v7788_v39, 1  ;;  %v2599_v52 = vrot.slane %v7788_v39, 2 }
 0x279   : > { %v1948_v28 = vadd.f32 %v7685_v19, %v1947_v0  ;;  %9979 = vst [vmem:[#allocation45_spill] sm:$0xff] %v7784_v49 }
 0x27a   : > { %v1988_v63 = vmax.f32 %v1918_v41, 0.0  ;;  %9980 = vst [vmem:[#allocation47_spill] sm:$0xff] %v7788_v39 }
 0x27b   : > { %v2000_v42 = vmax.f32 %v1948_v28, 0.0 }
 0x27c   : > { %2020 = vst.msk [vmem:[#allocation2 + $0x30] sm:$0xff] %vm1542_vm4, %v1988_v63 }
 0x27d   : > { %2032 = vst.msk [vmem:[#allocation2 + $0x90] sm:$0xff] %vm1542_vm4, %v2000_v42 }
 0x27e   : > { %v2065_v53 = vld [vmem:[#allocation2 + $0x28] sm:$0xff] }
 0x27f   : > { %v2178_v43 = vrot.slane %v2065_v53, 7  ;;  %v2277_v35 = vrot.slane %v2065_v53, 5  ;;  %v2077_v21 = vld [vmem:[#allocation2 + $0x88] sm:$0xff]  ;;  %v1919_v31 = vpop.f32.mrf.mxu0 }
 0x280   : > { %v2196_v6 = vrot.slane %v2077_v21, 7  ;;  %v2283_v14 = vrot.slane %v2077_v21, 5  ;;  %v1949_v9 = vpop.f32.mrf.mxu2  ;;  %v1920_v55 = vadd.f32 %v7685_v19, %v1919_v31 }
 0x281   : > { %v7791_v60 = vsel %vm377_vm0, %v2177_v62, %v2178_v43  ;;  %v2331_v2 = vsel %vm377_vm0, %v2178_v43, %v2277_v35  ;;  %v1950_v11 = vadd.f32 %v7685_v19, %v1949_v9 }
 0x282   : > { %9981 = vst [vmem:[#allocation14_spill] sm:$0xff] %v7791_v60  ;;  %v2394_v32 = vrot.slane %v7791_v60, 1  ;;  %v2396_v20 = vrot.slane %v2331_v2, 1  ;;  %v7797_v4 = vsel %vm377_vm0, %v2195_v59, %v2196_v6  ;;  %v2337_v57 = vsel %vm377_vm0, %v2196_v6, %v2283_v14 }
 0x283   : > { %9982 = vst [vmem:[#allocation13_spill] sm:$0xff] %v7797_v4  ;;  %v2424_v44 = vrot.slane %v7797_v4, 1  ;;  %v2426_v15 = vrot.slane %v2337_v57, 1  ;;  %v1989_v30 = vmax.f32 %v1920_v55, 0.0  ;;  %v2572_v16 = vrot.slane %v2331_v2, 2  ;;  %v2066_v27 = vld [vmem:[#allocation2 + $0x30] sm:$0xff] }
 0x284   : > { %v2395_v23 = vsel %vm588_vm1, %v2393_v24, %v2394_v32  ;;  %v2397_v46 = vsel %vm588_vm1, %v2394_v32, %v2396_v20  ;;  %v2570_v18 = vrot.slane %v7791_v60, 2  ;;  %v2001_v36 = vmax.f32 %v1950_v11, 0.0  ;;  %v2078_v41 = vld [vmem:[#allocation2 + $0x90] sm:$0xff] }
 0x285   : > { %v7806_v38 = vpack.i.bf16 %v2397_v46, %v2395_v23  ;;  %v2425_v37 = vsel %vm588_vm1, %v2423_v47, %v2424_v44  ;;  %v2427_v56 = vsel %vm588_vm1, %v2424_v44, %v2426_v15  ;;  %2021 = vst.msk [vmem:[#allocation2 + $0x38] sm:$0xff] %vm1542_vm4, %v1989_v30  ;;  %v2602_v50 = vrot.slane %v2337_v57, 2 }
 0x286   : > { %2033 = vst.msk [vmem:[#allocation2 + $0x98] sm:$0xff] %vm1542_vm4, %v2001_v36  ;;  %v2600_v25 = vrot.slane %v7797_v4, 2  ;;  %v2571_v7 = vsel %vm765_vm2, %v2569_v1, %v2570_v18  ;;  %v2573_v33 = vsel %vm765_vm2, %v2570_v18, %v2572_v16  ;;  %v7820_v22 = vpack.i.bf16 %v2427_v56, %v2425_v37 }
 0x287   : > { %9983 = vst [vmem:[#allocation17_spill] sm:$0xff] %v7806_v38  ;;  %5349 = vrot.lane.b32.xlu2 %v7806_v38, %s6056_s12  ;;  %v1922_v54 = vpop.f32.mrf.mxu0  ;;  %v2118_v51 = vrot.slane %v2066_v27, 1  ;;  %v2180_v8 = vrot.slane %v2066_v27, 7  ;;  %v7826_v17 = vpack.i.bf16 %v2573_v33, %v2571_v7  ;;  %v2124_v35 = vrot.slane %v2078_v41, 1 }
 0x288   : > { %9984 = vst [vmem:[#allocation16_spill] sm:$0xff] %v7820_v22  ;;  %v2601_v45 = vsel %vm765_vm2, %v2599_v52, %v2600_v25  ;;  %v1952_v61 = vpop.f32.mrf.mxu2  ;;  %v1923_v34 = vadd.f32 %v7685_v19, %v1922_v54  ;;  %v2603_v48 = vsel %vm765_vm2, %v2600_v25, %v2602_v50  ;;  %v2198_v21 = vrot.slane %v2078_v41, 7 }
 0x289   : > { %v1953_v0 = vadd.f32 %v7685_v19, %v1952_v61  ;;  %v7828_v62 = vpack.i.bf16 %v2603_v48, %v2601_v45  ;;  %v7831_v63 = vsel %vm377_vm0, %v2118_v51, %v2180_v8 }
 0x28a   : > { %v1990_v28 = vmax.f32 %v1923_v34, 0.0  ;;  %v2398_v24 = vrot.slane %v7831_v63, 1  ;;  %v7849_v11 = vsel %vm377_vm0, %v2124_v35, %v2198_v21  ;;  %v2574_v52 = vrot.slane %v7831_v63, 2 }
 0x28b   : > { %9985 = vst [vmem:[#allocation46_spill] sm:$0xff] %v7828_v62  ;;  %v2002_v5 = vmax.f32 %v1953_v0, 0.0  ;;  %v2428_v27 = vrot.slane %v7849_v11, 1  ;;  %v2604_v7 = vrot.slane %v7849_v11, 2 }
 0x28c   : > { %v2067_v59 = vld [vmem:[#allocation2 + $0x38] sm:$0xff]  ;;  %2022 = vst.msk [vmem:[#allocation2 + $0x40] sm:$0xff] %vm1542_vm4, %v1990_v28 }
 0x28d   : > { %v2181_v42 = vrot.slane %v2067_v59, 7  ;;  %v2278_v53 = vrot.slane %v2067_v59, 5  ;;  %v2079_v43 = vld [vmem:[#allocation2 + $0x98] sm:$0xff]  ;;  %2034 = vst.msk [vmem:[#allocation2 + $0xa0] sm:$0xff] %vm1542_vm4, %v2002_v5 }
 0x28e   : > { %v2199_v6 = vrot.slane %v2079_v43, 7  ;;  %v2284_v14 = vrot.slane %v2079_v43, 5 }
 0x28f   : > { %5359 = vrot.lane.b32.xlu2 %v7820_v22, %s6056_s12  ;;  %v7838_v2 = vsel %vm377_vm0, %v2180_v8, %v2181_v42  ;;  %v2332_v31 = vsel %vm377_vm0, %v2181_v42, %v2278_v53  ;;  %v1924_v32 = vpop.f32.mrf.mxu0 }
 0x290   : > { %v2399_v20 = vrot.slane %v7838_v2, 1  ;;  %v2401_v9 = vrot.slane %v2332_v31, 1  ;;  %v7844_v55 = vsel %vm377_vm0, %v2198_v21, %v2199_v6  ;;  %v2338_v57 = vsel %vm377_vm0, %v2199_v6, %v2284_v14  ;;  %v1954_v47 = vpop.f32.mrf.mxu2 }
 0x291   : > { %v1925_v44 = vadd.f32 %v7685_v19, %v1924_v32  ;;  %v2429_v23 = vrot.slane %v7844_v55, 1  ;;  %v2431_v46 = vrot.slane %v2338_v57, 1  ;;  %v1955_v15 = vadd.f32 %v7685_v19, %v1954_v47 }
 0x292   : > { %v2400_v30 = vsel %vm588_vm1, %v2398_v24, %v2399_v20  ;;  %v2402_v16 = vsel %vm588_vm1, %v2399_v20, %v2401_v9  ;;  %v2575_v18 = vrot.slane %v7838_v2, 2  ;;  %v2607_v56 = vrot.slane %v2338_v57, 2 }
 0x293   : > { %v1991_v36 = vmax.f32 %v1925_v44, 0.0  ;;  %v7856_v37 = vpack.i.bf16 %v2402_v16, %v2400_v30  ;;  %v2003_v50 = vmax.f32 %v1955_v15, 0.0  ;;  %v2068_v1 = vld [vmem:[#allocation2 + $0x40] sm:$0xff]  ;;  %v2577_v25 = vrot.slane %v2332_v31, 2 }
 0x294   : > { %v2605_v33 = vrot.slane %v7844_v55, 2  ;;  %v2430_v54 = vsel %vm588_vm1, %v2428_v27, %v2429_v23  ;;  %v2432_v51 = vsel %vm588_vm1, %v2429_v23, %v2431_v46  ;;  %v2119_v8 = vrot.slane %v2068_v1, 1  ;;  %v2080_v42 = vld [vmem:[#allocation2 + $0xa0] sm:$0xff] }
 0x295   : > { %9986 = vst [vmem:[#allocation48_spill] sm:$0xff] %v7856_v37  ;;  %5354 = vrot.lane.b32.xlu0 %v7856_v37, %s6056_s12  ;;  %v2576_v45 = vsel %vm765_vm2, %v2574_v52, %v2575_v18  ;;  %v2183_v61 = vrot.slane %v2068_v1, 7  ;;  %v2578_v34 = vsel %vm765_vm2, %v2575_v18, %v2577_v25  ;;  %v7874_v53 = vpack.i.bf16 %v2432_v51, %v2430_v54 }
 0x296   : > { %2023 = vst.msk [vmem:[#allocation2 + $0x48] sm:$0xff] %vm1542_vm4, %v1991_v36  ;;  %v2606_v48 = vsel %vm765_vm2, %v2604_v7, %v2605_v33  ;;  %v2608_v0 = vsel %vm765_vm2, %v2605_v33, %v2607_v56  ;;  %v7876_v43 = vpack.i.bf16 %v2578_v34, %v2576_v45  ;;  %v2125_v9 = vrot.slane %v2080_v42, 1 }
 0x297   : > { %2035 = vst.msk [vmem:[#allocation2 + $0xa8] sm:$0xff] %vm1542_vm4, %v2003_v50  ;;  %v1927_v41 = vpop.f32.mrf.mxu0  ;;  %v7878_v35 = vpack.i.bf16 %v2608_v0, %v2606_v48  ;;  %v7881_v6 = vsel %vm377_vm0, %v2119_v8, %v2183_v61  ;;  %v2201_v57 = vrot.slane %v2080_v42, 7 }
 0x298   : > { %v1957_v28 = vpop.f32.mrf.mxu2  ;;  %v1928_v5 = vadd.f32 %v7685_v19, %v1927_v41  ;;  %9987 = vst [vmem:[#allocation42_spill] sm:$0xff] %v7874_v53  ;;  %v2403_v15 = vrot.slane %v7881_v6, 1 }
 0x299   : > { %v1958_v59 = vadd.f32 %v7685_v19, %v1957_v28  ;;  %v7899_v1 = vsel %vm377_vm0, %v2125_v9, %v2201_v57  ;;  %v2579_v28 = vrot.slane %v7881_v6, 2 }
 0x29a   : > { %v1992_v21 = vmax.f32 %v1928_v5, 0.0  ;;  %9989 = vst [vmem:[#allocation56_spill] sm:$0xff] %v7899_v1  ;;  %v2433_v48 = vrot.slane %v7899_v1, 1  ;;  %v2609_v5 = vrot.slane %v7899_v1, 2 }
 0x29b   : > { %v2004_v14 = vmax.f32 %v1958_v59, 0.0 }
 0x29c   : > { %2024 = vst.msk [vmem:[#allocation2 + $0x50] sm:$0xff] %vm1542_vm4, %v1992_v21 }
 0x29d   : > { %v2069_v31 = vld [vmem:[#allocation2 + $0x48] sm:$0xff]  ;;  %5364 = vrot.lane.b32.xlu0 %v7874_v53, %s6056_s12  ;;  %2036 = vst.msk [vmem:[#allocation2 + $0xb0] sm:$0xff] %vm1542_vm4, %v2004_v14 }
 0x29e   : > { %v2184_v24 = vrot.slane %v2069_v31, 7  ;;  %v2279_v32 = vrot.slane %v2069_v31, 5  ;;  %v2081_v20 = vld [vmem:[#allocation2 + $0xa8] sm:$0xff] }
 0x29f   : > { %v2202_v47 = vrot.slane %v2081_v20, 7  ;;  %v2285_v44 = vrot.slane %v2081_v20, 5  ;;  %v1929_v30 = vpop.f32.mrf.mxu0 }
 0x2a0   : > { %v7888_v23 = vsel %vm377_vm0, %v2183_v61, %v2184_v24  ;;  %v2333_v46 = vsel %vm377_vm0, %v2184_v24, %v2279_v32  ;;  %v1959_v50 = vpop.f32.mrf.mxu2  ;;  %v1930_v27 = vadd.f32 %v7685_v19, %v1929_v30 }
 0x2a1   : > { %v2404_v16 = vrot.slane %v7888_v23, 1  ;;  %v2406_v18 = vrot.slane %v2333_v46, 1  ;;  %v7894_v36 = vsel %vm377_vm0, %v2201_v57, %v2202_v47  ;;  %v2339_v56 = vsel %vm377_vm0, %v2202_v47, %v2285_v44 }
 0x2a2   : > { %9988 = vst [vmem:[#allocation12_spill] sm:$0xff] %v7894_v36  ;;  %v2434_v52 = vrot.slane %v7894_v36, 1  ;;  %v1960_v25 = vadd.f32 %v7685_v19, %v1959_v50  ;;  %v2436_v54 = vrot.slane %v2339_v56, 1  ;;  %v1993_v51 = vmax.f32 %v1930_v27, 0.0 }
 0x2a3   : > { %v2405_v7 = vsel %vm588_vm1, %v2403_v15, %v2404_v16  ;;  %v2407_v33 = vsel %vm588_vm1, %v2404_v16, %v2406_v18  ;;  %v2612_v45 = vrot.slane %v2339_v56, 2  ;;  %v2580_v61 = vrot.slane %v7888_v23, 2  ;;  %v2070_v41 = vld [vmem:[#allocation2 + $0x50] sm:$0xff] }
 0x2a4   : > { %v7905_v8 = vpack.i.bf16 %v2407_v33, %v2405_v7  ;;  %v2005_v34 = vmax.f32 %v1960_v25, 0.0  ;;  %v2582_v0 = vrot.slane %v2333_v46, 2  ;;  %2025 = vst.msk [vmem:[#allocation2 + $0x58] sm:$0xff] %vm1542_vm4, %v1993_v51  ;;  %v2610_v59 = vrot.slane %v7894_v36, 2  ;;  %v2082_v14 = vld [vmem:[#allocation2 + $0xb0] sm:$0xff] }
 0x2a5   : > { %v2435_v42 = vsel %vm588_vm1, %v2433_v48, %v2434_v52  ;;  %v2437_v21 = vsel %vm588_vm1, %v2434_v52, %v2436_v54  ;;  %v2581_v31 = vsel %vm765_vm2, %v2579_v28, %v2580_v61  ;;  %v2120_v57 = vrot.slane %v2070_v41, 1 }
 0x2a6   : > { %9990 = vst [vmem:[#allocation39_spill] sm:$0xff] %v7905_v8  ;;  %5369 = vrot.lane.b32.xlu1 %v7905_v8, %s6056_s12  ;;  %v2583_v24 = vsel %vm765_vm2, %v2580_v61, %v2582_v0  ;;  %v2611_v32 = vsel %vm765_vm2, %v2609_v5, %v2610_v59  ;;  %v2613_v20 = vsel %vm765_vm2, %v2610_v59, %v2612_v45  ;;  %v2186_v47 = vrot.slane %v2070_v41, 7 }
 0x2a7   : > { %2037 = vst.msk [vmem:[#allocation2 + $0xb8] sm:$0xff] %vm1542_vm4, %v2005_v34  ;;  %v1932_v9 = vpop.f32.mrf.mxu0  ;;  %v2126_v15 = vrot.slane %v2082_v14, 1  ;;  %v2204_v30 = vrot.slane %v2082_v14, 7  ;;  %v7924_v18 = vpack.i.bf16 %v2437_v21, %v2435_v42  ;;  %v7926_v56 = vpack.i.bf16 %v2583_v24, %v2581_v31 }
 0x2a8   : > { %v1962_v44 = vpop.f32.mrf.mxu2  ;;  %v1933_v46 = vadd.f32 %v7685_v19, %v1932_v9  ;;  %v7928_v50 = vpack.i.bf16 %v2613_v20, %v2611_v32  ;;  %v7934_v51 = vsel %vm377_vm0, %v2120_v57, %v2186_v47 }
 0x2a9   : > { %v1963_v16 = vadd.f32 %v7685_v19, %v1962_v44  ;;  %9991 = vst [vmem:[#allocation11_spill] sm:$0xff] %v7924_v18  ;;  %v7938_v34 = vsel %vm377_vm0, %v2126_v15, %v2204_v30  ;;  %v2408_v59 = vrot.slane %v7934_v51, 1 }
 0x2aa   : > { %9992 = vst [vmem:[#allocation54_spill] sm:$0xff] %v7926_v56  ;;  %v1994_v27 = vmax.f32 %v1933_v46, 0.0  ;;  %v2438_v14 = vrot.slane %v7938_v34, 1 }
 0x2ab   : > { %v2006_v52 = vmax.f32 %v1963_v16, 0.0  ;;  %v2071_v25 = vld [vmem:[#allocation2 + $0x58] sm:$0xff]  ;;  %9993 = vst [vmem:[#allocation10_spill] sm:$0xff] %v7938_v34 }
 0x2ac   : > { %2026 = vst.msk [vmem:[#allocation2 + $0x60] sm:$0xff] %vm1542_vm4, %v1994_v27  ;;  %v2187_v33 = vrot.slane %v2071_v25, 7  ;;  %v2280_v54 = vrot.slane %v2071_v25, 5 }
 0x2ad   : > { %2038 = vst.msk [vmem:[#allocation2 + $0xc0] sm:$0xff] %vm1542_vm4, %v2006_v52 }
 0x2ae   : > { %5374 = vrot.lane.b32.xlu1 %v7924_v18, %s6056_s12  ;;  %v2083_v7 = vld [vmem:[#allocation2 + $0xb8] sm:$0xff]  ;;  %v7941_v48 = vsel %vm377_vm0, %v2186_v47, %v2187_v33  ;;  %v2334_v0 = vsel %vm377_vm0, %v2187_v33, %v2280_v54  ;;  %v2614_v33 = vrot.slane %v7938_v34, 2 }
 0x2af   : > { %v2205_v45 = vrot.slane %v2083_v7, 7  ;;  %v2286_v61 = vrot.slane %v2083_v7, 5  ;;  %v1934_v41 = vpop.f32.mrf.mxu0  ;;  %v2409_v9 = vrot.slane %v7941_v48, 1  ;;  %v2411_v57 = vrot.slane %v2334_v0, 1 }
 0x2b0   : > { %v1964_v42 = vpop.f32.mrf.mxu2  ;;  %v1935_v21 = vadd.f32 %v7685_v19, %v1934_v41  ;;  %v2587_v15 = vrot.slane %v2334_v0, 2  ;;  %v2585_v27 = vrot.slane %v7941_v48, 2  ;;  %v2584_v7 = vrot.slane %v7934_v51, 2 }
 0x2b1   : > { %v7945_v28 = vsel %vm377_vm0, %v2204_v30, %v2205_v45  ;;  %v2340_v5 = vsel %vm377_vm0, %v2205_v45, %v2286_v61  ;;  %v1965_v32 = vadd.f32 %v7685_v19, %v1964_v42  ;;  %v2410_v54 = vsel %vm588_vm1, %v2408_v59, %v2409_v9 }
 0x2b2   : > { %9994 = vst [vmem:[#allocation32_spill] sm:$0xff] %v7945_v28  ;;  %v2439_v31 = vrot.slane %v7945_v28, 1  ;;  %v2441_v24 = vrot.slane %v2340_v5, 1  ;;  %v2617_v20 = vrot.slane %v2340_v5, 2  ;;  %v1995_v47 = vmax.f32 %v1935_v21, 0.0 }
 0x2b3   : > { %v2007_v30 = vmax.f32 %v1965_v32, 0.0  ;;  %v2615_v52 = vrot.slane %v7945_v28, 2  ;;  %v2072_v25 = vld [vmem:[#allocation2 + $0x60] sm:$0xff]  ;;  %v2412_v45 = vsel %vm588_vm1, %v2409_v9, %v2411_v57  ;;  %v2586_v0 = vsel %vm765_vm2, %v2584_v7, %v2585_v27 }
 0x2b4   : > { %v2440_v44 = vsel %vm588_vm1, %v2438_v14, %v2439_v31  ;;  %v2442_v46 = vsel %vm588_vm1, %v2439_v31, %v2441_v24  ;;  %2027 = vst.msk [vmem:[#allocation2 + $0x68] sm:$0xff] %vm1542_vm4, %v1995_v47  ;;  %v2084_v61 = vld [vmem:[#allocation2 + $0xc0] sm:$0xff]  ;;  %v2588_v41 = vsel %vm765_vm2, %v2585_v27, %v2587_v15  ;;  %v2121_v14 = vrot.slane %v2072_v25, 1 }
 0x2b5   : > { %v7956_v16 = vpack.i.bf16 %v2442_v46, %v2440_v44  ;;  %2039 = vst.msk [vmem:[#allocation2 + $0xc8] sm:$0xff] %vm1542_vm4, %v2007_v30  ;;  %v2616_v5 = vsel %vm765_vm2, %v2614_v33, %v2615_v52  ;;  %v2618_v42 = vsel %vm765_vm2, %v2615_v52, %v2617_v20  ;;  %v2189_v31 = vrot.slane %v2072_v25, 7 }
 0x2b6   : > { %5394 = vrot.lane.b32.xlu1 %v7744_v13, %s6057_s13  ;;  %v2127_v47 = vrot.slane %v2084_v61, 1  ;;  %v2207_v44 = vrot.slane %v2084_v61, 7  ;;  %v7975_v59 = vpack.i.bf16 %v2412_v45, %v2410_v54  ;;  %v7978_v57 = vpack.i.bf16 %v2588_v41, %v2586_v0 }
 0x2b7   : > { %9995 = vst [vmem:[#allocation55_spill] sm:$0xff] %v7956_v16  ;;  %5379 = vrot.lane.b32.xlu2 %v7956_v16, %s6056_s12  ;;  %v1937_v21 = vpop.f32.mrf.mxu0  ;;  %v7980_v46 = vpack.i.bf16 %v2618_v42, %v2616_v5  ;;  %v7984_v7 = vsel %vm377_vm0, %v2121_v14, %v2189_v31 }
 0x2b8   : > { %v1967_v24 = vpop.f32.mrf.mxu2  ;;  %v1938_v32 = vadd.f32 %v7685_v19, %v1937_v21  ;;  %9996 = vst [vmem:[#allocation31_spill] sm:$0xff] %v7975_v59  ;;  %v7990_v45 = vsel %vm377_vm0, %v2127_v47, %v2207_v44  ;;  %v2413_v21 = vrot.slane %v7984_v7, 1 }
 0x2b9   : > { %v1968_v9 = vadd.f32 %v7685_v19, %v1967_v24  ;;  %9997 = vst [vmem:[#allocation60_spill] sm:$0xff] %v7990_v45 }
 0x2ba   : > { %v1996_v15 = vmax.f32 %v1938_v32, 0.0  ;;  %v2443_v32 = vrot.slane %v7990_v45, 1 }
 0x2bb   : > { %v2008_v30 = vmax.f32 %v1968_v9, 0.0  ;;  %v2073_v27 = vld [vmem:[#allocation2 + $0x68] sm:$0xff] }
 0x2bc   : > { %2028 = vst.msk [vmem:[#allocation2 + $0x70] sm:$0xff] %vm1542_vm4, %v1996_v15  ;;  %v2085_v20 = vld [vmem:[#allocation2 + $0xc8] sm:$0xff]  ;;  %v2190_v52 = vrot.slane %v2073_v27, 7  ;;  %v2281_v25 = vrot.slane %v2073_v27, 5 }
 0x2bd   : > { %2040 = vst.msk [vmem:[#allocation2 + $0xd0] sm:$0xff] %vm1542_vm4, %v2008_v30  ;;  %v2208_v33 = vrot.slane %v2085_v20, 7  ;;  %v2287_v54 = vrot.slane %v2085_v20, 5 }
 0x2be   : > { %v7993_v61 = vsel %vm377_vm0, %v2189_v31, %v2190_v52  ;;  %v2335_v0 = vsel %vm377_vm0, %v2190_v52, %v2281_v25 }
 0x2bf   : > { %5399 = vrot.lane.b32.xlu2 %v7975_v59, %s6056_s12  ;;  %v1939_v41 = vpop.f32.mrf.mxu0  ;;  %v7997_v5 = vsel %vm377_vm0, %v2207_v44, %v2208_v33  ;;  %v2341_v42 = vsel %vm377_vm0, %v2208_v33, %v2287_v54  ;;  %v2414_v30 = vrot.slane %v7993_v61, 1  ;;  %v2416_v27 = vrot.slane %v2335_v0, 1 }
 0x2c0   : > { %9998 = vst [vmem:[#allocation27_spill] sm:$0xff] %v7997_v5  ;;  %v1969_v14 = vpop.f32.mrf.mxu2  ;;  %v1940_v24 = vadd.f32 %v7685_v19, %v1939_v41  ;;  %v2444_v47 = vrot.slane %v7997_v5, 1  ;;  %v2446_v9 = vrot.slane %v2341_v42, 1  ;;  %v2622_v15 = vrot.slane %v2341_v42, 2 }
 0x2c1   : > { %v1970_v31 = vadd.f32 %v7685_v19, %v1969_v14  ;;  %v2592_v25 = vrot.slane %v2335_v0, 2  ;;  %v2590_v41 = vrot.slane %v7993_v61, 2  ;;  %v2620_v13 = vrot.slane %v7997_v5, 2 }
 0x2c2   : > { %v1997_v44 = vmax.f32 %v1940_v24, 0.0  ;;  %v2445_v20 = vsel %vm588_vm1, %v2443_v32, %v2444_v47  ;;  %v2447_v52 = vsel %vm588_vm1, %v2444_v47, %v2446_v9  ;;  %v2589_v42 = vrot.slane %v7984_v7, 2 }
 0x2c3   : > { %v2009_v33 = vmax.f32 %v1970_v31, 0.0  ;;  %v8008_v54 = vpack.i.bf16 %v2447_v52, %v2445_v20  ;;  %v2619_v14 = vrot.slane %v7990_v45, 2  ;;  %v2415_v24 = vsel %vm588_vm1, %v2413_v21, %v2414_v30  ;;  %v2074_v47 = vld [vmem:[#allocation2 + $0x70] sm:$0xff] }
 0x2c4   : > { %2029 = vst.msk [vmem:[#allocation2 + $0x78] sm:$0xff] %vm1542_vm4, %v1997_v44  ;;  %v2086_v0 = vld [vmem:[#allocation2 + $0xd0] sm:$0xff]  ;;  %v2417_v32 = vsel %vm588_vm1, %v2414_v30, %v2416_v27  ;;  %v2591_v9 = vsel %vm765_vm2, %v2589_v42, %v2590_v41  ;;  %v2593_v31 = vsel %vm765_vm2, %v2590_v41, %v2592_v25  ;;  %v2623_v20 = vsel %vm765_vm2, %v2620_v13, %v2622_v15 }
 0x2c5   : > { %9999 = vst [vmem:[#allocation18_spill] sm:$0xff] %v8008_v54  ;;  %5384 = vrot.lane.b32.xlu0 %v8008_v54, %s6056_s12  ;;  %v2621_v44 = vsel %vm765_vm2, %v2619_v14, %v2620_v13  ;;  %v2122_v16 = vrot.slane %v2074_v47, 1  ;;  %v8026_v18 = vpack.i.bf16 %v2417_v32, %v2415_v24  ;;  %v2210_v53 = vrot.slane %v2086_v0, 7 }
 0x2c6   : > { %2041 = vst.msk [vmem:[#allocation2 + $0xd8] sm:$0xff] %vm1542_vm4, %v2009_v33  ;;  %v2128_v33 = vrot.slane %v2086_v0, 1  ;;  %v8029_v21 = vpack.i.bf16 %v2593_v31, %v2591_v9  ;;  %v8031_v30 = vpack.i.bf16 %v2623_v20, %v2621_v44  ;;  %v2192_v27 = vrot.slane %v2074_v47, 7 }
 0x2c7   : > { %5404 = vrot.lane.b32.xlu2 %v7772_v26, %s6057_s13  ;;  %10000 = vst [vmem:[#allocation24_spill] sm:$0xff] %v8026_v18 }
 0x2c8   : > { %v1972_v52 = vpop.f32.mrf.mxu2  ;;  %v8039_v0 = vsel %vm377_vm0, %v2128_v33, %v2210_v53 }
 0x2c9   : > { %v1973_v54 = vadd.f32 %v7685_v19, %v1972_v52  ;;  %v2448_v31 = vrot.slane %v8039_v0, 1 }
 0x2cb   : > { %v2010_v42 = vmax.f32 %v1973_v54, 0.0  ;;  %v2075_v22 = vld [vmem:[#allocation2 + $0x78] sm:$0xff]  ;;  %v8045_v54 = vsel %vm377_vm0, %v2122_v16, %v2192_v27 }
 0x2cc   : > { %v2193_v41 = vrot.slane %v2075_v22, 7  ;;  %v2282_v14 = vrot.slane %v2075_v22, 5  ;;  %v2418_v16 = vrot.slane %v8045_v54, 1 }
 0x2cd   : > { %v2087_v25 = vld [vmem:[#allocation2 + $0xd8] sm:$0xff]  ;;  %2042 = vst.msk [vmem:[#allocation2 + $0xe0] sm:$0xff] %vm1542_vm4, %v2010_v42  ;;  %5389 = vrot.lane.b32.xlu0 %v7772_v26, %s6057_s13  ;;  %v2624_v26 = vrot.slane %v8039_v0, 2 }
 0x2ce   : > { %v2211_v13 = vrot.slane %v2087_v25, 7  ;;  %v2288_v15 = vrot.slane %v2087_v25, 5  ;;  %v8042_v24 = vsel %vm377_vm0, %v2192_v27, %v2193_v41  ;;  %v2336_v22 = vsel %vm377_vm0, %v2193_v41, %v2282_v14 }
 0x2cf   : > { %5429 = vrot.lane.b32.xlu2 %v7926_v56, %s6057_s13  ;;  %v2595_v33 = vrot.slane %v8042_v24, 2  ;;  %v2597_v42 = vrot.slane %v2336_v22, 2  ;;  %v2419_v41 = vrot.slane %v8042_v24, 1  ;;  %v2421_v56 = vrot.slane %v2336_v22, 1 }
 0x2d0   : > { %v8049_v32 = vsel %vm377_vm0, %v2210_v53, %v2211_v13  ;;  %v2342_v47 = vsel %vm377_vm0, %v2211_v13, %v2288_v15  ;;  %v1974_v9 = vpop.f32.mrf.mxu2  ;;  %v2594_v15 = vrot.slane %v8045_v54, 2 }
 0x2d1   : > { %v2449_v44 = vrot.slane %v8049_v32, 1  ;;  %v2451_v20 = vrot.slane %v2342_v47, 1  ;;  %v1975_v52 = vadd.f32 %v7685_v19, %v1974_v9  ;;  %v2627_v25 = vrot.slane %v2342_v47, 2 }
 0x2d2   : > { %v2420_v9 = vsel %vm588_vm1, %v2418_v16, %v2419_v41  ;;  %v2625_v59 = vrot.slane %v8049_v32, 2  ;;  %v2422_v22 = vsel %vm588_vm1, %v2419_v41, %v2421_v56 }
 0x2d3   : > { %v2450_v27 = vsel %vm588_vm1, %v2448_v31, %v2449_v44  ;;  %v2452_v53 = vsel %vm588_vm1, %v2449_v44, %v2451_v20  ;;  %v2011_v14 = vmax.f32 %v1975_v52, 0.0  ;;  %v2596_v31 = vsel %vm765_vm2, %v2594_v15, %v2595_v33 }
 0x2d4   : > { %v8060_v13 = vpack.i.bf16 %v2452_v53, %v2450_v27  ;;  %v2088_v47 = vld [vmem:[#allocation2 + $0xe0] sm:$0xff]  ;;  %v2598_v44 = vsel %vm765_vm2, %v2595_v33, %v2597_v42  ;;  %v2626_v20 = vsel %vm765_vm2, %v2624_v26, %v2625_v59  ;;  %v2628_v52 = vsel %vm765_vm2, %v2625_v59, %v2627_v25 }
 0x2d5   : > { %2043 = vst.msk [vmem:[#allocation2 + $0xe8] sm:$0xff] %vm1542_vm4, %v2011_v14  ;;  %5414 = vrot.lane.b32.xlu0 %v8026_v18, %s6056_s12  ;;  %v8076_v16 = vpack.i.bf16 %v2422_v22, %v2420_v9  ;;  %v2129_v53 = vrot.slane %v2088_v47, 1  ;;  %v2213_v14 = vrot.slane %v2088_v47, 7  ;;  %v8081_v8 = vpack.i.bf16 %v2628_v52, %v2626_v20 }
 0x2d6   : > { %10001 = vst [vmem:[#allocation29_spill] sm:$0xff] %v8060_v13  ;;  %5409 = vrot.lane.b32.xlu1 %v8060_v13, %s6056_s12  ;;  %v8078_v13 = vpack.i.bf16 %v2598_v44, %v2596_v31 }
 0x2d7   : > { %10002 = vst [vmem:[#allocation28_spill] sm:$0xff] %v8076_v16  ;;  %v8084_v33 = vsel %vm377_vm0, %v2129_v53, %v2213_v14 }
 0x2d8   : > { %v1977_v27 = vpop.f32.mrf.mxu2  ;;  %v2629_v42 = vrot.slane %v8084_v33, 2 }
 0x2d9   : > { %v1978_v18 = vadd.f32 %v7685_v19, %v1977_v27 }
 0x2db   : > { %v2012_v15 = vmax.f32 %v1978_v18, 0.0  ;;  %v2453_v18 = vrot.slane %v8084_v33, 1 }
 0x2dc   : > { %v2089_v37 = vld [vmem:[#allocation2 + $0xe8] sm:$0xff] }
 0x2dd   : > { %2044 = vst.msk [vmem:[#allocation2 + $0xf0] sm:$0xff] %vm1542_vm4, %v2012_v15  ;;  %5419 = vrot.lane.b32.xlu0 %v7826_v17, %s6057_s13  ;;  %v2214_v26 = vrot.slane %v2089_v37, 7  ;;  %v2289_v56 = vrot.slane %v2089_v37, 5  ;;  %v5975_v37 = vld [vmem:[%s9566_s2] ss:$0 sm:$0xff] }
 0x2de   : > { %5424 = vrot.lane.b32.xlu1 %v7876_v43, %s6057_s13 }
 0x2df   : > { %v8092_v59 = vsel %vm377_vm0, %v2213_v14, %v2214_v26  ;;  %v2343_v19 = vsel %vm377_vm0, %v2214_v26, %v2289_v56 }
 0x2e0   : > { %v1979_v25 = vpop.f32.mrf.mxu2  ;;  %v2454_v41 = vrot.slane %v8092_v59, 1  ;;  %v2456_v9 = vrot.slane %v2343_v19, 1  ;;  %v2630_v47 = vrot.slane %v8092_v59, 2  ;;  %v2632_v31 = vrot.slane %v2343_v19, 2 }
 0x2e1   : > { %v1980_v44 = vadd.f32 %v5975_v37, %v1979_v25 }
 0x2e2   : > { %v2455_v22 = vsel %vm588_vm1, %v2453_v18, %v2454_v41  ;;  %v2457_v20 = vsel %vm588_vm1, %v2454_v41, %v2456_v9  ;;  %v2631_v52 = vsel %vm765_vm2, %v2629_v42, %v2630_v47  ;;  %v2633_v27 = vsel %vm765_vm2, %v2630_v47, %v2632_v31 }
 0x2e3   : > { %v2013_v53 = vmax.f32 %v1980_v44, 0.0  ;;  %v8106_v14 = vpack.i.bf16 %v2457_v20, %v2455_v22  ;;  %v8108_v15 = vpack.i.bf16 %v2633_v27, %v2631_v52 }
 0x2e4   : > { %v2090_v26 = vld [vmem:[#allocation2 + $0xf0] sm:$0xff] }
 0x2e5   : > { %10003 = vst [vmem:[#allocation26_spill] sm:$0xff] %v8106_v14  ;;  %5449 = vrot.lane.b32.xlu2 %v8106_v14, %s6056_s12  ;;  %5434 = vrot.lane.b32.xlu0 %v7978_v57, %s6057_s13  ;;  %v2130_v56 = vrot.slane %v2090_v26, 1  ;;  %v2216_v19 = vrot.slane %v2090_v26, 7 }
 0x2e6   : > { %10004 = vst [vmem:[#allocation25_spill] sm:$0xff] %v8108_v15  ;;  %5439 = vrot.lane.b32.xlu1 %v8029_v21, %s6057_s13 }
 0x2e7   : > { %2045 = vst.msk [vmem:[#allocation2 + $0xf8] sm:$0xff] %vm1542_vm4, %v2013_v53  ;;  %v2326_v42 = vsel %vm377_vm0, %v2130_v56, %v2216_v19 }
 0x2e8   : > { %v2828_v31 = vrot.slane %v2326_v42, 1  ;;  %v2929_v22 = vrot.slane %v2326_v42, 2 }
 0x2ed   : > { %5464 = vrot.lane.b32.xlu2 %v8078_v13, %s6057_s13  ;;  %5444 = vrot.lane.b32.xlu0 %v7828_v62, %s6057_s13 }
 0x2ee   : > { %v2091_v18 = vld [vmem:[#allocation2 + $0xf8] sm:$0xff]  ;;  %5454 = vrot.lane.b32.xlu1 %v8076_v16, %s6056_s12 }
 0x2ef   : > { %v2217_v25 = vrot.slane %v2091_v18, 7  ;;  %v2290_v41 = vrot.slane %v2091_v18, 5 }
 0x2f1   : > { %v2218_v9 = vsel %vm377_vm0, %v2216_v19, %v2217_v25  ;;  %v2344_v47 = vsel %vm377_vm0, %v2217_v25, %v2290_v41  ;;  %v8152_v25 = vpack.i.bf16 %v7757_v40, %v7752_v12  ;;  %v5493_v41 = vpack.i.bf16 %v7730_v10, %v7726_v58 }
 0x2f2   : > { %v2829_v37 = vrot.slane %v2218_v9, 1  ;;  %v2831_v44 = vrot.slane %v2344_v47, 1  ;;  %v2930_v20 = vrot.slane %v2218_v9, 2  ;;  %v2932_v52 = vrot.slane %v2344_v47, 2 }
 0x2f3   : > { %v8126_v27 = vpack.i.bf16 %v2218_v9, %v2326_v42  ;;  %v8148_v42 = vpop.permute.xlu2 %5334  ;;  %10008 = vst [vmem:[#allocation20_spill] sm:$0xff] %v8152_v25  ;;  %v8158_v9 = vpack.i.bf16 %v7791_v60, %v7784_v49 }
 0x2f4   : > { %v2830_v53 = vsel %vm588_vm1, %v2828_v31, %v2829_v37  ;;  %v2832_v26 = vsel %vm588_vm1, %v2829_v37, %v2831_v44  ;;  %v2931_v56 = vsel %vm765_vm2, %v2929_v22, %v2930_v20  ;;  %v2933_v18 = vsel %vm765_vm2, %v2930_v20, %v2932_v52 }
 0x2f5   : > { %10005 = vst [vmem:[#allocation15_spill] sm:$0xff] %v8126_v27  ;;  %v8132_v62 = vpack.i.bf16 %v2832_v26, %v2830_v53  ;;  %v8134_v19 = vpack.i.bf16 %v2933_v18, %v2931_v56  ;;  %5469 = vrot.lane.b32.xlu2 %v7928_v50, %s6057_s13  ;;  %5474 = vrot.lane.b32.xlu0 %v7980_v46, %s6057_s13 }
 0x2f6   : > { %5459 = vrot.lane.b32.xlu1 %v7878_v35, %s6057_s13  ;;  %10009 = vst [vmem:[#allocation9_spill] sm:$0xff] %v8158_v9  ;;  %v8169_v31 = vpack.i.bf16 %v7888_v23, %v7881_v6  ;;  %v8173_v37 = vpack.i.bf16 %v7838_v2, %v7831_v63  ;;  %v8177_v44 = vpack.i.bf16 %v7941_v48, %v7934_v51 }
 0x2f7   : > { %10006 = vst [vmem:[#allocation53_spill] sm:$0xff] %v8132_v62  ;;  %v8189_v20 = vpack.i.bf16 %v8042_v24, %v8045_v54  ;;  %v8193_v52 = vpack.i.bf16 %v7993_v61, %v7984_v7  ;;  %v8197_v53 = vpack.i.bf16 %v7797_v4, %v7788_v39  ;;  %v8209_v56 = vpack.i.bf16 %v7894_v36, %v7899_v1  ;;  %v10030_v1 = vld [vmem:[#allocation42_spill] sm:$0xff] }
 0x2f8   : > { %10007 = vst [vmem:[#allocation59_spill] sm:$0xff] %v8134_v19  ;;  %v8213_v18 = vpack.i.bf16 %v7844_v55, %v7849_v11 }
 0x2f9   : > { %10010 = vst [vmem:[#allocation50_spill] sm:$0xff] %v8169_v31 }
 0x2fa   : > { %10011 = vst [vmem:[#allocation69_spill] sm:$0xff] %v8173_v37 }
 0x2fb   : > { %v8165_v47 = vpop.permute.xlu2 %5349  ;;  %10012 = vst [vmem:[#allocation81_spill] sm:$0xff] %v8177_v44 }
 0x2fc   : > { %10014 = vst [vmem:[#allocation95_spill] sm:$0xff] %v8189_v20 }
 0x2fd   : > { %5484 = vrot.lane.b32.xlu2 %v8081_v8, %s6057_s13  ;;  %5489 = vrot.lane.b32.xlu0 %v8108_v15, %s6057_s13  ;;  %10015 = vst [vmem:[#allocation66_spill] sm:$0xff] %v8193_v52 }
 0x2fe   : > { %5479 = vrot.lane.b32.xlu1 %v8031_v30, %s6057_s13  ;;  %10016 = vst [vmem:[#allocation79_spill] sm:$0xff] %v8197_v53 }
 0x2ff   : > { %10018 = vst [vmem:[#allocation92_spill] sm:$0xff] %v8209_v56 }
 0x300   : > { %10019 = vst [vmem:[#allocation21_spill] sm:$0xff] %v8213_v18 }
 0x303   : > { %v8185_v22 = vpop.permute.xlu2 %5359 }
 0x304   : > { %10013 = vst [vmem:[#allocation88_spill] sm:$0xff] %v8185_v22  ;;  %v10034_v22 = vld [vmem:[#allocation29_spill] sm:$0xff] }
 0x305   : > { %5499 = vrot.lane.b32.xlu2 %v8152_v25, %s6058_s14  ;;  %5504 = vrot.lane.b32.xlu0 %v8158_v9, %s6058_s14 }
 0x306   : > { %5494 = vrot.lane.b32.xlu1 %v5493_v41, %s6058_s14  ;;  %v8217_v41 = vpack.i.bf16 %v7945_v28, %v7938_v34  ;;  %v8239_v34 = vpack.i.bf16 %v8092_v59, %v8084_v33 }
 0x308   : > { %10020 = vst [vmem:[#allocation52_spill] sm:$0xff] %v8217_v41 }
 0x309   : > { %10023 = vst [vmem:[#allocation22_spill] sm:$0xff] %v8239_v34 }
 0x30d   : > { %5514 = vrot.lane.b32.xlu2 %v8169_v31, %s6058_s14  ;;  %5519 = vrot.lane.b32.xlu0 %v8177_v44, %s6058_s14  ;;  %v8231_v44 = vpack.i.bf16 %v8049_v32, %v8039_v0  ;;  %v8235_v31 = vpack.i.bf16 %v7997_v5, %v7990_v45 }
 0x30e   : > { %5509 = vrot.lane.b32.xlu1 %v8173_v37, %s6058_s14 }
 0x30f   : > { %10021 = vst [vmem:[#allocation23_spill] sm:$0xff] %v8231_v44 }
 0x310   : > { %10022 = vst [vmem:[#allocation57_spill] sm:$0xff] %v8235_v31 }
 0x311   : > { %v8205_v26 = vpop.permute.xlu2 %5379 }
 0x312   : > { %10017 = vst [vmem:[#allocation85_spill] sm:$0xff] %v8205_v26 }
 0x315   : > { %5529 = vrot.lane.b32.xlu2 %v8189_v20, %s6058_s14  ;;  %5534 = vrot.lane.b32.xlu0 %v8197_v53, %s6058_s14  ;;  %v8219_v20 = vpop.permute.xlu0 %5339  ;;  %v8227_v53 = vpop.permute.xlu1 %5344 }
 0x316   : > { %5524 = vrot.lane.b32.xlu1 %v8193_v52, %s6058_s14 }
 0x319   : > { %v5400_v52 = vpop.permute.xlu2 %5399 }
 0x31a   : > { %v5401_v9 = vunpack.i.l.bf16 %v5400_v52 }
 0x31d   : > { %5544 = vrot.lane.b32.xlu2 %v8209_v56, %s6058_s14  ;;  %5549 = vrot.lane.b32.xlu0 %v8217_v41, %s6058_s14  ;;  %v8241_v28 = vpop.permute.xlu0 %5354  ;;  %v8249_v41 = vpop.permute.xlu1 %5369 }
 0x31e   : > { %5539 = vrot.lane.b32.xlu1 %v8213_v18, %s6058_s14 }
 0x321   : > { %v8251_v56 = vpop.permute.xlu2 %5404 }
 0x325   : > { %5559 = vrot.lane.b32.xlu2 %v8231_v44, %s6058_s14  ;;  %5564 = vrot.lane.b32.xlu0 %v8239_v34, %s6058_s14  ;;  %v8259_v44 = vpop.permute.xlu0 %5364  ;;  %v8261_v26 = vpop.permute.xlu1 %5374  ;;  %v10025_v34 = vld [vmem:[#allocation48_spill] sm:$0xff] }
 0x326   : > { %5554 = vrot.lane.b32.xlu1 %v8235_v31, %s6058_s14  ;;  %10024 = vst [vmem:[#allocation41_spill] sm:$0xff] %v8261_v26  ;;  %v10026_v31 = vld [vmem:[#allocation39_spill] sm:$0xff] }
 0x327   : > { %v10032_v26 = vld [vmem:[#allocation55_spill] sm:$0xff] }
 0x32d   : > { %5574 = vrot.lane.b32.xlu2 %v7742_v3, %s6059_s15  ;;  %5579 = vrot.lane.b32.xlu0 %v7769_v29, %s6059_s15  ;;  %v10027_v3 = vld [vmem:[#allocation31_spill] sm:$0xff]  ;;  %v10028_v29 = vld [vmem:[#allocation24_spill] sm:$0xff]  ;;  %v8277_v4 = vpop.permute.xlu1 %5394 }
 0x32e   : > { %5569 = vrot.lane.b32.xlu1 %v8126_v27, %s6058_s14  ;;  %v8269_v27 = vpop.permute.xlu2 %5429 }
 0x335   : > { %5589 = vrot.lane.b32.xlu2 %v10025_v34, %s6059_s15  ;;  %5594 = vrot.lane.b32.xlu0 %v10026_v31, %s6059_s15  ;;  %v10029_v31 = vld [vmem:[#allocation16_spill] sm:$0xff] }
 0x336   : > { %5584 = vrot.lane.b32.xlu1 %v7806_v38, %s6059_s15 }
 0x337   : > { %v8271_v39 = vpop.permute.xlu0 %5384 }
 0x33d   : > { %5604 = vrot.lane.b32.xlu2 %v10028_v29, %s6059_s15  ;;  %5609 = vrot.lane.b32.xlu0 %v8076_v16, %s6059_s15  ;;  %v10033_v16 = vld [vmem:[#allocation18_spill] sm:$0xff] }
 0x33e   : > { %5599 = vrot.lane.b32.xlu1 %v10027_v3, %s6059_s15  ;;  %v10031_v3 = vld [vmem:[#allocation11_spill] sm:$0xff] }
 0x33f   : > { %v8281_v38 = vpop.permute.xlu2 %5449  ;;  %v8283_v34 = vpop.permute.xlu0 %5389 }
 0x345   : > { %5619 = vrot.lane.b32.xlu2 %v10030_v1, %s6059_s15  ;;  %5624 = vrot.lane.b32.xlu0 %v10031_v3, %s6059_s15  ;;  %v5402_v3 = vunpack.i.h.bf16 %v5400_v52 }
 0x346   : > { %5614 = vrot.lane.b32.xlu1 %v10029_v31, %s6059_s15 }
 0x347   : > { %v8291_v36 = vpop.permute.xlu2 %5464  ;;  %v5415_v18 = vpop.permute.xlu0 %5414 }
 0x348   : > { %v5410_v29 = vpop.permute.xlu1 %5409  ;;  %v5417_v5 = vunpack.i.h.bf16 %v5415_v18  ;;  %v5416_v19 = vunpack.i.l.bf16 %v5415_v18 }
 0x349   : > { %v5412_v25 = vunpack.i.h.bf16 %v5410_v29  ;;  %v5411_v45 = vunpack.i.l.bf16 %v5410_v29 }
 0x34b   : > { %v3359_v29 = vsel %vm1542_vm4, %v8049_v32, %v5412_v25  ;;  %v3358_v52 = vsel %vm1542_vm4, %v8039_v0, %v5411_v45  ;;  %v5342_v25 = vunpack.i.h.bf16 %v8219_v20 }
 0x34d   : > { %5634 = vrot.lane.b32.xlu2 %v10033_v16, %s6059_s15  ;;  %5639 = vrot.lane.b32.xlu0 %v10034_v22, %s6059_s15  ;;  %v10036_v22 = vld [vmem:[#allocation8_spill] sm:$0xff]  ;;  %v3343_v16 = vsel %vm1542_vm4, %v7941_v48, %v5402_v3  ;;  %v3344_v48 = vsel %vm1542_vm4, %v7984_v7, %v5416_v19 }
 0x34e   : > { %5629 = vrot.lane.b32.xlu1 %v10032_v26, %s6059_s15  ;;  %v3342_v26 = vsel %vm1542_vm4, %v7934_v51, %v5401_v9 }
 0x34f   : > { %v8299_v31 = vpop.permute.xlu2 %5469  ;;  %v8303_v1 = vpop.permute.xlu0 %5419 }
 0x350   : > { %10035 = vst [vmem:[#allocation58_spill] sm:$0xff] %v8299_v31  ;;  %v8301_v37 = vpop.permute.xlu1 %5424 }
 0x355   : > { %5649 = vrot.lane.b32.xlu2 %v8132_v62, %s6059_s15  ;;  %5654 = vrot.lane.b32.xlu0 %v10036_v22, %s6060_s16  ;;  %v3345_v22 = vsel %vm1542_vm4, %v7993_v61, %v5417_v5  ;;  %v5341_v61 = vunpack.i.l.bf16 %v8219_v20 }
 0x356   : > { %5644 = vrot.lane.b32.xlu1 %v8106_v14, %s6059_s15 }
 0x357   : > { %v5485_v18 = vpop.permute.xlu2 %5484  ;;  %v5435_v15 = vpop.permute.xlu0 %5434 }
 0x358   : > { %v5440_v14 = vpop.permute.xlu1 %5439  ;;  %v5487_v31 = vunpack.i.h.bf16 %v5485_v18  ;;  %v5486_v49 = vunpack.i.l.bf16 %v5485_v18  ;;  %v5437_v51 = vunpack.i.h.bf16 %v5435_v15  ;;  %v5436_v9 = vunpack.i.l.bf16 %v5435_v15 }
 0x359   : > { %v5442_v62 = vunpack.i.h.bf16 %v5440_v14  ;;  %v5441_v60 = vunpack.i.l.bf16 %v5440_v14  ;;  %v5396_v15 = vunpack.i.l.bf16 %v8277_v4 }
 0x35a   : > { %v8324_v32 = vsel %vm1575_vm6, %v3358_v52, %v5486_v49  ;;  %v8327_v45 = vsel %vm1575_vm6, %v3359_v29, %v5487_v31  ;;  %v8338_v7 = vsel %vm1575_vm6, %v3343_v16, %v5437_v51  ;;  %v8341_v5 = vsel %vm1575_vm6, %v3342_v26, %v5436_v9 }
 0x35b   : > { %v8330_v0 = vsel %vm1575_vm6, %v3344_v48, %v5441_v60  ;;  %v8333_v14 = vsel %vm1575_vm6, %v3345_v22, %v5442_v62  ;;  %v5397_v49 = vunpack.i.h.bf16 %v8277_v4  ;;  %v10037_v60 = vld [vmem:[#allocation51_spill] sm:$0xff]  ;;  %v3333_v62 = vsel %vm1542_vm4, %v7730_v10, %v5342_v25 }
 0x35c   : > { %v3332_v16 = vsel %vm1542_vm4, %v7726_v58, %v5341_v61  ;;  %v5467_v22 = vunpack.i.h.bf16 %v8291_v36  ;;  %v5466_v48 = vunpack.i.l.bf16 %v8291_v36  ;;  %v5357_v36 = vunpack.i.h.bf16 %v8241_v28 }
 0x35d   : > { %5664 = vrot.lane.b32.xlu2 %v7826_v17, %s6060_s16  ;;  %5669 = vrot.lane.b32.xlu0 %v7876_v43, %s6060_s16  ;;  %v3364_v52 = vsel %vm1575_vm6, %v3332_v16, %v5396_v15  ;;  %v3365_v18 = vsel %vm1575_vm6, %v3333_v62, %v5397_v49  ;;  %v5356_v49 = vunpack.i.l.bf16 %v8241_v28  ;;  %v5427_v15 = vunpack.i.h.bf16 %v8301_v37  ;;  %v10038_v16 = vld [vmem:[#allocation54_spill] sm:$0xff] }
 0x35e   : > { %5659 = vrot.lane.b32.xlu1 %v10037_v60, %s6060_s16  ;;  %v5426_v62 = vunpack.i.l.bf16 %v8301_v37 }
 0x35f   : > { %v5500_v19 = vpop.permute.xlu2 %5499  ;;  %v8355_v29 = vpop.permute.xlu0 %5444  ;;  %v3338_v28 = vsel %vm1542_vm4, %v7831_v63, %v5356_v49  ;;  %v10039_v63 = vld [vmem:[#allocation46_spill] sm:$0xff]  ;;  %v5347_v49 = vunpack.i.h.bf16 %v8227_v53 }
 0x360   : > { %v5455_v31 = vpop.permute.xlu1 %5454  ;;  %v5502_v20 = vunpack.i.h.bf16 %v5500_v19  ;;  %v5501_v26 = vunpack.i.l.bf16 %v5500_v19  ;;  %v3339_v19 = vsel %vm1542_vm4, %v7838_v2, %v5357_v36 }
 0x361   : > { %v5457_v4 = vunpack.i.h.bf16 %v5455_v31  ;;  %v5456_v3 = vunpack.i.l.bf16 %v5455_v31 }
 0x362   : > { %v8362_v10 = vsel %vm1608_vm5, %v3364_v52, %v5501_v26  ;;  %v8365_v58 = vsel %vm1608_vm5, %v3365_v18, %v5502_v20  ;;  %v3370_v26 = vsel %vm1575_vm6, %v3338_v28, %v5426_v62  ;;  %v5336_v52 = vunpack.i.l.bf16 %v8148_v42 }
 0x363   : > { %v3347_v51 = vsel %vm1542_vm4, %v8042_v24, %v5457_v4  ;;  %v3346_v9 = vsel %vm1542_vm4, %v8045_v54, %v5456_v3  ;;  %v3371_v4 = vsel %vm1575_vm6, %v3339_v19, %v5427_v15  ;;  %v5337_v3 = vunpack.i.h.bf16 %v8148_v42 }
 0x364   : > { %v8372_v25 = vsel %vm1575_vm6, %v3346_v9, %v5466_v48  ;;  %v8375_v61 = vsel %vm1575_vm6, %v3347_v51, %v5467_v22  ;;  %v3330_v48 = vsel %vm1542_vm4, %v7752_v12, %v5336_v52  ;;  %v5452_v42 = vunpack.i.h.bf16 %v8281_v38 }
 0x365   : > { %5679 = vrot.lane.b32.xlu2 %v7978_v57, %s6060_s16  ;;  %5684 = vrot.lane.b32.xlu0 %v8029_v21, %s6060_s16  ;;  %v3331_v22 = vsel %vm1542_vm4, %v7757_v40, %v5337_v3  ;;  %v5451_v51 = vunpack.i.l.bf16 %v8281_v38  ;;  %v5346_v15 = vunpack.i.l.bf16 %v8227_v53  ;;  %v5367_v19 = vunpack.i.h.bf16 %v8259_v44 }
 0x366   : > { %5674 = vrot.lane.b32.xlu1 %v10038_v16, %s6060_s16  ;;  %v5366_v28 = vunpack.i.l.bf16 %v8259_v44  ;;  %v3361_v36 = vsel %vm1542_vm4, %v8092_v59, %v5452_v42 }
 0x367   : > { %v5515_v24 = vpop.permute.xlu2 %5514  ;;  %v8393_v20 = vpop.permute.xlu0 %5474  ;;  %v3360_v53 = vsel %vm1542_vm4, %v8084_v33, %v5451_v51  ;;  %v3335_v33 = vsel %vm1542_vm4, %v7757_v40, %v5347_v49  ;;  %v5371_v51 = vunpack.i.l.bf16 %v8249_v41 }
 0x368   : > { %v8387_v54 = vpop.permute.xlu1 %5459  ;;  %v5517_v31 = vunpack.i.h.bf16 %v5515_v24  ;;  %v5516_v37 = vunpack.i.l.bf16 %v5515_v24  ;;  %v3350_v42 = vsel %vm1542_vm4, %v7849_v11, %v5366_v28  ;;  %v5431_v11 = vunpack.i.l.bf16 %v8269_v27 }
 0x36a   : > { %v8400_v18 = vsel %vm1608_vm5, %v3370_v26, %v5516_v37  ;;  %v8403_v2 = vsel %vm1608_vm5, %v3371_v4, %v5517_v31  ;;  %v5407_v26 = vunpack.i.h.bf16 %v8251_v56  ;;  %v5406_v4 = vunpack.i.l.bf16 %v8251_v56 }
 0x36b   : > { %v5391_v56 = vunpack.i.l.bf16 %v8283_v34 }
 0x36d   : > { %5694 = vrot.lane.b32.xlu2 %v10039_v63, %s6060_s16  ;;  %5699 = vrot.lane.b32.xlu0 %v7878_v35, %s6060_s16 }
 0x36e   : > { %5689 = vrot.lane.b32.xlu1 %v8078_v13, %s6060_s16 }
 0x36f   : > { %v5530_v62 = vpop.permute.xlu2 %5529  ;;  %v5490_v37 = vpop.permute.xlu0 %5489 }
 0x370   : > { %v8421_v24 = vpop.permute.xlu1 %5479  ;;  %v5532_v31 = vunpack.i.h.bf16 %v5530_v62  ;;  %v5531_v38 = vunpack.i.l.bf16 %v5530_v62  ;;  %v5492_v3 = vunpack.i.h.bf16 %v5490_v37  ;;  %v5491_v52 = vunpack.i.l.bf16 %v5490_v37 }
 0x371   : > { %v5392_v62 = vunpack.i.h.bf16 %v8283_v34  ;;  %v5372_v34 = vunpack.i.h.bf16 %v8249_v41  ;;  %v5387_v41 = vunpack.i.h.bf16 %v8271_v39 }
 0x372   : > { %v8433_v9 = vsel %vm1608_vm5, %v8330_v0, %v5531_v38  ;;  %v8437_v44 = vsel %vm1608_vm5, %v8333_v14, %v5532_v31  ;;  %v8442_v37 = vsel %vm1575_vm6, %v3361_v36, %v5492_v3  ;;  %v8445_v59 = vsel %vm1575_vm6, %v3360_v53, %v5491_v52 }
 0x373   : > { %v3334_v0 = vsel %vm1542_vm4, %v7752_v12, %v5346_v15  ;;  %v3351_v14 = vsel %vm1542_vm4, %v7844_v55, %v5367_v19  ;;  %v5462_v36 = vunpack.i.h.bf16 %v8387_v54  ;;  %v5461_v31 = vunpack.i.l.bf16 %v8387_v54 }
 0x374   : > { %v3367_v12 = vsel %vm1575_vm6, %v3335_v33, %v5407_v26  ;;  %v3366_v40 = vsel %vm1575_vm6, %v3334_v0, %v5406_v4  ;;  %v5432_v55 = vunpack.i.h.bf16 %v8269_v27  ;;  %v5386_v54 = vunpack.i.l.bf16 %v8271_v39 }
 0x375   : > { %5709 = vrot.lane.b32.xlu2 %v7980_v46, %s6060_s16  ;;  %5714 = vrot.lane.b32.xlu0 %v8031_v30, %s6060_s16  ;;  %v3363_v49 = vsel %vm1575_vm6, %v3331_v22, %v5392_v62  ;;  %v3362_v15 = vsel %vm1575_vm6, %v3330_v48, %v5391_v56  ;;  %v3382_v27 = vsel %vm1575_vm6, %v3350_v42, %v5461_v31  ;;  %v5422_v62 = vunpack.i.h.bf16 %v8303_v1 }
 0x376   : > { %5704 = vrot.lane.b32.xlu1 %v7928_v50, %s6060_s16  ;;  %v3383_v53 = vsel %vm1575_vm6, %v3351_v14, %v5462_v36  ;;  %v5421_v56 = vunpack.i.l.bf16 %v8303_v1  ;;  %v3341_v36 = vsel %vm1542_vm4, %v7888_v23, %v5372_v34  ;;  %v3340_v31 = vsel %vm1542_vm4, %v7881_v6, %v5371_v51  ;;  %v10040_v1 = vld [vmem:[#allocation25_spill] sm:$0xff] }
 0x377   : > { %v5545_v19 = vpop.permute.xlu2 %5544  ;;  %v5505_v52 = vpop.permute.xlu0 %5504  ;;  %v10043_v23 = vunpack.i.l.bf16 %v8165_v47  ;;  %v10044_v34 = vld [vmem:[#allocation45_spill] sm:$0xff]  ;;  %v3373_v51 = vsel %vm1575_vm6, %v3341_v36, %v5432_v55 }
 0x378   : > { %v5495_v28 = vpop.permute.xlu1 %5494  ;;  %v5547_v38 = vunpack.i.h.bf16 %v5545_v19  ;;  %v5546_v26 = vunpack.i.l.bf16 %v5545_v19  ;;  %v5507_v33 = vunpack.i.h.bf16 %v5505_v52  ;;  %v5506_v0 = vunpack.i.l.bf16 %v5505_v52 }
 0x379   : > { %v5497_v4 = vunpack.i.h.bf16 %v5495_v28  ;;  %v5496_v3 = vunpack.i.l.bf16 %v5495_v28  ;;  %v3336_v6 = vsel %vm1542_vm4, %v10044_v34, %v10043_v23  ;;  %v10045_v28 = vld [vmem:[#allocation59_spill] sm:$0xff] }
 0x37a   : > { %v8476_v63 = vsel %vm1608_vm5, %v3382_v27, %v5546_v26  ;;  %v8479_v39 = vsel %vm1608_vm5, %v3383_v53, %v5547_v38  ;;  %v8486_v42 = vsel %vm1608_vm5, %v3367_v12, %v5507_v33  ;;  %v8489_v14 = vsel %vm1608_vm5, %v3366_v40, %v5506_v0  ;;  %v10042_v40 = vld [vmem:[#allocation14_spill] sm:$0xff]  ;;  %v10046_v38 = vld [vmem:[#allocation27_spill] sm:$0xff] }
 0x37b   : > { %v3394_v22 = vsel %vm1608_vm5, %v3362_v15, %v5496_v3  ;;  %v3395_v48 = vsel %vm1608_vm5, %v3363_v49, %v5497_v4  ;;  %v5482_v15 = vunpack.i.h.bf16 %v8421_v24  ;;  %v5481_v49 = vunpack.i.l.bf16 %v8421_v24  ;;  %v10047_v4 = vld [vmem:[#allocation60_spill] sm:$0xff] }
 0x37c   : > { %v10041_v12 = vunpack.i.h.bf16 %v8165_v47  ;;  %v3372_v24 = vsel %vm1575_vm6, %v3340_v31, %v5431_v11  ;;  %v3357_v26 = vsel %vm1542_vm4, %v10046_v38, %v5387_v41  ;;  %v3356_v3 = vsel %vm1542_vm4, %v10047_v4, %v5386_v54  ;;  %v10051_v38 = vld [vmem:[#allocation88_spill] sm:$0xff] }
 0x37d   : > { %5724 = vrot.lane.b32.xlu2 %v10040_v1, %s6060_s16  ;;  %5729 = vrot.lane.b32.xlu0 %v10045_v28, %s6060_s16  ;;  %v3368_v47 = vsel %vm1575_vm6, %v3336_v6, %v5421_v56  ;;  %v3388_v31 = vsel %vm1575_vm6, %v3356_v3, %v5481_v49  ;;  %v10049_v49 = vld [vmem:[#allocation9_spill] sm:$0xff]  ;;  %v5361_v4 = vunpack.i.l.bf16 %v10051_v38 }
 0x37e   : > { %5719 = vrot.lane.b32.xlu1 %v8081_v8, %s6060_s16  ;;  %v3337_v19 = vsel %vm1542_vm4, %v10042_v40, %v10041_v12  ;;  %v3389_v12 = vsel %vm1575_vm6, %v3357_v26, %v5482_v15  ;;  %v10048_v15 = vld [vmem:[#allocation20_spill] sm:$0xff]  ;;  %v10050_v6 = vld [vmem:[#allocation69_spill] sm:$0xff]  ;;  %v5362_v26 = vunpack.i.h.bf16 %v10051_v38 }
 0x37f   : > { %v3369_v52 = vsel %vm1575_vm6, %v3337_v19, %v5422_v62  ;;  %v5560_v27 = vpop.permute.xlu2 %5559  ;;  %v5520_v11 = vpop.permute.xlu0 %5519 }
 0x380   : > { %v5510_v53 = vpop.permute.xlu1 %5509  ;;  %v5562_v33 = vunpack.i.h.bf16 %v5560_v27  ;;  %v5561_v0 = vunpack.i.l.bf16 %v5560_v27  ;;  %v5522_v40 = vunpack.i.h.bf16 %v5520_v11  ;;  %v5521_v41 = vunpack.i.l.bf16 %v5520_v11 }
 0x381   : > { %v5512_v55 = vunpack.i.h.bf16 %v5510_v53  ;;  %v5511_v36 = vunpack.i.l.bf16 %v5510_v53 }
 0x382   : > { %v8522_v23 = vsel %vm1608_vm5, %v3388_v31, %v5561_v0  ;;  %v8525_v54 = vsel %vm1608_vm5, %v3389_v12, %v5562_v33  ;;  %v8530_v19 = vsel %vm1608_vm5, %v3373_v51, %v5522_v40  ;;  %v8533_v34 = vsel %vm1608_vm5, %v3372_v24, %v5521_v41  ;;  %v10052_v33 = vld [vmem:[#allocation41_spill] sm:$0xff] }
 0x383   : > { %v3400_v62 = vsel %vm1608_vm5, %v3368_v47, %v5511_v36  ;;  %v3401_v56 = vsel %vm1608_vm5, %v3369_v52, %v5512_v55  ;;  %v5377_v0 = vunpack.i.h.bf16 %v10052_v33  ;;  %v5376_v55 = vunpack.i.l.bf16 %v10052_v33 }
 0x385   : > { %5739 = vrot.lane.b32.xlu2 %v10049_v49, %s6061_s17  ;;  %5744 = vrot.lane.b32.xlu0 %v10050_v6, %s6061_s17 }
 0x386   : > { %5734 = vrot.lane.b32.xlu1 %v10048_v15, %s6061_s17  ;;  %v10053_v15 = vld [vmem:[#allocation58_spill] sm:$0xff] }
 0x387   : > { %v5575_v52 = vpop.permute.xlu2 %5574  ;;  %v5535_v53 = vpop.permute.xlu0 %5534  ;;  %v5472_v49 = vunpack.i.h.bf16 %v10053_v15  ;;  %v5471_v6 = vunpack.i.l.bf16 %v10053_v15 }
 0x388   : > { %v5525_v3 = vpop.permute.xlu1 %5524  ;;  %v5577_v27 = vunpack.i.h.bf16 %v5575_v52  ;;  %v5576_v24 = vunpack.i.l.bf16 %v5575_v52  ;;  %v5537_v36 = vunpack.i.h.bf16 %v5535_v53  ;;  %v5536_v11 = vunpack.i.l.bf16 %v5535_v53  ;;  %v10056_v52 = vld [vmem:[#allocation12_spill] sm:$0xff] }
 0x389   : > { %v5527_v51 = vunpack.i.h.bf16 %v5525_v3  ;;  %v5526_v47 = vunpack.i.l.bf16 %v5525_v3  ;;  %v10054_v3 = vld [vmem:[#allocation21_spill] sm:$0xff] }
 0x38a   : > { %v8550_v40 = vsel %vm1641_vm7, %v3394_v22, %v5576_v24  ;;  %v8553_v41 = vsel %vm1641_vm7, %v3395_v48, %v5577_v27  ;;  %v8559_v38 = vsel %vm1608_vm5, %v8375_v61, %v5537_v36  ;;  %v5446_v22 = vunpack.i.l.bf16 %v8355_v29  ;;  %v10055_v48 = vld [vmem:[#allocation42_spill] sm:$0xff]  ;;  %v10059_v24 = vld [vmem:[#allocation47_spill] sm:$0xff] }
 0x38b   : > { %v3406_v31 = vsel %vm1608_vm5, %v8341_v5, %v5526_v47  ;;  %v3407_v12 = vsel %vm1608_vm5, %v8338_v7, %v5527_v51  ;;  %v8563_v5 = vsel %vm1608_vm5, %v8372_v25, %v5536_v11  ;;  %v5447_v7 = vunpack.i.h.bf16 %v8355_v29  ;;  %v10057_v47 = vld [vmem:[#allocation56_spill] sm:$0xff]  ;;  %v10058_v25 = vld [vmem:[#allocation13_spill] sm:$0xff] }
 0x38c   : > { %v3353_v51 = vsel %vm1542_vm4, %v10056_v52, %v5377_v0  ;;  %v3352_v61 = vsel %vm1542_vm4, %v10057_v47, %v5376_v55  ;;  %v3349_v27 = vsel %vm1542_vm4, %v10058_v25, %v5362_v26  ;;  %v3348_v29 = vsel %vm1542_vm4, %v10059_v24, %v5361_v4 }
 0x38d   : > { %5754 = vrot.lane.b32.xlu2 %v10055_v48, %s6062_s24  ;;  %5759 = vrot.lane.b32.xlu0 %v7878_v35, %s6063_s25  ;;  %v3385_v53 = vsel %vm1575_vm6, %v3353_v51, %v5472_v49  ;;  %v3384_v33 = vsel %vm1575_vm6, %v3352_v61, %v5471_v6  ;;  %v3381_v52 = vsel %vm1575_vm6, %v3349_v27, %v5447_v7  ;;  %v10060_v51 = vld [vmem:[#allocation85_spill] sm:$0xff]  ;;  %v5477_v27 = vunpack.i.h.bf16 %v8393_v20 }
 0x38e   : > { %5749 = vrot.lane.b32.xlu1 %v10054_v3, %s6061_s17  ;;  %v3380_v35 = vsel %vm1575_vm6, %v3348_v29, %v5446_v22  ;;  %v5382_v61 = vunpack.i.h.bf16 %v10060_v51  ;;  %v5381_v24 = vunpack.i.l.bf16 %v10060_v51  ;;  %v5476_v29 = vunpack.i.l.bf16 %v8393_v20 }
 0x38f   : > { %v5590_v11 = vpop.permute.xlu2 %5589  ;;  %v5550_v55 = vpop.permute.xlu0 %5549 }
 0x390   : > { %v5540_v36 = vpop.permute.xlu1 %5539  ;;  %v5592_v3 = vunpack.i.h.bf16 %v5590_v11  ;;  %v5591_v48 = vunpack.i.l.bf16 %v5590_v11  ;;  %v5552_v47 = vunpack.i.h.bf16 %v5550_v55  ;;  %v5551_v26 = vunpack.i.l.bf16 %v5550_v55  ;;  %v10064_v11 = vld [vmem:[#allocation10_spill] sm:$0xff] }
 0x391   : > { %v5542_v15 = vunpack.i.h.bf16 %v5540_v36  ;;  %v5541_v0 = vunpack.i.l.bf16 %v5540_v36  ;;  %v10063_v36 = vld [vmem:[#allocation32_spill] sm:$0xff] }
 0x392   : > { %v8588_v49 = vsel %vm1641_vm7, %v3400_v62, %v5591_v48  ;;  %v8591_v6 = vsel %vm1641_vm7, %v3401_v56, %v5592_v3  ;;  %v8596_v7 = vsel %vm1608_vm5, %v3385_v53, %v5552_v47  ;;  %v8599_v22 = vsel %vm1608_vm5, %v3384_v33, %v5551_v26  ;;  %v10061_v62 = vld [vmem:[#allocation7_spill] sm:$0xff]  ;;  %v10062_v56 = vld [vmem:[#allocation92_spill] sm:$0xff] }
 0x393   : > { %v3412_v25 = vsel %vm1608_vm5, %v3380_v35, %v5541_v0  ;;  %v3413_v4 = vsel %vm1608_vm5, %v3381_v52, %v5542_v15  ;;  %v3355_v53 = vsel %vm1542_vm4, %v10063_v36, %v5382_v61  ;;  %v3354_v33 = vsel %vm1542_vm4, %v10064_v11, %v5381_v24 }
 0x394   : > { %v3387_v35 = vsel %vm1575_vm6, %v3355_v53, %v5477_v27 }
 0x395   : > { %5769 = vrot.lane.b32.xlu2 %v10037_v60, %s6063_s25  ;;  %5774 = vrot.lane.b32.xlu0 %v10062_v56, %s6061_s17  ;;  %v3386_v60 = vsel %vm1575_vm6, %v3354_v33, %v5476_v29  ;;  %v10065_v29 = vld [vmem:[#allocation11_spill] sm:$0xff] }
 0x396   : > { %5764 = vrot.lane.b32.xlu1 %v10061_v62, %s6062_s24 }
 0x397   : > { %v5605_v0 = vpop.permute.xlu2 %5604  ;;  %v5565_v52 = vpop.permute.xlu0 %5564 }
 0x398   : > { %v5555_v15 = vpop.permute.xlu1 %5554  ;;  %v5607_v20 = vunpack.i.h.bf16 %v5605_v0  ;;  %v5606_v55 = vunpack.i.l.bf16 %v5605_v0  ;;  %v5567_v47 = vunpack.i.h.bf16 %v5565_v52  ;;  %v5566_v26 = vunpack.i.l.bf16 %v5565_v52 }
 0x399   : > { %v5557_v3 = vunpack.i.h.bf16 %v5555_v15  ;;  %v5556_v48 = vunpack.i.l.bf16 %v5555_v15 }
 0x39a   : > { %v8618_v62 = vsel %vm1641_vm7, %v3406_v31, %v5606_v55  ;;  %v8621_v24 = vsel %vm1641_vm7, %v3407_v12, %v5607_v20  ;;  %v8625_v56 = vsel %vm1608_vm5, %v8327_v45, %v5567_v47  ;;  %v8629_v27 = vsel %vm1608_vm5, %v8324_v32, %v5566_v26  ;;  %v10066_v31 = vld [vmem:[#allocation17_spill] sm:$0xff] }
 0x39b   : > { %v3418_v51 = vsel %vm1608_vm5, %v3386_v60, %v5556_v48  ;;  %v3419_v61 = vsel %vm1608_vm5, %v3387_v35, %v5557_v3 }
 0x39d   : > { %5784 = vrot.lane.b32.xlu2 %v7928_v50, %s6063_s25  ;;  %5789 = vrot.lane.b32.xlu0 %v10066_v31, %s6062_s24 }
 0x39e   : > { %5779 = vrot.lane.b32.xlu1 %v10065_v29, %s6062_s24 }
 0x39f   : > { %v5620_v12 = vpop.permute.xlu2 %5619  ;;  %v5580_v15 = vpop.permute.xlu0 %5579 }
 0x3a0   : > { %v5570_v36 = vpop.permute.xlu1 %5569  ;;  %v5622_v33 = vunpack.i.h.bf16 %v5620_v12  ;;  %v5621_v45 = vunpack.i.l.bf16 %v5620_v12  ;;  %v5582_v0 = vunpack.i.h.bf16 %v5580_v15  ;;  %v5581_v3 = vunpack.i.l.bf16 %v5580_v15 }
 0x3a1   : > { %v5572_v53 = vunpack.i.h.bf16 %v5570_v36  ;;  %v5571_v11 = vunpack.i.l.bf16 %v5570_v36 }
 0x3a2   : > { %v8642_v50 = vsel %vm1641_vm7, %v3412_v25, %v5621_v45  ;;  %v8645_v20 = vsel %vm1641_vm7, %v3413_v4, %v5622_v33  ;;  %v8649_v55 = vsel %vm1641_vm7, %v8362_v10, %v5581_v3  ;;  %v8653_v52 = vsel %vm1641_vm7, %v8365_v58, %v5582_v0 }
 0x3a3   : > { %v3424_v32 = vsel %vm1608_vm5, %v8445_v59, %v5571_v11  ;;  %v3425_v48 = vsel %vm1608_vm5, %v8442_v37, %v5572_v53  ;;  %v10067_v59 = vld [vmem:[#allocation52_spill] sm:$0xff]  ;;  %v10068_v37 = vld [vmem:[#allocation55_spill] sm:$0xff] }
 0x3a5   : > { %5799 = vrot.lane.b32.xlu2 %v10067_v59, %s6061_s17  ;;  %5804 = vrot.lane.b32.xlu0 %v10068_v37, %s6062_s24 }
 0x3a6   : > { %5794 = vrot.lane.b32.xlu1 %v7826_v17, %s6063_s25 }
 0x3a7   : > { %v5635_v4 = vpop.permute.xlu2 %5634  ;;  %v5595_v26 = vpop.permute.xlu0 %5594 }
 0x3a8   : > { %v5585_v25 = vpop.permute.xlu1 %5584  ;;  %v5637_v47 = vunpack.i.h.bf16 %v5635_v4  ;;  %v5636_v10 = vunpack.i.l.bf16 %v5635_v4  ;;  %v5597_v29 = vunpack.i.h.bf16 %v5595_v26  ;;  %v5596_v31 = vunpack.i.l.bf16 %v5595_v26  ;;  %v10070_v4 = vld [vmem:[#allocation57_spill] sm:$0xff] }
 0x3a9   : > { %v5587_v35 = vunpack.i.h.bf16 %v5585_v25  ;;  %v5586_v60 = vunpack.i.l.bf16 %v5585_v25 }
 0x3aa   : > { %v8666_v36 = vsel %vm1641_vm7, %v3418_v51, %v5636_v10  ;;  %v8669_v12 = vsel %vm1641_vm7, %v3419_v61, %v5637_v47  ;;  %v8673_v53 = vsel %vm1641_vm7, %v8400_v18, %v5596_v31  ;;  %v8677_v11 = vsel %vm1641_vm7, %v8403_v2, %v5597_v29 }
 0x3ab   : > { %v3430_v58 = vsel %vm1641_vm7, %v8489_v14, %v5586_v60  ;;  %v3431_v17 = vsel %vm1641_vm7, %v8486_v42, %v5587_v35  ;;  %v10069_v14 = vld [vmem:[#allocation48_spill] sm:$0xff] }
 0x3ad   : > { %5814 = vrot.lane.b32.xlu2 %v10069_v14, %s6062_s24  ;;  %5819 = vrot.lane.b32.xlu0 %v7876_v43, %s6063_s25 }
 0x3ae   : > { %5809 = vrot.lane.b32.xlu1 %v7980_v46, %s6063_s25 }
 0x3af   : > { %v5650_v51 = vpop.permute.xlu2 %5649  ;;  %v5610_v15 = vpop.permute.xlu0 %5609 }
 0x3b0   : > { %v5600_v42 = vpop.permute.xlu1 %5599  ;;  %v5652_v45 = vunpack.i.h.bf16 %v5650_v51  ;;  %v5651_v18 = vunpack.i.l.bf16 %v5650_v51  ;;  %v5612_v0 = vunpack.i.h.bf16 %v5610_v15  ;;  %v5611_v3 = vunpack.i.l.bf16 %v5610_v15 }
 0x3b1   : > { %v5602_v61 = vunpack.i.h.bf16 %v5600_v42  ;;  %v5601_v33 = vunpack.i.l.bf16 %v5600_v42 }
 0x3b2   : > { %v8690_v59 = vsel %vm1641_vm7, %v3424_v32, %v5651_v18  ;;  %v8693_v43 = vsel %vm1641_vm7, %v3425_v48, %v5652_v45  ;;  %v8697_v37 = vsel %vm1641_vm7, %v8433_v9, %v5611_v3  ;;  %v8701_v25 = vsel %vm1641_vm7, %v8437_v44, %v5612_v0 }
 0x3b3   : > { %v3436_v2 = vsel %vm1641_vm7, %v8533_v34, %v5601_v33  ;;  %v3437_v46 = vsel %vm1641_vm7, %v8530_v19, %v5602_v61  ;;  %v10071_v34 = vld [vmem:[#allocation18_spill] sm:$0xff] }
 0x3b5   : > { %5829 = vrot.lane.b32.xlu2 %v10071_v34, %s6062_s24  ;;  %5834 = vrot.lane.b32.xlu0 %v8031_v30, %s6063_s25 }
 0x3b6   : > { %5824 = vrot.lane.b32.xlu1 %v10070_v4, %s6061_s17 }
 0x3b7   : > { %v5665_v32 = vpop.permute.xlu2 %5664  ;;  %v5625_v47 = vpop.permute.xlu0 %5624 }
 0x3b8   : > { %v5615_v19 = vpop.permute.xlu1 %5614  ;;  %v5667_v60 = vunpack.i.h.bf16 %v5665_v32  ;;  %v5666_v9 = vunpack.i.l.bf16 %v5665_v32  ;;  %v5627_v10 = vunpack.i.h.bf16 %v5625_v47  ;;  %v5626_v26 = vunpack.i.l.bf16 %v5625_v47 }
 0x3b9   : > { %v5617_v48 = vunpack.i.h.bf16 %v5615_v19  ;;  %v5616_v35 = vunpack.i.l.bf16 %v5615_v19  ;;  %v10074_v19 = vld [vmem:[#allocation23_spill] sm:$0xff] }
 0x3ba   : > { %v8718_v31 = vsel %vm1674_vm9, %v3430_v58, %v5666_v9  ;;  %v8721_v30 = vsel %vm1674_vm9, %v3431_v17, %v5667_v60  ;;  %v8725_v14 = vsel %vm1641_vm7, %v8476_v63, %v5626_v26  ;;  %v8729_v42 = vsel %vm1641_vm7, %v8479_v39, %v5627_v10  ;;  %v10077_v60 = vld [vmem:[#allocation31_spill] sm:$0xff] }
 0x3bb   : > { %v8711_v44 = vsel %vm1641_vm7, %v8563_v5, %v5616_v35  ;;  %v8715_v29 = vsel %vm1641_vm7, %v8559_v38, %v5617_v48  ;;  %v10072_v5 = vld [vmem:[#allocation50_spill] sm:$0xff]  ;;  %v10073_v38 = vld [vmem:[#allocation39_spill] sm:$0xff]  ;;  %v10076_v35 = vld [vmem:[#allocation81_spill] sm:$0xff] }
 0x3bd   : > { %5844 = vrot.lane.b32.xlu2 %v10073_v38, %s6062_s24  ;;  %5849 = vrot.lane.b32.xlu0 %v10038_v16, %s6063_s25 }
 0x3be   : > { %5839 = vrot.lane.b32.xlu1 %v10072_v5, %s6061_s17 }
 0x3bf   : > { %v5680_v17 = vpop.permute.xlu2 %5679  ;;  %v5640_v45 = vpop.permute.xlu0 %5639 }
 0x3c0   : > { %v5630_v58 = vpop.permute.xlu1 %5629  ;;  %v5682_v33 = vunpack.i.h.bf16 %v5680_v17  ;;  %v5681_v63 = vunpack.i.l.bf16 %v5680_v17  ;;  %v5642_v18 = vunpack.i.h.bf16 %v5640_v45  ;;  %v5641_v15 = vunpack.i.l.bf16 %v5640_v45 }
 0x3c1   : > { %v5632_v51 = vunpack.i.h.bf16 %v5630_v58  ;;  %v5631_v61 = vunpack.i.l.bf16 %v5630_v58 }
 0x3c2   : > { %v8742_v3 = vsel %vm1674_vm9, %v3436_v2, %v5681_v63  ;;  %v8745_v16 = vsel %vm1674_vm9, %v3437_v46, %v5682_v33  ;;  %v8749_v4 = vsel %vm1641_vm7, %v8522_v23, %v5641_v15  ;;  %v8753_v34 = vsel %vm1641_vm7, %v8525_v54, %v5642_v18 }
 0x3c3   : > { %v3448_v39 = vsel %vm1641_vm7, %v8599_v22, %v5631_v61  ;;  %v3449_v0 = vsel %vm1641_vm7, %v8596_v7, %v5632_v51  ;;  %v10075_v22 = vld [vmem:[#allocation29_spill] sm:$0xff] }
 0x3c5   : > { %5859 = vrot.lane.b32.xlu2 %v10075_v22, %s6062_s24  ;;  %5864 = vrot.lane.b32.xlu0 %v8081_v8, %s6063_s25 }
 0x3c6   : > { %5854 = vrot.lane.b32.xlu1 %v10074_v19, %s6061_s17 }
 0x3c7   : > { %v8761_v2 = vpop.permute.xlu2 %5694  ;;  %v8763_v23 = vpop.permute.xlu0 %5654 }
 0x3c8   : > { %v5645_v7 = vpop.permute.xlu1 %5644 }
 0x3c9   : > { %v5647_v46 = vunpack.i.h.bf16 %v5645_v7  ;;  %v5646_v32 = vunpack.i.l.bf16 %v5645_v7 }
 0x3cb   : > { %v3454_v54 = vsel %vm1641_vm7, %v8629_v27, %v5646_v32  ;;  %v3455_v48 = vsel %vm1641_vm7, %v8625_v56, %v5647_v46 }
 0x3cd   : > { %5874 = vrot.lane.b32.xlu2 %v10077_v60, %s6062_s24  ;;  %5879 = vrot.lane.b32.xlu0 %v7978_v57, %s6063_s25  ;;  %v10080_v60 = vld [vmem:[#allocation66_spill] sm:$0xff] }
 0x3ce   : > { %5869 = vrot.lane.b32.xlu1 %v10076_v35, %s6061_s17 }
 0x3cf   : > { %v5710_v9 = vpop.permute.xlu2 %5709  ;;  %v5670_v38 = vpop.permute.xlu0 %5669 }
 0x3d0   : > { %v5660_v8 = vpop.permute.xlu1 %5659  ;;  %v5712_v26 = vunpack.i.h.bf16 %v5710_v9  ;;  %v5711_v5 = vunpack.i.l.bf16 %v5710_v9  ;;  %v5672_v27 = vunpack.i.h.bf16 %v5670_v38  ;;  %v5671_v58 = vunpack.i.l.bf16 %v5670_v38  ;;  %v4578_v38 = vld [vmem:[#allocation2 + $0xe8] sm:$0xff] }
 0x3d1   : > { %v5662_v47 = vunpack.i.h.bf16 %v5660_v8  ;;  %v5661_v10 = vunpack.i.l.bf16 %v5660_v8 }
 0x3d2   : > { %v8784_v51 = vsel %vm1674_vm9, %v3448_v39, %v5711_v5  ;;  %v8787_v57 = vsel %vm1674_vm9, %v3449_v0, %v5712_v26  ;;  %v8791_v61 = vsel %vm1674_vm9, %v8588_v49, %v5671_v58  ;;  %v8795_v33 = vsel %vm1674_vm9, %v8591_v6, %v5672_v27  ;;  %v4577_v27 = vld [vmem:[#allocation2 + $0xe0] sm:$0xff]  ;;  %v10082_v58 = vld [vmem:[#allocation15_spill] sm:$0xff] }
 0x3d3   : > { %v8777_v56 = vsel %vm1674_vm9, %v8649_v55, %v5661_v10  ;;  %v8781_v17 = vsel %vm1674_vm9, %v8653_v52, %v5662_v47  ;;  %v10078_v55 = vld [vmem:[#allocation22_spill] sm:$0xff] }
 0x3d4   : > { %v10079_v52 = vld [vmem:[#allocation26_spill] sm:$0xff] }
 0x3d5   : > { %5889 = vrot.lane.b32.xlu2 %v10079_v52, %s6062_s24  ;;  %5894 = vrot.lane.b32.xlu0 %v10040_v1, %s6063_s25  ;;  %v2291_v52 = vrot.slane %v4578_v38, 5 }
 0x3d6   : > { %5884 = vrot.lane.b32.xlu1 %v10078_v55, %s6061_s17  ;;  %v10083_v55 = vld [vmem:[#allocation53_spill] sm:$0xff] }
 0x3d7   : > { %v5725_v45 = vpop.permute.xlu2 %5724  ;;  %v5685_v0 = vpop.permute.xlu0 %5684 }
 0x3d8   : > { %v5675_v63 = vpop.permute.xlu1 %5674  ;;  %v5727_v39 = vunpack.i.h.bf16 %v5725_v45  ;;  %v5726_v49 = vunpack.i.l.bf16 %v5725_v45  ;;  %v5687_v19 = vunpack.i.h.bf16 %v5685_v0  ;;  %v5686_v22 = vunpack.i.l.bf16 %v5685_v0 }
 0x3d9   : > { %v5677_v18 = vunpack.i.h.bf16 %v5675_v63  ;;  %v5676_v15 = vunpack.i.l.bf16 %v5675_v63 }
 0x3da   : > { %v8812_v46 = vsel %vm1674_vm9, %v3454_v54, %v5726_v49  ;;  %v8815_v1 = vsel %vm1674_vm9, %v3455_v48, %v5727_v39  ;;  %v8819_v32 = vsel %vm1674_vm9, %v8618_v62, %v5686_v22  ;;  %v8823_v35 = vsel %vm1674_vm9, %v8621_v24, %v5687_v19  ;;  %v10081_v54 = vld [vmem:[#allocation24_spill] sm:$0xff] }
 0x3db   : > { %v8805_v6 = vsel %vm1674_vm9, %v8673_v53, %v5676_v15  ;;  %v8809_v7 = vsel %vm1674_vm9, %v8677_v11, %v5677_v18  ;;  %v249_v53 = vld [vmem:[%s9567_s3 + $0x10] sm:$0x3]  ;;  %v2131_v18 = vrot.slane %v4577_v27, 1  ;;  %v2219_v15 = vrot.slane %v4577_v27, 7 }
 0x3dc   : > { %v3614_v11 = vunpack.c.l.b16 %v249_v53 }
 0x3dd   : > { %5904 = vrot.lane.b32.xlu2 %v10081_v54, %s6062_s24  ;;  %5909 = vrot.lane.b32.xlu0 %v8029_v21, %s6063_s25  ;;  %v4612_v21 = vld [vmem:[%s9567_s3 + $0x8] sm:$0xff] }
 0x3de   : > { %5899 = vrot.lane.b32.xlu1 %v10080_v60, %s6061_s17  ;;  %v3617_v62 = vpack.c.b16 %v3614_v11, %v3614_v11  ;;  %v2327_v11 = vsel %vm377_vm0, %v2131_v18, %v2219_v15 }
 0x3df   : > { %v8834_v8 = vpop.permute.xlu2 %5739  ;;  %v8836_v47 = vpop.permute.xlu0 %5699 }
 0x3e0   : > { %v5690_v48 = vpop.permute.xlu1 %5689  ;;  %v3669_v10 = vsel %vm1889_vm3, %v3617_v62, 0  ;;  %v10084_v62 = vld [vmem:[#allocation95_spill] sm:$0xff]  ;;  %vm4428_vm3 = vcmask 490496  }
 0x3e1   : > { %v5692_v24 = vunpack.i.h.bf16 %v5690_v48  ;;  %v5691_v9 = vunpack.i.l.bf16 %v5690_v48  ;;  %4617 = vmatpush.bf16.msra.mxu3 %v3669_v10  ;;  %3676 = vmatpush.bf16.msra.mxu1 %v3669_v10  ;;  %v10085_v48 = vld [vmem:[#allocation28_spill] sm:$0xff] }
 0x3e3   : > { %v8841_v26 = vsel %vm1674_vm9, %v8697_v37, %v5691_v9  ;;  %v8845_v5 = vsel %vm1674_vm9, %v8701_v25, %v5692_v24  ;;  %v2220_v37 = vrot.slane %v4578_v38, 7  ;;  %v4611_v25 = vld [vmem:[%s9567_s3] sm:$0xff]  ;;  %v3229_v38 = vrot.slane %v2327_v11, 2 }
 0x3e5   : > { %5919 = vrot.lane.b32.xlu2 %v10083_v55, %s6062_s24  ;;  %5924 = vrot.lane.b32.xlu0 %v10045_v28, %s6063_s25  ;;  %v2221_v19 = vsel %vm377_vm0, %v2219_v15, %v2220_v37  ;;  %v2345_v22 = vsel %vm377_vm0, %v2220_v37, %v2291_v52  ;;  %vm4419_vm0 = vcmask 392192  }
 0x3e6   : > { %5914 = vrot.lane.b32.xlu1 %v10082_v58, %s6061_s17  ;;  %4618 = vmatpush.bf16.msra.mxu3 %v4612_v21  ;;  %v3129_v60 = vrot.slane %v2221_v19, 1  ;;  %v3131_v54 = vrot.slane %v2345_v22, 1  ;;  %v3230_v24 = vrot.slane %v2221_v19, 2  ;;  %v3232_v9 = vrot.slane %v2345_v22, 2 }
 0x3e7   : > { %v8861_v45 = vpop.permute.xlu2 %5754  ;;  %3677 = vmatpush.bf16.msra.mxu1 %v4612_v21  ;;  %v5715_v39 = vpop.permute.xlu0 %5714  ;;  %v5943_v22 = vpack.i.bf16 %v2221_v19, %v2327_v11  ;;  %v10087_v19 = vld [vmem:[#allocation16_spill] sm:$0xff] }
 0x3e8   : > { %v8859_v63 = vpop.permute.xlu1 %5704  ;;  %v5717_v49 = vunpack.i.h.bf16 %v5715_v39  ;;  %v5716_v0 = vunpack.i.l.bf16 %v5715_v39  ;;  %v3132_v37 = vsel %vm588_vm1, %v3129_v60, %v3131_v54  ;;  %v3231_v18 = vsel %vm765_vm2, %v3229_v38, %v3230_v24 }
 0x3e9   : > { %v3233_v15 = vsel %vm765_vm2, %v3230_v24, %v3232_v9  ;;  %vm4425_vm2 = vcmask 457728  }
 0x3ea   : > { %4619 = vmatpush.bf16.msra.mxu3 %v4611_v25  ;;  %v8867_v28 = vsel %vm1674_vm9, %v8666_v36, %v5716_v0  ;;  %v8871_v53 = vsel %vm1674_vm9, %v8669_v12, %v5717_v49  ;;  %v3128_v36 = vrot.slane %v2327_v11, 1  ;;  %v5953_v54 = vpack.i.bf16 %v3233_v15, %v3231_v18  ;;  %v10088_v11 = vld [vmem:[#allocation46_spill] sm:$0xff] }
 0x3eb   : > { %3678 = vmatpush.bf16.msra.mxu1 %v4611_v25 }
 0x3ec   : > { %v3130_v55 = vsel %vm588_vm1, %v3128_v36, %v3129_v60  ;;  %vm4422_vm1 = vcmask 424960  }
 0x3ed   : > { %5934 = vrot.lane.b32.xlu2 %v10085_v48, %s6062_s24  ;;  %5939 = vrot.lane.b32.xlu0 %v8078_v13, %s6063_s25  ;;  %v5948_v60 = vpack.i.bf16 %v3132_v37, %v3130_v55  ;;  %v5696_v48 = vunpack.i.l.bf16 %v8761_v2 }
 0x3ee   : > { %5929 = vrot.lane.b32.xlu1 %v10084_v62, %s6061_s17 }
 0x3ef   : > { %v8880_v12 = vpop.permute.xlu2 %5769  ;;  %v5730_v58 = vpop.permute.xlu0 %5729 }
 0x3f0   : > { %v5720_v10 = vpop.permute.xlu1 %5719  ;;  %v5732_v52 = vunpack.i.h.bf16 %v5730_v58  ;;  %v5731_v25 = vunpack.i.l.bf16 %v5730_v58  ;;  %v5756_v58 = vunpack.i.l.bf16 %v8861_v45 }
 0x3f1   : > { %v5722_v21 = vunpack.i.h.bf16 %v5720_v10  ;;  %v5721_v27 = vunpack.i.l.bf16 %v5720_v10 }
 0x3f2   : > { %v8896_v49 = vsel %vm1674_vm9, %v8690_v59, %v5731_v25  ;;  %v8900_v0 = vsel %vm1674_vm9, %v8693_v43, %v5732_v52  ;;  %v5697_v59 = vunpack.i.h.bf16 %v8761_v2  ;;  %v10086_v43 = vld [vmem:[#allocation79_spill] sm:$0xff] }
 0x3f3   : > { %v8888_v13 = vsel %vm1674_vm9, %v8749_v4, %v5721_v27  ;;  %v8892_v39 = vsel %vm1674_vm9, %v8753_v34, %v5722_v21  ;;  %v3474_v21 = vsel %vm1674_vm9, %v8711_v44, %v5696_v48  ;;  %v5757_v27 = vunpack.i.h.bf16 %v8861_v45 }
 0x3f4   : > { %v3475_v2 = vsel %vm1674_vm9, %v8715_v29, %v5697_v59  ;;  %v5656_v44 = vunpack.i.l.bf16 %v8763_v23 }
 0x3f5   : > { %5949 = vrot.lane.b32.xlu2 %v5948_v60, %s6062_s24  ;;  %5954 = vrot.lane.b32.xlu0 %v5953_v54, %s6063_s25 }
 0x3f6   : > { %5944 = vrot.lane.b32.xlu1 %v5943_v22, %s6061_s17  ;;  %v5657_v22 = vunpack.i.h.bf16 %v8763_v23  ;;  %v5772_v23 = vunpack.i.h.bf16 %v8880_v12 }
 0x3f7   : > { %v8905_v34 = vpop.permute.xlu2 %5784  ;;  %v8907_v62 = vpop.permute.xlu0 %5744 }
 0x3f8   : > { %v5735_v4 = vpop.permute.xlu1 %5734 }
 0x3f9   : > { %v5737_v54 = vunpack.i.h.bf16 %v5735_v4  ;;  %v5736_v45 = vunpack.i.l.bf16 %v5735_v4 }
 0x3fd   : > { %5964 = vrot.lane.b32.xlu2 %v10087_v19, %s6062_s24  ;;  %5969 = vrot.lane.b32.xlu0 %v10088_v11, %s6063_s25  ;;  %v3459_v19 = vsel %vm1674_vm9, %v8553_v41, %v5657_v22 }
 0x3fe   : > { %5959 = vrot.lane.b32.xlu1 %v10086_v43, %s6061_s17  ;;  %v3458_v43 = vsel %vm1674_vm9, %v8550_v40, %v5656_v44  ;;  %v3491_v4 = vsel %vm1707_vm8, %v3459_v19, %v5737_v54  ;;  %v5786_v54 = vunpack.i.l.bf16 %v8905_v34  ;;  %v5741_v19 = vunpack.i.l.bf16 %v8834_v8 }
 0x3ff   : > { %v8917_v10 = vpop.permute.xlu2 %5799  ;;  %v5760_v38 = vpop.permute.xlu0 %5759 }
 0x400   : > { %v5750_v24 = vpop.permute.xlu1 %5749  ;;  %v5762_v52 = vunpack.i.h.bf16 %v5760_v38  ;;  %v5761_v25 = vunpack.i.l.bf16 %v5760_v38  ;;  %v3490_v38 = vsel %vm1707_vm8, %v3458_v43, %v5736_v45 }
 0x401   : > { %v5752_v9 = vunpack.i.h.bf16 %v5750_v24  ;;  %v5751_v36 = vunpack.i.l.bf16 %v5750_v24 }
 0x403   : > { %v3506_v55 = vsel %vm1707_vm8, %v3474_v21, %v5751_v36  ;;  %v3507_v37 = vsel %vm1707_vm8, %v3475_v2, %v5752_v9  ;;  %v5771_v36 = vunpack.i.l.bf16 %v8880_v12 }
 0x404   : > { %v3538_v18 = vsel %vm1740_vm10, %v3506_v55, %v5756_v58  ;;  %v3539_v15 = vsel %vm1740_vm10, %v3507_v37, %v5757_v27  ;;  %v5702_v58 = vunpack.i.h.bf16 %v8836_v47  ;;  %v5701_v55 = vunpack.i.l.bf16 %v8836_v47 }
 0x405   : > { %v3570_v29 = vsel %vm1773_vm11, %v3538_v18, %v5761_v25  ;;  %v3571_v60 = vsel %vm1773_vm11, %v3539_v15, %v5762_v52 }
 0x406   : > { %v3594_v59 = vpack.c.bf16 %v3571_v60, %v3570_v29  ;;  %v3476_v18 = vsel %vm1674_vm9, %v8642_v50, %v5701_v55  ;;  %v3477_v15 = vsel %vm1674_vm9, %v8645_v20, %v5702_v58  ;;  %v5787_v60 = vunpack.i.h.bf16 %v8905_v34 }
 0x407   : > { %v5775_v9 = vpop.permute.xlu0 %5774  ;;  %v8944_v27 = vpop.permute.xlu2 %5814  ;;  %v5742_v20 = vunpack.i.h.bf16 %v8834_v8 }
 0x408   : > { %v5765_v48 = vpop.permute.xlu1 %5764  ;;  %4595 = vmatmul.msk.bf16.vlgmr.msra.gmra.mxu3 %vm9753_vm12, %v3594_v59  ;;  %v5777_v12 = vunpack.i.h.bf16 %v5775_v9  ;;  %v5776_v52 = vunpack.i.l.bf16 %v5775_v9 }
 0x409   : > { %v5767_v11 = vunpack.i.h.bf16 %v5765_v48  ;;  %v5766_v24 = vunpack.i.l.bf16 %v5765_v48 }
 0x40a   : > { %v3508_v47 = vsel %vm1707_vm8, %v3476_v18, %v5776_v52  ;;  %v3509_v45 = vsel %vm1707_vm8, %v3477_v15, %v5777_v12  ;;  %v5746_v12 = vunpack.i.l.bf16 %v8907_v62  ;;  %v5802_v52 = vunpack.i.h.bf16 %v8917_v10 }
 0x40b   : > { %v3522_v21 = vsel %vm1740_vm10, %v3490_v38, %v5766_v24  ;;  %v3523_v2 = vsel %vm1740_vm10, %v3491_v4, %v5767_v11  ;;  %v3493_v38 = vsel %vm1707_vm8, %v8781_v17, %v5742_v20 }
 0x40c   : > { %v3554_v40 = vsel %vm1773_vm11, %v3522_v21, %v5771_v36  ;;  %v3555_v41 = vsel %vm1773_vm11, %v3523_v2, %v5772_v23  ;;  %v3492_v36 = vsel %vm1707_vm8, %v8777_v56, %v5741_v19  ;;  %v5747_v56 = vunpack.i.h.bf16 %v8907_v62 }
 0x40d   : > { %v3586_v37 = vpack.c.bf16 %v3555_v41, %v3554_v40  ;;  %v5707_v41 = vunpack.i.h.bf16 %v8859_v63 }
 0x40f   : > { %4587 = vmatmul.msk.bf16.vlgmr.msra.gmra.mxu1 %vm9753_vm12, %v3586_v37  ;;  %v5790_v29 = vpop.permute.xlu0 %5789  ;;  %v8965_v11 = vpop.permute.xlu2 %5829  ;;  %v5706_v37 = vunpack.i.l.bf16 %v8859_v63  ;;  %v3479_v62 = vsel %vm1674_vm9, %v8729_v42, %v5707_v41 }
 0x410   : > { %v5780_v25 = vpop.permute.xlu1 %5779  ;;  %v5792_v34 = vunpack.i.h.bf16 %v5790_v29  ;;  %v5791_v9 = vunpack.i.l.bf16 %v5790_v29 }
 0x411   : > { %v5782_v22 = vunpack.i.h.bf16 %v5780_v25  ;;  %v5781_v44 = vunpack.i.l.bf16 %v5780_v25  ;;  %v5801_v25 = vunpack.i.l.bf16 %v8917_v10  ;;  %v3478_v63 = vsel %vm1674_vm9, %v8725_v14, %v5706_v37 }
 0x412   : > { %v3524_v40 = vsel %vm1740_vm10, %v3492_v36, %v5791_v9  ;;  %v3525_v8 = vsel %vm1740_vm10, %v3493_v38, %v5792_v34  ;;  %v3495_v10 = vsel %vm1707_vm8, %v8721_v30, %v5747_v56 }
 0x413   : > { %v3540_v59 = vsel %vm1740_vm10, %v3508_v47, %v5781_v44  ;;  %v3541_v48 = vsel %vm1740_vm10, %v3509_v45, %v5782_v22  ;;  %v5817_v22 = vunpack.i.h.bf16 %v8944_v27  ;;  %v5816_v44 = vunpack.i.l.bf16 %v8944_v27 }
 0x414   : > { %v3572_v50 = vsel %vm1773_vm11, %v3540_v59, %v5786_v54  ;;  %v3573_v43 = vsel %vm1773_vm11, %v3541_v48, %v5787_v60  ;;  %v3494_v60 = vsel %vm1707_vm8, %v8718_v31, %v5746_v12  ;;  %v3510_v47 = vsel %vm1707_vm8, %v3478_v63, %v5801_v25 }
 0x415   : > { %v3595_v24 = vpack.c.bf16 %v3573_v43, %v3572_v50  ;;  %v3511_v27 = vsel %vm1707_vm8, %v3479_v62, %v5802_v52  ;;  %v3526_v20 = vsel %vm1740_vm10, %v3494_v60, %v5816_v44  ;;  %v3527_v31 = vsel %vm1740_vm10, %v3495_v10, %v5817_v22 }
 0x417   : > { %v5805_v2 = vpop.permute.xlu0 %5804  ;;  %v5845_v29 = vpop.permute.xlu2 %5844 }
 0x418   : > { %v5795_v23 = vpop.permute.xlu1 %5794  ;;  %4596 = vmatmul.msk.bf16.gmra.mxu3 %vm9753_vm12, %v3595_v24  ;;  %v5807_v18 = vunpack.i.h.bf16 %v5805_v2  ;;  %v5806_v15 = vunpack.i.l.bf16 %v5805_v2  ;;  %v5847_v22 = vunpack.i.h.bf16 %v5845_v29  ;;  %v5846_v44 = vunpack.i.l.bf16 %v5845_v29 }
 0x419   : > { %v5797_v4 = vunpack.i.h.bf16 %v5795_v23  ;;  %v5796_v21 = vunpack.i.l.bf16 %v5795_v23 }
 0x41a   : > { %v3542_v50 = vsel %vm1740_vm10, %v3510_v47, %v5806_v15  ;;  %v3543_v14 = vsel %vm1740_vm10, %v3511_v27, %v5807_v18 }
 0x41b   : > { %v3556_v58 = vsel %vm1773_vm11, %v3524_v40, %v5796_v21  ;;  %v3557_v55 = vsel %vm1773_vm11, %v3525_v8, %v5797_v4  ;;  %v5832_v40 = vunpack.i.h.bf16 %v8965_v11  ;;  %v5831_v8 = vunpack.i.l.bf16 %v8965_v11 }
 0x41c   : > { %v3587_v17 = vpack.c.bf16 %v3557_v55, %v3556_v58 }
 0x41f   : > { %4588 = vmatmul.msk.bf16.gmra.mxu1 %vm9753_vm12, %v3587_v17  ;;  %v5820_v48 = vpop.permute.xlu0 %5819  ;;  %v5860_v38 = vpop.permute.xlu2 %5859 }
 0x420   : > { %v5810_v54 = vpop.permute.xlu1 %5809  ;;  %v5822_v43 = vunpack.i.h.bf16 %v5820_v48  ;;  %v5821_v42 = vunpack.i.l.bf16 %v5820_v48 }
 0x421   : > { %v5812_v45 = vunpack.i.h.bf16 %v5810_v54  ;;  %v5811_v59 = vunpack.i.l.bf16 %v5810_v54 }
 0x422   : > { %v3558_v34 = vsel %vm1773_vm11, %v3526_v20, %v5821_v42  ;;  %v3559_v9 = vsel %vm1773_vm11, %v3527_v31, %v5822_v43  ;;  %v5861_v43 = vunpack.i.l.bf16 %v5860_v38 }
 0x423   : > { %v3574_v30 = vsel %vm1773_vm11, %v3542_v50, %v5811_v59  ;;  %v3575_v19 = vsel %vm1773_vm11, %v3543_v14, %v5812_v45  ;;  %v3588_v23 = vpack.c.bf16 %v3559_v9, %v3558_v34  ;;  %v5862_v14 = vunpack.i.h.bf16 %v5860_v38 }
 0x424   : > { %v3596_v24 = vpack.c.bf16 %v3575_v19, %v3574_v30 }
 0x427   : > { %v5835_v2 = vpop.permute.xlu0 %5834 }
 0x428   : > { %v5825_v36 = vpop.permute.xlu1 %5824  ;;  %4597 = vmatmul.msk.bf16.gmra.mxu3 %vm9753_vm12, %v3596_v24  ;;  %v5837_v55 = vunpack.i.h.bf16 %v5835_v2  ;;  %v5836_v37 = vunpack.i.l.bf16 %v5835_v2 }
 0x429   : > { %v5827_v4 = vunpack.i.h.bf16 %v5825_v36  ;;  %v5826_v21 = vunpack.i.l.bf16 %v5825_v36 }
 0x42b   : > { %v3512_v41 = vsel %vm1707_vm8, %v8784_v51, %v5826_v21  ;;  %v3513_v58 = vsel %vm1707_vm8, %v8787_v57, %v5827_v4  ;;  %v5875_v57 = vpop.permute.xlu2 %5874 }
 0x42c   : > { %v3544_v56 = vsel %vm1740_vm10, %v3512_v41, %v5831_v8  ;;  %v3545_v12 = vsel %vm1740_vm10, %v3513_v58, %v5832_v40  ;;  %v5877_v21 = vunpack.i.h.bf16 %v5875_v57 }
 0x42d   : > { %v3576_v17 = vsel %vm1773_vm11, %v3544_v56, %v5836_v37  ;;  %v3577_v52 = vsel %vm1773_vm11, %v3545_v12, %v5837_v55 }
 0x42e   : > { %v3597_v25 = vpack.c.bf16 %v3577_v52, %v3576_v17 }
 0x42f   : > { %4589 = vmatmul.msk.bf16.gmra.mxu1 %vm9753_vm12, %v3588_v23  ;;  %v5850_v51 = vpop.permute.xlu0 %5849 }
 0x430   : > { %v5840_v11 = vpop.permute.xlu1 %5839  ;;  %v5852_v60 = vunpack.i.h.bf16 %v5850_v51  ;;  %v5851_v10 = vunpack.i.l.bf16 %v5850_v51 }
 0x431   : > { %v5842_v18 = vunpack.i.h.bf16 %v5840_v11  ;;  %v5841_v15 = vunpack.i.l.bf16 %v5840_v11 }
 0x433   : > { %v3496_v63 = vsel %vm1707_vm8, %v8791_v61, %v5841_v15  ;;  %v3497_v62 = vsel %vm1707_vm8, %v8795_v33, %v5842_v18  ;;  %v5890_v24 = vpop.permute.xlu2 %5889 }
 0x434   : > { %v3528_v54 = vsel %vm1740_vm10, %v3496_v63, %v5846_v44  ;;  %v3529_v47 = vsel %vm1740_vm10, %v3497_v62, %v5847_v22  ;;  %v5892_v18 = vunpack.i.h.bf16 %v5890_v24 }
 0x435   : > { %v3560_v27 = vsel %vm1773_vm11, %v3528_v54, %v5851_v10  ;;  %v3561_v45 = vsel %vm1773_vm11, %v3529_v47, %v5852_v60 }
 0x436   : > { %v3589_v59 = vpack.c.bf16 %v3561_v45, %v3560_v27 }
 0x437   : > { %v5865_v61 = vpop.permute.xlu0 %5864 }
 0x438   : > { %v5855_v48 = vpop.permute.xlu1 %5854  ;;  %4598 = vmatmul.msk.bf16.gmra.mxu3 %vm9753_vm12, %v3597_v25  ;;  %v5867_v20 = vunpack.i.h.bf16 %v5865_v61  ;;  %v5866_v31 = vunpack.i.l.bf16 %v5865_v61 }
 0x439   : > { %v5857_v29 = vunpack.i.h.bf16 %v5855_v48  ;;  %v5856_v50 = vunpack.i.l.bf16 %v5855_v48 }
 0x43b   : > { %v3514_v33 = vsel %vm1707_vm8, %v8867_v28, %v5856_v50  ;;  %v3515_v42 = vsel %vm1707_vm8, %v8871_v53, %v5857_v29  ;;  %v5876_v53 = vunpack.i.l.bf16 %v5875_v57  ;;  %v5905_v17 = vpop.permute.xlu2 %5904 }
 0x43c   : > { %v3546_v30 = vsel %vm1740_vm10, %v3514_v33, %v5861_v43  ;;  %v3547_v19 = vsel %vm1740_vm10, %v3515_v42, %v5862_v14 }
 0x43d   : > { %v3578_v34 = vsel %vm1773_vm11, %v3546_v30, %v5866_v31  ;;  %v3579_v9 = vsel %vm1773_vm11, %v3547_v19, %v5867_v20 }
 0x43e   : > { %v3598_v23 = vpack.c.bf16 %v3579_v9, %v3578_v34 }
 0x43f   : > { %4590 = vmatmul.msk.bf16.gmra.mxu1 %vm9753_vm12, %v3589_v59  ;;  %v5880_v4 = vpop.permute.xlu0 %5879  ;;  %v5907_v59 = vunpack.i.h.bf16 %v5905_v17 }
 0x440   : > { %v5870_v36 = vpop.permute.xlu1 %5869  ;;  %v5882_v8 = vunpack.i.h.bf16 %v5880_v4  ;;  %v5881_v41 = vunpack.i.l.bf16 %v5880_v4 }
 0x441   : > { %v5872_v38 = vunpack.i.h.bf16 %v5870_v36  ;;  %v5871_v28 = vunpack.i.l.bf16 %v5870_v36 }
 0x443   : > { %v3498_v2 = vsel %vm1707_vm8, %v8805_v6, %v5871_v28  ;;  %v3499_v40 = vsel %vm1707_vm8, %v8809_v7, %v5872_v38  ;;  %v5891_v7 = vunpack.i.l.bf16 %v5890_v24  ;;  %v5920_v47 = vpop.permute.xlu2 %5919 }
 0x444   : > { %v3530_v58 = vsel %vm1740_vm10, %v3498_v2, %v5876_v53  ;;  %v3531_v55 = vsel %vm1740_vm10, %v3499_v40, %v5877_v21  ;;  %v5922_v24 = vunpack.i.h.bf16 %v5920_v47  ;;  %v5921_v34 = vunpack.i.l.bf16 %v5920_v47 }
 0x445   : > { %v3562_v37 = vsel %vm1773_vm11, %v3530_v58, %v5881_v41  ;;  %v3563_v56 = vsel %vm1773_vm11, %v3531_v55, %v5882_v8 }
 0x446   : > { %v3590_v12 = vpack.c.bf16 %v3563_v56, %v3562_v37 }
 0x447   : > { %v5895_v11 = vpop.permute.xlu0 %5894 }
 0x448   : > { %v5885_v52 = vpop.permute.xlu1 %5884  ;;  %4599 = vmatmul.msk.bf16.gmra.mxu3 %vm9753_vm12, %v3598_v23  ;;  %v5897_v22 = vunpack.i.h.bf16 %v5895_v11  ;;  %v5896_v44 = vunpack.i.l.bf16 %v5895_v11 }
 0x449   : > { %v5887_v25 = vunpack.i.h.bf16 %v5885_v52  ;;  %v5886_v6 = vunpack.i.l.bf16 %v5885_v52 }
 0x44b   : > { %v3516_v15 = vsel %vm1707_vm8, %v8888_v13, %v5886_v6  ;;  %v3517_v51 = vsel %vm1707_vm8, %v8892_v39, %v5887_v25  ;;  %v5906_v39 = vunpack.i.l.bf16 %v5905_v17 }
 0x44c   : > { %v3548_v57 = vsel %vm1740_vm10, %v3516_v15, %v5891_v7  ;;  %v3549_v63 = vsel %vm1740_vm10, %v3517_v51, %v5892_v18 }
 0x44d   : > { %v3580_v62 = vsel %vm1773_vm11, %v3548_v57, %v5896_v44  ;;  %v3581_v60 = vsel %vm1773_vm11, %v3549_v63, %v5897_v22 }
 0x44e   : > { %v3599_v10 = vpack.c.bf16 %v3581_v60, %v3580_v62 }
 0x44f   : > { %4591 = vmatmul.msk.bf16.gmra.mxu1 %vm9753_vm12, %v3590_v12  ;;  %v5910_v45 = vpop.permute.xlu0 %5909 }
 0x450   : > { %v5900_v54 = vpop.permute.xlu1 %5899  ;;  %v5912_v50 = vunpack.i.h.bf16 %v5910_v45  ;;  %v5911_v61 = vunpack.i.l.bf16 %v5910_v45 }
 0x451   : > { %v5902_v27 = vunpack.i.h.bf16 %v5900_v54  ;;  %v5901_v13 = vunpack.i.l.bf16 %v5900_v54 }
 0x453   : > { %v3500_v48 = vsel %vm1707_vm8, %v8742_v3, %v5901_v13  ;;  %v3501_v29 = vsel %vm1707_vm8, %v8745_v16, %v5902_v27  ;;  %v5935_v16 = vpop.permute.xlu2 %5934 }
 0x454   : > { %v3532_v14 = vsel %vm1740_vm10, %v3500_v48, %v5906_v39  ;;  %v3533_v43 = vsel %vm1740_vm10, %v3501_v29, %v5907_v59  ;;  %v5937_v58 = vunpack.i.h.bf16 %v5935_v16  ;;  %v5936_v55 = vunpack.i.l.bf16 %v5935_v16 }
 0x455   : > { %v3564_v33 = vsel %vm1773_vm11, %v3532_v14, %v5911_v61  ;;  %v3565_v42 = vsel %vm1773_vm11, %v3533_v43, %v5912_v50 }
 0x456   : > { %v3591_v20 = vpack.c.bf16 %v3565_v42, %v3564_v33 }
 0x457   : > { %v5925_v3 = vpop.permute.xlu0 %5924 }
 0x458   : > { %v5915_v31 = vpop.permute.xlu1 %5914  ;;  %4600 = vmatmul.msk.bf16.gmra.mxu3 %vm9753_vm12, %v3599_v10  ;;  %v5927_v36 = vunpack.i.h.bf16 %v5925_v3  ;;  %v5926_v38 = vunpack.i.l.bf16 %v5925_v3 }
 0x459   : > { %v5917_v30 = vunpack.i.h.bf16 %v5915_v31  ;;  %v5916_v19 = vunpack.i.l.bf16 %v5915_v31 }
 0x45b   : > { %v3518_v9 = vsel %vm1707_vm8, %v8812_v46, %v5916_v19  ;;  %v3519_v23 = vsel %vm1707_vm8, %v8815_v1, %v5917_v30  ;;  %v5950_v25 = vpop.permute.xlu2 %5949 }
 0x45c   : > { %v3550_v28 = vsel %vm1740_vm10, %v3518_v9, %v5921_v34  ;;  %v3551_v4 = vsel %vm1740_vm10, %v3519_v23, %v5922_v24  ;;  %v5952_v22 = vunpack.i.h.bf16 %v5950_v25  ;;  %v9100_v34 = vld [vmem:[%s9568_s4] ss:$0 sm:$0xff] }
 0x45d   : > { %v3582_v21 = vsel %vm1773_vm11, %v3550_v28, %v5926_v38  ;;  %v3583_v53 = vsel %vm1773_vm11, %v3551_v4, %v5927_v36  ;;  %v3778_v36 = vld [vmem:[%s6164_s11 + $0x80] sm:$0xff] }
 0x45e   : > { %v3600_v2 = vpack.c.bf16 %v3583_v53, %v3582_v21  ;;  %v3762_v28 = vld [vmem:[%s6164_s11] sm:$0xff] }
 0x45f   : > { %4592 = vmatmul.msk.bf16.gmra.mxu1 %vm9753_vm12, %v3591_v20  ;;  %v5940_v46 = vpop.permute.xlu0 %5939 }
 0x460   : > { %v5930_v40 = vpop.permute.xlu1 %5929  ;;  %v5942_v56 = vunpack.i.h.bf16 %v5940_v46  ;;  %v5941_v12 = vunpack.i.l.bf16 %v5940_v46 }
 0x461   : > { %v5932_v8 = vunpack.i.h.bf16 %v5930_v40  ;;  %v5931_v41 = vunpack.i.l.bf16 %v5930_v40 }
 0x463   : > { %v3502_v1 = vsel %vm1707_vm8, %v8819_v32, %v5931_v41  ;;  %v3503_v37 = vsel %vm1707_vm8, %v8823_v35, %v5932_v8  ;;  %v5951_v35 = vunpack.i.l.bf16 %v5950_v25  ;;  %v5965_v13 = vpop.permute.xlu2 %5964  ;;  %v3766_v41 = vld [vmem:[%s6164_s11 + $0x20] sm:$0xff] }
 0x464   : > { %v3534_v17 = vsel %vm1740_vm10, %v3502_v1, %v5936_v55  ;;  %v3535_v52 = vsel %vm1740_vm10, %v3503_v37, %v5937_v58  ;;  %v5967_v48 = vunpack.i.h.bf16 %v5965_v13 }
 0x465   : > { %v3566_v6 = vsel %vm1773_vm11, %v3534_v17, %v5941_v12  ;;  %v3567_v11 = vsel %vm1773_vm11, %v3535_v52, %v5942_v56  ;;  %v3779_v56 = vld [vmem:[%s6164_s11 + $0x88] sm:$0xff] }
 0x466   : > { %v3592_v18 = vpack.c.bf16 %v3567_v11, %v3566_v6  ;;  %v3763_v52 = vld [vmem:[%s6164_s11 + $0x8] sm:$0xff] }
 0x467   : > { %v5955_v51 = vpop.permute.xlu0 %5954 }
 0x468   : > { %v5945_v7 = vpop.permute.xlu1 %5944  ;;  %4601 = vmatmul.msk.bf16.gmra.mxu3 %vm9753_vm12, %v3600_v2  ;;  %v5957_v63 = vunpack.i.h.bf16 %v5955_v51  ;;  %v5956_v62 = vunpack.i.l.bf16 %v5955_v51  ;;  %v3782_v2 = vld [vmem:[%s6164_s11 + $0xa0] sm:$0xff] }
 0x469   : > { %v5947_v15 = vunpack.i.h.bf16 %v5945_v7  ;;  %v5946_v32 = vunpack.i.l.bf16 %v5945_v7 }
 0x46b   : > { %v3520_v44 = vsel %vm1707_vm8, %v8896_v49, %v5946_v32  ;;  %v3521_v57 = vsel %vm1707_vm8, %v8900_v0, %v5947_v15  ;;  %v5966_v0 = vunpack.i.l.bf16 %v5965_v13 }
 0x46c   : > { %v3552_v60 = vsel %vm1740_vm10, %v3520_v44, %v5951_v35  ;;  %v3553_v10 = vsel %vm1740_vm10, %v3521_v57, %v5952_v22  ;;  %v3783_v35 = vld [vmem:[%s6164_s11 + $0xa8] sm:$0xff] }
 0x46d   : > { %v3584_v54 = vsel %vm1773_vm11, %v3552_v60, %v5956_v62  ;;  %v3585_v47 = vsel %vm1773_vm11, %v3553_v10, %v5957_v63  ;;  %v3767_v63 = vld [vmem:[%s6164_s11 + $0x28] sm:$0xff]  ;;  %v6064_v62 = vmov 1983009808  }
 0x46e   : > { %v3601_v27 = vpack.c.bf16 %v3585_v47, %v3584_v54  ;;  %v3832_v60 = vunpack.c.l.s4 %v6064_v62 }
 0x46f   : > { %4593 = vmatmul.msk.bf16.gmra.mxu1 %vm9753_vm12, %v3592_v18  ;;  %v5970_v39 = vpop.permute.xlu0 %5969 }
 0x470   : > { %v5960_v45 = vpop.permute.xlu1 %5959  ;;  %v5972_v61 = vunpack.i.h.bf16 %v5970_v39  ;;  %v5971_v14 = vunpack.i.l.bf16 %v5970_v39  ;;  %v3764_v39 = vld [vmem:[%s6164_s11 + $0x10] sm:$0xff] }
 0x471   : > { %v5962_v59 = vunpack.i.h.bf16 %v5960_v45  ;;  %v5961_v49 = vunpack.i.l.bf16 %v5960_v45  ;;  %v3780_v45 = vld [vmem:[%s6164_s11 + $0x90] sm:$0xff] }
 0x473   : > { %v3504_v29 = vsel %vm1707_vm8, %v8841_v26, %v5961_v49  ;;  %v3505_v50 = vsel %vm1707_vm8, %v8845_v5, %v5962_v59 }
 0x474   : > { %v3536_v43 = vsel %vm1740_vm10, %v3504_v29, %v5966_v0  ;;  %v3537_v33 = vsel %vm1740_vm10, %v3505_v50, %v5967_v48  ;;  %v9131_v29 = vunpack.c.0.s8 %v3832_v60 }
 0x475   : > { %v3568_v42 = vsel %vm1773_vm11, %v3536_v43, %v5971_v14  ;;  %v3569_v20 = vsel %vm1773_vm11, %v3537_v33, %v5972_v61 }
 0x476   : > { %v3593_v31 = vpack.c.bf16 %v3569_v20, %v3568_v42 }
 0x478   : > { %4602 = vmatmul.msk.bf16.gmra.mxu3 %vm9753_vm12, %v3601_v27 }
 0x47f   : > { %4594 = vmatmul.msk.bf16.gmra.mxu1 %vm9753_vm12, %v3593_v31  ;;  %v3784_v31 = vld [vmem:[%s6164_s11 + $0xb0] sm:$0xff] }
 0x48b   : > { %v3720_v26 = vpop.f32.mrf.mxu3 }
 0x48c   : > { %v3680_v5 = vpop.f32.mrf.mxu1  ;;  %v3721_v23 = vadd.f32 %v9100_v34, %v3720_v26 }
 0x48d   : > { %v3681_v38 = vadd.f32 %v9100_v34, %v3680_v5 }
 0x48e   : > { %v3810_v4 = vadd.f32 %v3778_v36, %v3721_v23  ;;  %v3765_v23 = vld [vmem:[%s6164_s11 + $0x18] sm:$0xff] }
 0x48f   : > { %v3794_v21 = vadd.f32 %v3762_v28, %v3681_v38 }
 0x490   : > { %v3941_v58 = vrot.slane %v3810_v4, 4 }
 0x491   : > { %v3829_v37 = vrot.slane %v3794_v21, 4 }
 0x493   : > { %v3722_v30 = vpop.f32.mrf.mxu3 }
 0x494   : > { %v3682_v19 = vpop.f32.mrf.mxu1  ;;  %v3723_v55 = vadd.f32 %v9100_v34, %v3722_v30 }
 0x495   : > { %v3683_v12 = vadd.f32 %v9100_v34, %v3682_v19 }
 0x496   : > { %v3811_v7 = vadd.f32 %v3779_v56, %v3723_v55 }
 0x497   : > { %v3795_v32 = vadd.f32 %v3763_v52, %v3683_v12 }
 0x498   : > { %v4165_v54 = vrot.slane %v3811_v7, 4 }
 0x499   : > { %v4053_v13 = vrot.slane %v3795_v32, 4 }
 0x49b   : > { %v3725_v3 = vpop.f32.mrf.mxu3 }
 0x49c   : > { %v3685_v24 = vpop.f32.mrf.mxu1  ;;  %v3726_v47 = vadd.f32 %v9100_v34, %v3725_v3  ;;  %v3768_v3 = vld [vmem:[%s6164_s11 + $0x30] sm:$0xff] }
 0x49d   : > { %v3686_v59 = vadd.f32 %v9100_v34, %v3685_v24  ;;  %v3781_v24 = vld [vmem:[%s6164_s11 + $0x98] sm:$0xff] }
 0x49e   : > { %v3812_v14 = vadd.f32 %v3780_v45, %v3726_v47 }
 0x49f   : > { %v3796_v33 = vadd.f32 %v3764_v39, %v3686_v59 }
 0x4a0   : > { %v3953_v28 = vrot.slane %v3812_v14, 4 }
 0x4a3   : > { %v3727_v16 = vpop.f32.mrf.mxu3 }
 0x4a4   : > { %v3687_v9 = vpop.f32.mrf.mxu1  ;;  %v3728_v26 = vadd.f32 %v9100_v34, %v3727_v16 }
 0x4a5   : > { %v3688_v5 = vadd.f32 %v9100_v34, %v3687_v9 }
 0x4a6   : > { %v3813_v9 = vadd.f32 %v3781_v24, %v3728_v26 }
 0x4ab   : > { %v3730_v53 = vpop.f32.mrf.mxu3 }
 0x4ac   : > { %v3731_v40 = vadd.f32 %v9100_v34, %v3730_v53  ;;  %v3690_v8 = vpop.f32.mrf.mxu1  ;;  %v3841_v53 = vrot.slane %v3796_v33, 4 }
 0x4ad   : > { %v3691_v46 = vadd.f32 %v9100_v34, %v3690_v8 }
 0x4ae   : > { %v3814_v1 = vadd.f32 %v3782_v2, %v3731_v40  ;;  %v3797_v40 = vadd.f32 %v3765_v23, %v3688_v5 }
 0x4af   : > { %v3798_v17 = vadd.f32 %v3766_v41, %v3691_v46 }
 0x4b0   : > { %v3939_v25 = vrot.slane %v3814_v1, 4  ;;  %v3942_v6 = vsel %vm3827_vm13, %v3814_v1, %v3941_v58 }
 0x4b1   : > { %v3826_v11 = vrot.slane %v3798_v17, 4  ;;  %v3830_v18 = vsel %vm3827_vm13, %v3798_v17, %v3829_v37  ;;  %v9146_v36 = vperm.slane %v3942_v6, %v9131_v29 }
 0x4b2   : > { %v9117_v15 = vsel %vm3827_vm13, %v3939_v25, %v3810_v4  ;;  %v3838_v4 = vperm.slane %v3830_v18, %v9131_v29 }
 0x4b3   : > { %v3828_v51 = vsel %vm3827_vm13, %v3826_v11, %v3794_v21  ;;  %v3732_v22 = vpop.f32.mrf.mxu3  ;;  %v4001_v46 = vrot.slane %v9146_v36, 4  ;;  %v3785_v11 = vld [vmem:[%s6164_s11 + $0xb8] sm:$0xff] }
 0x4b4   : > { %v3733_v44 = vadd.f32 %v9100_v34, %v3732_v22  ;;  %v3692_v57 = vpop.f32.mrf.mxu1  ;;  %v3834_v16 = vperm.slane %v3828_v51, %v9131_v29  ;;  %v3889_v37 = vrot.slane %v3838_v4, 4 }
 0x4b5   : > { %v3693_v10 = vadd.f32 %v9100_v34, %v3692_v57  ;;  %v4177_v57 = vrot.slane %v3813_v9, 4 }
 0x4b6   : > { %v3815_v27 = vadd.f32 %v3783_v35, %v3733_v44  ;;  %v3877_v17 = vrot.slane %v3834_v16, 4  ;;  %v3769_v35 = vld [vmem:[%s6164_s11 + $0x38] sm:$0xff] }
 0x4b7   : > { %v3799_v49 = vadd.f32 %v3767_v63, %v3693_v10  ;;  %v4065_v63 = vrot.slane %v3797_v40, 4 }
 0x4b8   : > { %v4163_v48 = vrot.slane %v3815_v27, 4  ;;  %v9129_v0 = vsel %vm3827_vm13, %v3815_v27, %v4165_v54  ;;  %v3946_v27 = vperm.slane %v9117_v15, %v9131_v29 }
 0x4b9   : > { %v4051_v50 = vrot.slane %v3799_v49, 4  ;;  %v4054_v61 = vsel %vm3827_vm13, %v3799_v49, %v4053_v13 }
 0x4ba   : > { %v9135_v43 = vsel %vm3827_vm13, %v4163_v48, %v3811_v7  ;;  %v4062_v13 = vperm.slane %v4054_v61, %v9131_v29 }
 0x4bb   : > { %v4052_v42 = vsel %vm3827_vm13, %v4051_v50, %v3795_v32  ;;  %v3735_v20 = vpop.f32.mrf.mxu3 }
 0x4bc   : > { %v3736_v30 = vadd.f32 %v9100_v34, %v3735_v20  ;;  %v3695_v19 = vpop.f32.mrf.mxu1  ;;  %v4058_v49 = vperm.slane %v4052_v42, %v9131_v29  ;;  %v4113_v61 = vrot.slane %v4062_v13, 4 }
 0x4bd   : > { %v3696_v38 = vadd.f32 %v9100_v34, %v3695_v19 }
 0x4be   : > { %v3816_v21 = vadd.f32 %v3784_v31, %v3736_v30  ;;  %v3989_v30 = vrot.slane %v3946_v27, 4  ;;  %v4101_v19 = vrot.slane %v4058_v49, 4 }
 0x4bf   : > { %v3800_v2 = vadd.f32 %v3768_v3, %v3696_v38  ;;  %v4170_v38 = vperm.slane %v9135_v43, %v9131_v29 }
 0x4c0   : > { %v3951_v8 = vrot.slane %v3816_v21, 4  ;;  %v3954_v41 = vsel %vm3827_vm13, %v3816_v21, %v3953_v28 }
 0x4c1   : > { %v3962_v58 = vperm.slane %v3954_v41, %v9131_v29  ;;  %v3839_v55 = vrot.slane %v3800_v2, 4  ;;  %v3842_v1 = vsel %vm3827_vm13, %v3800_v2, %v3841_v53  ;;  %v4213_v41 = vrot.slane %v4170_v38, 4 }
 0x4c2   : > { %v3952_v56 = vsel %vm3827_vm13, %v3951_v8, %v3812_v14  ;;  %v3850_v12 = vperm.slane %v3842_v1, %v9131_v29 }
 0x4c3   : > { %v3958_v52 = vperm.slane %v3952_v56, %v9131_v29  ;;  %v3840_v25 = vsel %vm3827_vm13, %v3839_v55, %v3796_v33  ;;  %v3737_v6 = vpop.f32.mrf.mxu3  ;;  %v9161_v18 = vsel %vm3827_vm13, %v3962_v58, %v4001_v46  ;;  %v3999_v28 = vrot.slane %v3962_v58, 4 }
 0x4c4   : > { %v3846_v7 = vperm.slane %v3840_v25, %v9131_v29  ;;  %v3887_v32 = vrot.slane %v3850_v12, 4  ;;  %v3738_v51 = vadd.f32 %v9100_v34, %v3737_v6  ;;  %v3697_v22 = vpop.f32.mrf.mxu1  ;;  %v9167_v44 = vsel %vm3827_vm13, %v3850_v12, %v3889_v37 }
 0x4c5   : > { %v3698_v62 = vadd.f32 %v9100_v34, %v3697_v22  ;;  %v3987_v45 = vrot.slane %v3958_v52, 4  ;;  %v9211_v43 = vsel %vm3827_vm13, %v3958_v52, %v3989_v30  ;;  %v9215_v46 = vsel %vm3827_vm13, %v3999_v28, %v9146_v36  ;;  %v3770_v22 = vld [vmem:[%s6164_s11 + $0x40] sm:$0xff] }
 0x4c6   : > { %v3875_v60 = vrot.slane %v3846_v7, 4  ;;  %v3817_v10 = vadd.f32 %v3785_v11, %v3738_v51  ;;  %v9171_v54 = vsel %vm3827_vm13, %v3846_v7, %v3877_v17  ;;  %v9174_v47 = vsel %vm3827_vm13, %v3887_v32, %v3838_v4  ;;  %v3774_v32 = vld [vmem:[%s6164_s11 + $0x60] sm:$0xff] }
 0x4c7   : > { %v3801_v59 = vadd.f32 %v3769_v35, %v3698_v62  ;;  %v9191_v5 = vsel %vm3827_vm13, %v3987_v45, %v3946_v27 }
 0x4c8   : > { %v4175_v39 = vrot.slane %v3817_v10, 4  ;;  %v4178_v48 = vsel %vm3827_vm13, %v3817_v10, %v4177_v57  ;;  %v9182_v50 = vsel %vm3827_vm13, %v3875_v60, %v3834_v16  ;;  %v3772_v60 = vld [vmem:[%s6164_s11 + $0x50] sm:$0xff] }
 0x4c9   : > { %v4186_v14 = vperm.slane %v4178_v48, %v9131_v29  ;;  %v4063_v33 = vrot.slane %v3801_v59, 4  ;;  %v4066_v20 = vsel %vm3827_vm13, %v3801_v59, %v4065_v63 }
 0x4ca   : > { %v4176_v31 = vsel %vm3827_vm13, %v4175_v39, %v3813_v9  ;;  %v4074_v15 = vperm.slane %v4066_v20, %v9131_v29 }
 0x4cb   : > { %v4182_v26 = vperm.slane %v4176_v31, %v9131_v29  ;;  %v4064_v42 = vsel %vm3827_vm13, %v4063_v33, %v3797_v40  ;;  %v4223_v4 = vrot.slane %v4186_v14, 4  ;;  %v4174_v40 = vperm.slane %v9129_v0, %v9131_v29  ;;  %v9223_v1 = vpop.f32.mrf.mxu3 }
 0x4cc   : > { %v4070_v3 = vperm.slane %v4064_v42, %v9131_v29  ;;  %v4111_v24 = vrot.slane %v4074_v15, 4  ;;  %v3700_v23 = vpop.f32.mrf.mxu1  ;;  %v9197_v21 = vsel %vm3827_vm13, %v4074_v15, %v4113_v61  ;;  %v6065_v33 = vmov 1934713408  }
 0x4cd   : > { %v4211_v53 = vrot.slane %v4182_v26, 4  ;;  %v9218_v58 = vsel %vm3827_vm13, %v4223_v4, %v4174_v40  ;;  %v4225_v0 = vrot.slane %v4174_v40, 4  ;;  %v9226_v56 = vsel %vm3827_vm13, %v4182_v26, %v4213_v41 }
 0x4ce   : > { %v4099_v16 = vrot.slane %v4070_v3, 4  ;;  %v9200_v2 = vsel %vm3827_vm13, %v4111_v24, %v4062_v13  ;;  %v9203_v9 = vsel %vm3827_vm13, %v4070_v3, %v4101_v19  ;;  %v3701_v51 = vadd.f32 %v9100_v34, %v3700_v23  ;;  %v3775_v19 = vld [vmem:[%s6164_s11 + $0x68] sm:$0xff]  ;;  %v3773_v3 = vld [vmem:[%s6164_s11 + $0x58] sm:$0xff] }
 0x4cf   : > { %v9221_v55 = vsel %vm3827_vm13, %v4211_v53, %v4170_v38  ;;  %v9229_v12 = vsel %vm3827_vm13, %v4186_v14, %v4225_v0  ;;  %v3880_v20 = vunpack.c.l.s4 %v6065_v33 }
 0x4d0   : > { %v9208_v8 = vsel %vm3827_vm13, %v4099_v16, %v4058_v49  ;;  %v3802_v63 = vadd.f32 %v3770_v22, %v3701_v51  ;;  %v3776_v49 = vld [vmem:[%s6164_s11 + $0x70] sm:$0xff] }
 0x4d1   : > { %v9256_v38 = vunpack.c.0.s8 %v3880_v20 }
 0x4d2   : > { %v3853_v27 = vrot.slane %v3802_v63, 4 }
 0x4d3   : > { %v9231_v17 = vpop.f32.mrf.mxu3  ;;  %v3886_v40 = vperm.slane %v9171_v54, %v9256_v38 }
 0x4d4   : > { %v3702_v37 = vpop.f32.mrf.mxu1 }
 0x4d5   : > { %v3703_v4 = vadd.f32 %v9100_v34, %v3702_v37 }
 0x4db   : > { %v9233_v25 = vpop.f32.mrf.mxu3 }
 0x4dc   : > { %v3705_v36 = vpop.f32.mrf.mxu1 }
 0x4dd   : > { %v3706_v62 = vadd.f32 %v9100_v34, %v3705_v36 }
 0x4df   : > { %v3804_v13 = vadd.f32 %v3772_v60, %v3706_v62 }
 0x4e1   : > { %v3865_v31 = vrot.slane %v3804_v13, 4 }
 0x4e3   : > { %v9236_v7 = vpop.f32.mrf.mxu3 }
 0x4e4   : > { %v3707_v52 = vpop.f32.mrf.mxu1 }
 0x4e5   : > { %v3708_v26 = vadd.f32 %v9100_v34, %v3707_v52 }
 0x4e7   : > { %v3805_v41 = vadd.f32 %v3773_v3, %v3708_v26 }
 0x4eb   : > { %v9243_v45 = vpop.f32.mrf.mxu3 }
 0x4ec   : > { %v3710_v6 = vpop.f32.mrf.mxu1 }
 0x4ed   : > { %v3711_v11 = vadd.f32 %v9100_v34, %v3710_v6 }
 0x4ef   : > { %v3806_v57 = vadd.f32 %v3774_v32, %v3711_v11  ;;  %v3777_v11 = vld [vmem:[%s6164_s11 + $0x78] sm:$0xff]  ;;  %v3771_v32 = vld [vmem:[%s6164_s11 + $0x48] sm:$0xff] }
 0x4f1   : > { %v3851_v10 = vrot.slane %v3806_v57, 4  ;;  %v3854_v48 = vsel %vm3827_vm13, %v3806_v57, %v3853_v27  ;;  %v3929_v27 = vrot.slane %v3886_v40, 4 }
 0x4f2   : > { %v3862_v30 = vperm.slane %v3854_v48, %v9131_v29 }
 0x4f3   : > { %v3852_v39 = vsel %vm3827_vm13, %v3851_v10, %v3802_v63  ;;  %v9272_v63 = vperm.slane %v9182_v50, %v9256_v38 }
 0x4f4   : > { %v3712_v35 = vpop.f32.mrf.mxu1  ;;  %v3858_v42 = vperm.slane %v3852_v39, %v9131_v29  ;;  %v3913_v36 = vrot.slane %v3862_v30, 4 }
 0x4f5   : > { %v3713_v15 = vadd.f32 %v9100_v34, %v3712_v35  ;;  %v9267_v35 = vpop.f32.mrf.mxu3 }
 0x4f6   : > { %v3901_v0 = vrot.slane %v3858_v42, 4 }
 0x4f7   : > { %v3807_v53 = vadd.f32 %v3775_v19, %v3713_v15 }
 0x4f9   : > { %v4075_v62 = vrot.slane %v3807_v53, 4 }
 0x4fc   : > { %v3715_v59 = vpop.f32.mrf.mxu1 }
 0x4fd   : > { %v3716_v14 = vadd.f32 %v9100_v34, %v3715_v59  ;;  %v4089_v59 = vrot.slane %v3805_v41, 4 }
 0x4ff   : > { %v3808_v61 = vadd.f32 %v3776_v49, %v3716_v14 }
 0x501   : > { %v3863_v24 = vrot.slane %v3808_v61, 4  ;;  %v3866_v23 = vsel %vm3827_vm13, %v3808_v61, %v3865_v31  ;;  %v3925_v31 = vrot.slane %v9272_v63, 4 }
 0x502   : > { %v3874_v28 = vperm.slane %v3866_v23, %v9131_v29 }
 0x503   : > { %v3864_v16 = vsel %vm3827_vm13, %v3863_v24, %v3804_v13  ;;  %v3803_v13 = vadd.f32 %v3771_v32, %v3703_v4  ;;  %v3898_v4 = vperm.slane %v9167_v44, %v9256_v38  ;;  %v3751_v44 = vadd.f32 %v9100_v34, %v9243_v45 }
 0x504   : > { %v3870_v52 = vperm.slane %v3864_v16, %v9131_v29  ;;  %v3717_v6 = vpop.f32.mrf.mxu1  ;;  %v3911_v51 = vrot.slane %v3874_v28, 4  ;;  %v3914_v54 = vsel %vm3827_vm13, %v3874_v28, %v3913_v36  ;;  %v3894_v16 = vperm.slane %v9174_v47, %v9256_v38 }
 0x505   : > { %v3718_v22 = vadd.f32 %v9100_v34, %v3717_v6  ;;  %v9279_v14 = vperm.slane %v3914_v54, %v9256_v38  ;;  %v4076_v15 = vsel %vm3827_vm13, %v4075_v62, %v3803_v13  ;;  %v3788_v6 = vld [vmem:[%s6164_s11 + $0xd0] sm:$0xff] }
 0x506   : > { %v3899_v37 = vrot.slane %v3870_v52, 4  ;;  %v3902_v57 = vsel %vm3827_vm13, %v3870_v52, %v3901_v0  ;;  %v3912_v50 = vsel %vm3827_vm13, %v3911_v51, %v3862_v30  ;;  %v3746_v0 = vadd.f32 %v9100_v34, %v9233_v25  ;;  %v3786_v52 = vld [vmem:[%s6164_s11 + $0xc0] sm:$0xff] }
 0x507   : > { %v3809_v60 = vadd.f32 %v3777_v11, %v3718_v22  ;;  %v3910_v10 = vperm.slane %v3902_v57, %v9256_v38  ;;  %v3918_v3 = vperm.slane %v3912_v50, %v9256_v38  ;;  %v3935_v24 = vrot.slane %v9279_v14, 4  ;;  %v3755_v11 = vpop.f32.mrf.mxu3  ;;  %v3790_v22 = vld [vmem:[%s6164_s11 + $0xe0] sm:$0xff] }
 0x508   : > { %v3900_v49 = vsel %vm3827_vm13, %v3899_v37, %v3858_v42  ;;  %v4082_v36 = vperm.slane %v4076_v15, %v9131_v29  ;;  %v3933_v25 = vrot.slane %v3894_v16, 4  ;;  %v3820_v54 = vadd.f32 %v3788_v6, %v3746_v0 }
 0x509   : > { %v4087_v39 = vrot.slane %v3809_v60, 4  ;;  %v3930_v48 = vsel %vm3827_vm13, %v3910_v10, %v3929_v27  ;;  %v3927_v33 = vrot.slane %v3910_v10, 4  ;;  %v9284_v20 = vperm.slane %v3900_v49, %v9256_v38 }
 0x50a   : > { %4293 = vrot.lane.b32.xlu2 %v3930_v48, %s6058_s14  ;;  %v4090_v26 = vsel %vm3827_vm13, %v3809_v60, %v4089_v59  ;;  %v3931_v32 = vrot.slane %v3918_v3, 4  ;;  %v3936_v47 = vsel %vm3827_vm13, %v3935_v24, %v3898_v4  ;;  %v3756_v62 = vadd.f32 %v9100_v34, %v3755_v11 }
 0x50b   : > { %v4088_v61 = vsel %vm3827_vm13, %v4087_v39, %v3805_v41  ;;  %v3928_v30 = vsel %vm3827_vm13, %v3927_v33, %v3886_v40  ;;  %v3926_v19 = vsel %vm3827_vm13, %v9284_v20, %v3925_v31  ;;  %v9299_v23 = vperm.slane %v4090_v26, %v9131_v29 }
 0x50c   : > { %v4094_v42 = vperm.slane %v4088_v61, %v9131_v29  ;;  %4285 = vrot.lane.b32.xlu0 %v3928_v30, %s6057_s13  ;;  %4277 = vrot.lane.b32.xlu1 %v3926_v19, %s6056_s12  ;;  %v3741_v40 = vadd.f32 %v9100_v34, %v9223_v1  ;;  %v4077_v41 = vrot.slane %v3803_v13, 4  ;;  %v4106_v60 = vperm.slane %v9208_v8, %v9256_v38 }
 0x50d   : > { %v4135_v37 = vrot.slane %v9299_v23, 4  ;;  %v3934_v10 = vsel %vm3827_vm13, %v3918_v3, %v3933_v25  ;;  %v3932_v27 = vsel %vm3827_vm13, %v3931_v32, %v3894_v16  ;;  %v3822_v59 = vadd.f32 %v3790_v22, %v3751_v44 }
 0x50e   : > { %v4123_v28 = vrot.slane %v4094_v42, 4  ;;  %v4078_v51 = vsel %vm3827_vm13, %v3807_v53, %v4077_v41  ;;  %v3818_v57 = vadd.f32 %v3786_v52, %v3741_v40  ;;  %v3792_v53 = vld [vmem:[%s6164_s11 + $0xf0] sm:$0xff]  ;;  %v4125_v48 = vrot.slane %v4082_v36, 4 }
 0x50f   : > { %v4086_v45 = vperm.slane %v4078_v51, %v9131_v29  ;;  %v3824_v50 = vadd.f32 %v3792_v53, %v3756_v62  ;;  %v4149_v8 = vrot.slane %v4106_v60, 4  ;;  %v3977_v33 = vrot.slane %v3820_v54, 4  ;;  %v3757_v22 = vpop.f32.mrf.mxu3 }
 0x510   : > { %v4124_v1 = vsel %vm3827_vm13, %v4123_v28, %v4082_v36  ;;  %v3965_v39 = vrot.slane %v3818_v57, 4  ;;  %v4126_v30 = vsel %vm3827_vm13, %v4094_v42, %v4125_v48  ;;  %v3937_v19 = vrot.slane %v3898_v4, 4 }
 0x511   : > { %v4130_v13 = vperm.slane %v4124_v1, %v9256_v38  ;;  %v4136_v49 = vsel %vm3827_vm13, %v4135_v37, %v4086_v45  ;;  %v3975_v3 = vrot.slane %v3824_v50, 4  ;;  %v3978_v24 = vsel %vm3827_vm13, %v3824_v50, %v3977_v33 }
 0x512   : > { %4317 = vrot.lane.b32.xlu2 %v3936_v47, %s6061_s17  ;;  %v3966_v15 = vsel %vm3827_vm13, %v3822_v59, %v3965_v39  ;;  %v9334_v26 = vperm.slane %v4136_v49, %v9256_v38  ;;  %v3938_v40 = vsel %vm3827_vm13, %v9279_v14, %v3937_v19  ;;  %v4134_v41 = vperm.slane %v4126_v30, %v9256_v38  ;;  %v3791_v49 = vld [vmem:[%s6164_s11 + $0xe8] sm:$0xff] }
 0x513   : > { %v4147_v31 = vrot.slane %v4130_v13, 4  ;;  %v4150_v61 = vsel %vm3827_vm13, %v4130_v13, %v4149_v8  ;;  %v9340_v28 = vperm.slane %v3966_v15, %v9131_v29  ;;  %v3986_v4 = vperm.slane %v3978_v24, %v9131_v29  ;;  %v3787_v30 = vld [vmem:[%s6164_s11 + $0xc8] sm:$0xff] }
 0x514   : > { %4309 = vrot.lane.b32.xlu0 %v3934_v10, %s6060_s16  ;;  %4301 = vrot.lane.b32.xlu1 %v3932_v27, %s6059_s15  ;;  %v4155_v42 = vrot.slane %v9334_v26, 4  ;;  %v4110_v0 = vperm.slane %v9203_v9, %v9256_v38  ;;  %v4137_v36 = vrot.slane %v4086_v45, 4  ;;  %v3976_v52 = vsel %vm3827_vm13, %v3975_v3, %v3820_v54  ;;  %v3793_v10 = vld [vmem:[%s6164_s11 + $0xf8] sm:$0xff] }
 0x515   : > { %v4148_v16 = vsel %vm3827_vm13, %v4147_v31, %v4106_v60  ;;  %v4118_v6 = vperm.slane %v9200_v2, %v9256_v38  ;;  %v3963_v14 = vrot.slane %v3822_v59, 4  ;;  %v4025_v11 = vrot.slane %v9340_v28, 4 }
 0x516   : > { %v4151_v32 = vrot.slane %v4134_v41, 4  ;;  %v4138_v51 = vsel %vm3827_vm13, %v9299_v23, %v4137_v36  ;;  %v3982_v47 = vperm.slane %v3976_v52, %v9131_v29  ;;  %v4153_v9 = vrot.slane %v4110_v0, 4 }
 0x517   : > { %v4156_v44 = vsel %vm3827_vm13, %v4155_v42, %v4118_v6  ;;  %v4026_v1 = vsel %vm3827_vm13, %v3986_v4, %v4025_v11  ;;  %v9364_v2 = vperm.slane %v9161_v18, %v9256_v38  ;;  %v3964_v37 = vsel %vm3827_vm13, %v3963_v14, %v3818_v57  ;;  %v3789_v57 = vld [vmem:[%s6164_s11 + $0xd8] sm:$0xff]  ;;  %s6072_s11 = smov 60  }
 0x518   : > { %v4154_v25 = vsel %vm3827_vm13, %v4134_v41, %v4153_v9  ;;  %v4152_v23 = vsel %vm3827_vm13, %v4151_v32, %v4110_v0  ;;  %v9370_v54 = vperm.slane %v4138_v51, %v9256_v38  ;;  %v3748_v62 = vadd.f32 %v9100_v34, %v9236_v7 }
 0x519   : > { %v9377_v18 = vperm.slane %v4026_v1, %v9256_v38  ;;  %v4011_v60 = vrot.slane %v3982_v47, 4  ;;  %v3758_v45 = vadd.f32 %v9100_v34, %v3757_v22  ;;  %v3970_v53 = vperm.slane %v3964_v37, %v9131_v29 }
 0x51a   : > { %4341 = vrot.lane.b32.xlu2 %v4150_v61, %s6066_s27  ;;  %v4049_v27 = vrot.slane %v9364_v2, 4  ;;  %v3753_v7 = vadd.f32 %v9100_v34, %v9267_v35  ;;  %v4159_v13 = vrot.slane %v9370_v54, 4  ;;  %v3821_v59 = vadd.f32 %v3789_v57, %v3748_v62 }
 0x51b   : > { %v4023_v39 = vrot.slane %v3986_v4, 4  ;;  %v3825_v50 = vadd.f32 %v3793_v10, %v3758_v45  ;;  %v9393_v8 = vperm.slane %v9197_v21, %v9256_v38  ;;  %v4157_v33 = vrot.slane %v4118_v6, 4 }
 0x51c   : > { %4333 = vrot.lane.b32.xlu0 %v4148_v16, %s6063_s25  ;;  %4325 = vrot.lane.b32.xlu1 %v3938_v40, %s6062_s24  ;;  %v4050_v48 = vsel %vm3827_vm13, %v9377_v18, %v4049_v27  ;;  %v4012_v31 = vsel %vm3827_vm13, %v4011_v60, %v3970_v53  ;;  %v3743_v35 = vadd.f32 %v9100_v34, %v9231_v17  ;;  %v4013_v15 = vrot.slane %v3970_v53, 4 }
 0x51d   : > { %v9400_v61 = vperm.slane %v9191_v5, %v9256_v38  ;;  %v3823_v19 = vadd.f32 %v3791_v49, %v3753_v7  ;;  %v4160_v3 = vsel %vm3827_vm13, %v4159_v13, %v9393_v8  ;;  %v4158_v21 = vsel %vm3827_vm13, %v9334_v26, %v4157_v33 }
 0x51e   : > { %v4201_v24 = vrot.slane %v3821_v59, 4  ;;  %v9410_v34 = vperm.slane %v4012_v31, %v9256_v38  ;;  %v4014_v5 = vsel %vm3827_vm13, %v3982_v47, %v4013_v15  ;;  %v4024_v17 = vsel %vm3827_vm13, %v4023_v39, %v9340_v28 }
 0x51f   : > { %v4199_v16 = vrot.slane %v3825_v50, 4  ;;  %v3998_v40 = vperm.slane %v9211_v43, %v9256_v38  ;;  %v4006_v26 = vperm.slane %v9215_v46, %v9256_v38  ;;  %v3819_v41 = vadd.f32 %v3787_v30, %v3743_v35 }
 0x520   : > { %v4202_v42 = vsel %vm3827_vm13, %v3825_v50, %v4201_v24  ;;  %v4037_v4 = vrot.slane %v9400_v61, 4  ;;  %v4187_v0 = vrot.slane %v3823_v19, 4  ;;  %v4022_v36 = vperm.slane %v4014_v5, %v9256_v38 }
 0x521   : > { %v4030_v52 = vperm.slane %v4024_v17, %v9256_v38  ;;  %v4200_v6 = vsel %vm3827_vm13, %v4199_v16, %v3821_v59  ;;  %v4210_v43 = vperm.slane %v4202_v42, %v9131_v29  ;;  %v4041_v46 = vrot.slane %v3998_v40, 4 }
 0x522   : > { %4365 = vrot.lane.b32.xlu2 %v4156_v44, %s6067_s29  ;;  %v4038_v28 = vsel %vm3827_vm13, %v9410_v34, %v4037_v4  ;;  %v4045_v14 = vrot.slane %v4006_v26, 4  ;;  %v4189_v11 = vrot.slane %v3819_v41, 4  ;;  %v4188_v32 = vsel %vm3827_vm13, %v4187_v0, %v3819_v41 }
 0x523   : > { %v4042_v44 = vsel %vm3827_vm13, %v4022_v36, %v4041_v46  ;;  %v4206_v9 = vperm.slane %v4200_v6, %v9131_v29  ;;  %v4043_v1 = vrot.slane %v4030_v52, 4  ;;  %v4247_v22 = vrot.slane %v4210_v43, 4 }
 0x524   : > { %4357 = vrot.lane.b32.xlu0 %v4154_v25, %s6068_s7  ;;  %4349 = vrot.lane.b32.xlu1 %v4152_v23, %s6069_s8  ;;  %v4046_v51 = vsel %vm3827_vm13, %v4030_v52, %v4045_v14  ;;  %v4190_v47 = vsel %vm3827_vm13, %v3823_v19, %v4189_v11  ;;  %v4194_v37 = vperm.slane %v4188_v32, %v9131_v29  ;;  %v4047_v23 = vrot.slane %v9377_v18, 4 }
 0x525   : > { %v4198_v25 = vperm.slane %v4190_v47, %v9131_v29  ;;  %v4039_v62 = vrot.slane %v4022_v36, 4  ;;  %v4235_v57 = vrot.slane %v4206_v9, 4  ;;  %v4044_v60 = vsel %vm3827_vm13, %v4043_v1, %v4006_v26 }
 0x526   : > { %v4237_v53 = vrot.slane %v4194_v37, 4  ;;  %v4230_v10 = vperm.slane %v9218_v58, %v9256_v38  ;;  %v4048_v27 = vsel %vm3827_vm13, %v4047_v23, %v9364_v2  ;;  %v4218_v59 = vperm.slane %v9221_v55, %v9256_v38 }
 0x527   : > { %v4248_v45 = vsel %vm3827_vm13, %v4247_v22, %v4198_v25  ;;  %v4040_v7 = vsel %vm3827_vm13, %v4039_v62, %v3998_v40  ;;  %v4236_v18 = vsel %vm3827_vm13, %v4235_v57, %v4194_v37  ;;  %v4222_v58 = vperm.slane %v9226_v56, %v9256_v38 }
 0x528   : > { %v4254_v29 = vperm.slane %v4248_v45, %v9256_v38  ;;  %v4238_v13 = vsel %vm3827_vm13, %v4206_v9, %v4237_v53  ;;  %v4269_v49 = vrot.slane %v4230_v10, 4  ;;  %v4242_v2 = vperm.slane %v4236_v18, %v9256_v38 }
 0x529   : > { %v4246_v39 = vperm.slane %v4238_v13, %v9256_v38  ;;  %v4261_v50 = vrot.slane %v4218_v59, 4  ;;  %v4265_v33 = vrot.slane %v4222_v58, 4  ;;  %v4249_v56 = vrot.slane %v4198_v25, 4 }
 0x52a   : > { %4327 = vrot.lane.b32.xlu2 %v4050_v48, %s6062_s24  ;;  %s6070_s24 = smov 56   ;;  %v4270_v48 = vsel %vm3827_vm13, %v4254_v29, %v4269_v49  ;;  %v4267_v15 = vrot.slane %v4254_v29, 4  ;;  %v4259_v30 = vrot.slane %v4242_v2, 4  ;;  %v4234_v17 = vperm.slane %v9229_v12, %v9256_v38 }
 0x52b   : > { %v4262_v31 = vsel %vm3827_vm13, %v4242_v2, %v4261_v50  ;;  %v4266_v35 = vsel %vm3827_vm13, %v4246_v39, %v4265_v33  ;;  %v4263_v55 = vrot.slane %v4246_v39, 4  ;;  %v4161_v16 = vrot.slane %v9393_v8, 4 }
 0x52c   : > { %4381 = vrot.lane.b32.xlu0 %v4160_v3, %s6070_s24  ;;  %4373 = vrot.lane.b32.xlu1 %v4158_v21, %s6071_s9  ;;  %v4250_v3 = vsel %vm3827_vm13, %v4210_v43, %v4249_v56  ;;  %v4268_v21 = vsel %vm3827_vm13, %v4267_v15, %v4230_v10  ;;  %v4260_v24 = vsel %vm3827_vm13, %v4259_v30, %v4218_v59  ;;  %v4273_v41 = vrot.slane %v4234_v17, 4 }
 0x52d   : > { %v4264_v19 = vsel %vm3827_vm13, %v4263_v55, %v4222_v58  ;;  %v4258_v5 = vperm.slane %v4250_v3, %v9256_v38  ;;  %v4162_v26 = vsel %vm3827_vm13, %v9370_v54, %v4161_v16  ;;  %v3923_v54 = vrot.slane %v9284_v20, 4 }
 0x52e   : > { %v4035_v59 = vrot.slane %v9410_v34, 4 }
 0x52f   : > { %v4271_v40 = vrot.slane %v4258_v5, 4  ;;  %v4274_v42 = vsel %vm3827_vm13, %v4258_v5, %v4273_v41  ;;  %v3924_v46 = vsel %vm3827_vm13, %v3923_v54, %v9272_v63 }
 0x530   : > { %v4036_v39 = vsel %vm3827_vm13, %v4035_v59, %v9400_v61 }
 0x531   : > { %v4272_v4 = vsel %vm3827_vm13, %v4271_v40, %v4234_v17 }
 0x532   : > { %4279 = vrot.lane.b32.xlu2 %v4038_v28, %s6056_s12  ;;  %s229_s12 = sand.u32 1, %s6038_s19  }
 0x534   : > { %4295 = vrot.lane.b32.xlu0 %v4042_v44, %s6058_s14  ;;  %4311 = vrot.lane.b32.xlu1 %v4046_v51, %s6060_s16  ;;  %s4544_s14 = sshll.u32 %s229_s12, 4  ;;  %s4613_s16 = sshll.u32 %s6046_s21, 4 }
 0x535   : > { %s4448_s10 = scalar_lea.hbm %s9569_s5, %s4613_s16  ;;  %s4435_s21 = scalar_lea.sflag [#allocation4], %s229_s12 }
 0x53a   : > { %4303 = vrot.lane.b32.xlu2 %v4044_v60, %s6059_s15  ;;  %s9503_s15 = scalar_lea.vmem [#allocation3], %s4544_s14 }
 0x53c   : > { %4319 = vrot.lane.b32.xlu0 %v4048_v27, %s6061_s17  ;;  %4287 = vrot.lane.b32.xlu1 %v4040_v7, %s6057_s13 }
 0x542   : > { %4375 = vrot.lane.b32.xlu2 %v4270_v48, %s6071_s9 }
 0x544   : > { %4343 = vrot.lane.b32.xlu0 %v4262_v31, %s6066_s27  ;;  %4359 = vrot.lane.b32.xlu1 %v4266_v35, %s6068_s7  ;;  %s4449_s27 = sshll.u32 %s9503_s15, 4  ;;  %s4450_s27 = int_to_ptr.vmem [resolvable:$true] %s4449_s27 }
 0x54a   : > { %4351 = vrot.lane.b32.xlu2 %v4264_v19, %s6069_s8 }
 0x54c   : > { %4367 = vrot.lane.b32.xlu0 %v4268_v21, %s6067_s29  ;;  %4335 = vrot.lane.b32.xlu1 %v4260_v24, %s6063_s25  ;;  %s4451_s29 = sshll.u32 %s4448_s10, 4  ;;  %s4452_s29 = int_to_ptr.hbm [resolvable:$true] %s4451_s29 }
 0x54d   : > { %s5990_s7 = sshra.s32 %s4452_s29, 4  ;;  %s5991_s7 = int_to_ptr.hbm [resolvable:$true] %s5990_s7 }
 0x54e   : > { %s5992_s8 = scalar_lea.hbm %s5991_s7, 16  ;;  %p5997_p1 = scmp.lt.s32.totalorder %s5991_s7, %s9569_s5 }
 0x54f   : > { %p5993_p12 = scmp.ne.s32.totalorder %s5991_s7, %s5992_s8 }
 0x551   : > { %p5994_p13 = pnand %p5993_p12, %p6144_p4 }
 0x552   : > { %4389 = vrot.lane.b32.xlu2 %v4162_v26, %s6072_s11 }
 0x553   : > { %p5995_p0 = pneg %p5994_p13 }
 0x554   : > { %4391 = vrot.lane.b32.xlu0 %v4274_v42, %s6072_s11  ;;  %4383 = vrot.lane.b32.xlu1 %v4272_v4, %s6070_s24  ;;  %s5996_s11 = scalar_lea.hbm %s9569_s5, 32 }
 0x555   : > { %p5998_p2 = scmp.lt.s32.totalorder %s5996_s11, %s5992_s8 }
 0x557   : > { %p5999_p3 = por %p5998_p2, %p5997_p1 }
 0x559   : > { %p6000_p5 = pnand %p5999_p3, %p5995_p0 }
 0x564   : > { %v4294_v0 = vpop.permute.xlu2 %4293 }
 0x56c   : > { %v4318_v36 = vpop.permute.xlu2 %4317 }
 0x574   : > { %v4342_v52 = vpop.permute.xlu2 %4341 }
 0x57c   : > { %v4366_v12 = vpop.permute.xlu2 %4365 }
 0x57e   : > { %v4286_v38 = vpop.permute.xlu0 %4285  ;;  %v4278_v8 = vpop.permute.xlu1 %4277 }
 0x57f   : > { %v4395_v11 = vsel %vm1542_vm4, %v3924_v46, %v4278_v8 }
 0x580   : > { %v4397_v51 = vsel %vm1575_vm6, %v4395_v11, %v4286_v38 }
 0x581   : > { %v4399_v47 = vsel %vm1608_vm5, %v4397_v51, %v4294_v0 }
 0x584   : > { %v4328_v28 = vpop.permute.xlu2 %4327 }
 0x586   : > { %v4310_v6 = vpop.permute.xlu0 %4309  ;;  %v4302_v43 = vpop.permute.xlu1 %4301 }
 0x587   : > { %v4401_v9 = vsel %vm1641_vm7, %v4399_v47, %v4302_v43 }
 0x588   : > { %v4403_v22 = vsel %vm1674_vm9, %v4401_v9, %v4310_v6 }
 0x589   : > { %v4405_v25 = vsel %vm1707_vm8, %v4403_v22, %v4318_v36 }
 0x58c   : > { %v4280_v14 = vpop.permute.xlu2 %4279 }
 0x58d   : > { %v4396_v48 = vsel %vm1542_vm4, %v4036_v39, %v4280_v14  ;;  %vm10089_vm4 = vcmask 293888  }
 0x58e   : > { %v4334_v32 = vpop.permute.xlu0 %4333  ;;  %v4326_v44 = vpop.permute.xlu1 %4325 }
 0x58f   : > { %v4407_v63 = vsel %vm1740_vm10, %v4405_v25, %v4326_v44 }
 0x590   : > { %v4409_v62 = vsel %vm1773_vm11, %v4407_v63, %v4334_v32 }
 0x591   : > { %v4411_v45 = vsel %vm9753_vm12, %v4409_v62, %v4342_v52  ;;  %vm4431_vm12 = vcmask 523264  }
 0x594   : > { %v4304_v1 = vpop.permute.xlu2 %4303 }
 0x596   : > { %v4358_v37 = vpop.permute.xlu0 %4357  ;;  %v4350_v20 = vpop.permute.xlu1 %4349 }
 0x597   : > { %v4414_v53 = vsel %vm4413_vm14, %v4411_v45, %v4350_v20 }
 0x598   : > { %v4417_v27 = vsel %vm4416_vm15, %v4414_v53, %v4358_v37 }
 0x599   : > { %v4420_v18 = vsel %vm4419_vm0, %v4417_v27, %v4366_v12 }
 0x59c   : > { %v4376_v23 = vpop.permute.xlu2 %4375 }
 0x59e   : > { %v4382_v57 = vpop.permute.xlu0 %4381  ;;  %v4374_v60 = vpop.permute.xlu1 %4373 }
 0x59f   : > { %v4423_v13 = vsel %vm4422_vm1, %v4420_v18, %v4374_v60 }
 0x5a0   : > { %v4426_v49 = vsel %vm4425_vm2, %v4423_v13, %v4382_v57 }
 0x5a4   : > { %v4352_v10 = vpop.permute.xlu2 %4351 }
 0x5a6   : > { %v4296_v7 = vpop.permute.xlu0 %4295  ;;  %v4312_v29 = vpop.permute.xlu1 %4311 }
 0x5ac   : > { %v4390_v58 = vpop.permute.xlu2 %4389 }
 0x5ad   : > { %v4429_v2 = vsel %vm4428_vm3, %v4426_v49, %v4390_v58 }
 0x5ae   : > { %4432 = vst.msk [vmem:[%s9503_s15] sm:$0xff] %vm4431_vm12, %v4429_v2  ;;  %v4320_v50 = vpop.permute.xlu0 %4319  ;;  %v4288_v34 = vpop.permute.xlu1 %4287 }
 0x5af   : > { %v4398_v33 = vsel %vm1575_vm6, %v4396_v48, %v4288_v34 }
 0x5b0   : > { %v4400_v31 = vsel %vm1608_vm5, %v4398_v33, %v4296_v7 }
 0x5b1   : > { %v4402_v35 = vsel %vm1641_vm7, %v4400_v31, %v4304_v1 }
 0x5b2   : > { %v4404_v61 = vsel %vm1674_vm9, %v4402_v35, %v4312_v29 }
 0x5b3   : > { %v4406_v15 = vsel %vm1707_vm8, %v4404_v61, %v4320_v50 }
 0x5b4   : > { %v4408_v19 = vsel %vm1740_vm10, %v4406_v15, %v4328_v28 }
 0x5b6   : > { %v4344_v55 = vpop.permute.xlu0 %4343  ;;  %v4360_v56 = vpop.permute.xlu1 %4359 }
 0x5be   : > { %v4368_v30 = vpop.permute.xlu0 %4367  ;;  %v4336_v3 = vpop.permute.xlu1 %4335 }
 0x5bf   : > { %v4410_v21 = vsel %vm1773_vm11, %v4408_v19, %v4336_v3 }
 0x5c0   : > { %v4412_v24 = vsel %vm10089_vm4, %v4410_v21, %v4344_v55 }
 0x5c1   : > { %v4415_v5 = vsel %vm4413_vm14, %v4412_v24, %v4352_v10 }
 0x5c2   : > { %v4418_v17 = vsel %vm4416_vm15, %v4415_v5, %v4360_v56 }
 0x5c3   : > { %v4421_v16 = vsel %vm4419_vm0, %v4418_v17, %v4368_v30 }
 0x5c4   : > { %v4424_v26 = vsel %vm4422_vm1, %v4421_v16, %v4376_v23 }
 0x5c6   : > { %v4392_v40 = vpop.permute.xlu0 %4391  ;;  %v4384_v41 = vpop.permute.xlu1 %4383 }
 0x5c7   : > { %v4427_v42 = vsel %vm4425_vm2, %v4424_v26, %v4384_v41 }
 0x5c8   : > { %v4430_v4 = vsel %vm4428_vm3, %v4427_v42, %v4392_v40 }
 0x5c9   : > { %4433 = vst.msk [vmem:[%s9503_s15 + $0x8] sm:$0xff] %vm4431_vm12, %v4430_v4 }
 0x5ca   : > { %6003 = shalt.err (!%p6000_p5)
}
 0x5cb   : > { %s6073_s12 = smov 128  }
 0x5cc   : > { %4620 = dma.vmem_to_hbm [thread:$0]  (%p6144_p4), %s4450_s27, 256, %s4452_s29, %s4435_s21, %s6073_s12, %s6073_s12, %s6057_s13  }
 0x5cd PF: > { %p4626_p6 = scmp.ge.s32.totalorder %s6054_s23, 2  ;;  %s4466_s15 = sand.u32 1, %s6034_s18  }
 0x5ce   : > { %s4467_s17 = scalar_lea.sflag [#allocation4], %s4466_s15 }
 0x5cf   : > { %p4623_p7 = pnand %p4626_p6, %p6151_p8 }
 0x5d1   : > { %p4624_p9 = pneg %p4623_p7 }
 0x5d3   : > { %6029 = dma.done.wait (%p4624_p9), %s4467_s17, 256  }
 0x5d4   : > { %6031 = vsyncadd (%p4624_p9), %s4467_s17, 4294967040  ;;  %s18_s23 = sadd.s32 1, %s6054_s23   ;;  %s10090_s18 = smov %s6038_s19 }
 0x5d5   : > { %p15_p10 = scmp.ge.s32.totalorder %s18_s23, 4   ;;  %s10091_s19 = smov %s6042_s20 }
 0x5d6   : > { %s10092_s20 = smov %s6157_s6  ;;  %s10093_s21 = smov %s6050_s22 }
 0x5d7   : > { %s10094_s22 = smov %s10096_s26  ;;  %17 = sbr.rel (!%p15_p10) target bundleno = 4 (0x4), region = 82 }
 0x5dc   :  { %4473 = vsyncpa [#allocation4], 1 }
 0x5dd   :  { %4475 = vsyncpa [#allocation4 + $0x1], 1 }

</bundles_post_ra>
